<compile_context>
chip_gen: v7x
topology: tpu7x:2x2x1
jax: 0.10.0
libtpu: 0.0.40
codegen_flags: <defaults>
</compile_context>

<pallas_src>
import jax
import jax.numpy as jnp
from jax import lax
from jax.experimental import pallas as pl
from jax.experimental.pallas import tpu as pltpu

_EPS = 1e-5  # nn.BatchNorm1d default


# ----------------------------- kernel helpers ------------------------------


def _conv3(x, mprev, mnext, wf):
    """Conv1d(k=3, stride=1, pad=1) over flattened (B*T, C) rows.

    x:      (M, C) f32 activations (rows ordered batch-major, time-minor)
    wf:     (3*C, Cout) bf16 weight with the three taps folded along K
    mprev:  (M, 1) f32 mask, 0 where t == 0      (kills cross-batch x[t-1] taps)
    mnext:  (M, 1) f32 mask, 0 where t == T - 1  (kills cross-batch x[t+1] taps)
    """
    m, c = x.shape
    # row r of `prev` holds x[r-1]; row r of `nxt` holds x[r+1] (roll == jnp.roll).
    prev = pltpu.roll(x, 1, axis=0) * mprev
    nxt = pltpu.roll(x, m - 1, axis=0) * mnext
    if c % 64 == 0:
        # Fused path: one matmul with K = 3*C (taps folded -> fat MXU contraction).
        # (On v5e a 3x K=128 dot path would already saturate its 128-deep MXU; the
        #  fused K=3C contraction is best for v6e/v7x's 256-deep MXU.)
        patch = jnp.concatenate([prev, x, nxt], axis=1).astype(jnp.bfloat16)
        return jnp.dot(patch, wf, preferred_element_type=jnp.float32)
    # Narrow-channel fallback (e.g. the raw network input): three K=C dots,
    # still contracting the native lane axis with no reshapes.
    out = jnp.dot(prev.astype(jnp.bfloat16), wf[0:c],
                  preferred_element_type=jnp.float32)
    out = out + jnp.dot(x.astype(jnp.bfloat16), wf[c:2 * c],
                        preferred_element_type=jnp.float32)
    out = out + jnp.dot(nxt.astype(jnp.bfloat16), wf[2 * c:3 * c],
                        preferred_element_type=jnp.float32)
    return out


def _batchnorm(y, gamma, beta):
    """Training-mode BN over all rows: two-pass biased variance, folded scale/shift."""
    inv_n = 1.0 / y.shape[0]
    mean = jnp.sum(y, axis=0, keepdims=True) * inv_n
    var = jnp.sum((y - mean) * (y - mean), axis=0, keepdims=True) * inv_n
    s = gamma * lax.rsqrt(var + _EPS)
    b = beta - mean * s
    return y * s + b


# ------------------------------ fused kernel ---------------------------------


def _make_fused_kernel(t_len, proj_flags):
    """Builds one kernel running all residual blocks + the FC head in VMEM.

    Ref layout: [x, (w1f, g1, be1, w2f, g2, be2, [wl, bl])*n_blocks,
                 fc1_w, fc1_b, fc2_w_pad, fc2_b_pad, out]
    """

    def kernel(*refs):
        x_ref = refs[0]
        o_ref = refs[-1]
        h = x_ref[...].astype(jnp.float32)
        m = h.shape[0]

        # Batch-boundary masks computed in-kernel (no lane-padded (M,1) DMAs).
        t_idx = lax.broadcasted_iota(jnp.int32, (m, 1), 0) % t_len
        mprev = (t_idx != 0).astype(jnp.float32)
        mnext = (t_idx != t_len - 1).astype(jnp.float32)

        i = 1
        for has_proj in proj_flags:
            w1, g1, be1, w2, g2, be2 = (r[...] for r in refs[i:i + 6])
            i += 6
            if has_proj:
                wl, bl = refs[i][...], refs[i + 1][...]
                i += 2
                res = jnp.dot(h.astype(jnp.bfloat16), wl,
                              preferred_element_type=jnp.float32) + bl
            else:
                res = h  # identity residual: no projection matmul
            # Conv biases omitted on purpose: BN's mean subtraction cancels them.
            h1 = jnp.maximum(_batchnorm(_conv3(h, mprev, mnext, w1), g1, be1), 0.0)
            h2 = _batchnorm(_conv3(h1, mprev, mnext, w2), g2, be2)
            h = jnp.maximum(h2 + res, 0.0)

        fw1, fb1, fw2, fb2 = (refs[j][...] for j in range(i, i + 4))
        hh = jnp.maximum(jnp.dot(h.astype(jnp.bfloat16), fw1,
                                 preferred_element_type=jnp.float32) + fb1, 0.0)
        z = jnp.dot(hh.astype(jnp.bfloat16), fw2,
                    preferred_element_type=jnp.float32) + fb2
        o_ref[...] = 1.0 / (1.0 + jnp.exp(-z))  # sigmoid (lane-dense padded output)

    return kernel


# ------------------------------- wrapper --------------------------------------


def _vmem_limit_bytes():
    """~75% of physical VMEM (96 MiB on v5e/v6e, 48 MiB on v7x), capped at 100 MiB."""
    cap = 64 * 1024 * 1024
    try:
        info = pltpu.get_tpu_info()
        cap = int(getattr(info, "vmem_capacity_bytes", cap))
    except Exception:
        pass
    return max(32 * 1024 * 1024, min(cap * 3 // 4, 100 * 1024 * 1024))


def residual_cnn_forward(x, lengths, params):
    """x: (B, T, input_dim) f32, lengths: (B,) -> (B, T, output_dim) f32.

    `lengths` is accepted but unused, exactly as in the PyTorch forward.
    """
    del lengths
    b, t, _ = x.shape
    bt = b * t
    # Free layout change: merge (B, T) into the row axis; channels stay on lanes.
    h = x.reshape(bt, -1).astype(jnp.float32)

    row = lambda v: v.reshape(1, -1).astype(jnp.float32)
    args = [h]
    proj_flags = []
    for bp in params["blocks"]:
        cout = bp["w1"].shape[-1]
        # Fold the 3 conv taps along the contraction axis; cast weights to bf16.
        args += [bp["w1"].reshape(-1, cout).astype(jnp.bfloat16),  # (3*cin, cout)
                 row(bp["g1"]), row(bp["be1"]),
                 bp["w2"].reshape(-1, cout).astype(jnp.bfloat16),  # (3*cout, cout)
                 row(bp["g2"]), row(bp["be2"])]
        has_proj = "wl" in bp
        proj_flags.append(has_proj)
        if has_proj:                    # cin != cout -> Linear residual projection
            args += [bp["wl"].astype(jnp.bfloat16), row(bp["bl"])]

    # Lane-dense head output: zero-pad fc2's N to a multiple of 128, slice after.
    out_dim = params["fc2_w"].shape[-1]
    n_pad = max(128, ((out_dim + 127) // 128) * 128)
    w2p = jnp.zeros((params["fc2_w"].shape[0], n_pad), jnp.float32)
    w2p = w2p.at[:, :out_dim].set(params["fc2_w"])
    b2p = jnp.zeros((1, n_pad), jnp.float32).at[:, :out_dim].set(
        params["fc2_b"].reshape(1, -1))
    args += [params["fc1_w"].astype(jnp.bfloat16), row(params["fc1_b"]),
             w2p.astype(jnp.bfloat16), b2p]

    kernel = _make_fused_kernel(t, tuple(proj_flags))
    vmem = pl.BlockSpec(memory_space=pltpu.MemorySpace.VMEM)
    out = pl.pallas_call(
        kernel,
        out_shape=jax.ShapeDtypeStruct((bt, n_pad), jnp.float32),
        in_specs=[vmem] * len(args),
        out_specs=vmem,
        compiler_params=pltpu.CompilerParams(vmem_limit_bytes=_vmem_limit_bytes()),
    )(*args)
    return out[:, :out_dim].reshape(b, t, out_dim)


# ----------------------- params + pure-JAX reference -------------------------


def init_params(key, input_dim, output_dim):
    """PyTorch-default-style init for Residual_CNN (fresh module, training mode)."""
    chans = [(input_dim, 64), (64, 64), (64, 64), (64, 128), (128, 128)]
    keys = jax.random.split(key, len(chans) + 1)
    blocks = []
    for (cin, cout), k in zip(chans, keys[:-1]):
        ks = jax.random.split(k, 6)
        fan1, fan2 = cin * 3, cout * 3
        bp = {
            "w1": jax.random.uniform(ks[0], (3, cin, cout), jnp.float32, -1, 1)
                  / jnp.sqrt(fan1),
            "b1": jax.random.uniform(ks[1], (cout,), jnp.float32, -1, 1)
                  / jnp.sqrt(fan1),
            "w2": jax.random.uniform(ks[2], (3, cout, cout), jnp.float32, -1, 1)
                  / jnp.sqrt(fan2),
            "b2": jax.random.uniform(ks[3], (cout,), jnp.float32, -1, 1)
                  / jnp.sqrt(fan2),
            # BatchNorm affine params at their nn.BatchNorm1d defaults.
            "g1": jnp.ones((cout,), jnp.float32), "be1": jnp.zeros((cout,), jnp.float32),
            "g2": jnp.ones((cout,), jnp.float32), "be2": jnp.zeros((cout,), jnp.float32),
        }
        if cin != cout:   # residual projection Linear(cin, cout)
            bp["wl"] = (jax.random.uniform(ks[4], (cin, cout), jnp.float32, -1, 1)
                        / jnp.sqrt(cin))
            bp["bl"] = (jax.random.uniform(ks[5], (cout,), jnp.float32, -1, 1)
                        / jnp.sqrt(cin))
        blocks.append(bp)
    kf = jax.random.split(keys[-1], 4)
    return {
        "blocks": blocks,
        "fc1_w": jax.random.uniform(kf[0], (128, 256), jnp.float32, -1, 1) / jnp.sqrt(128.0),
        "fc1_b": jax.random.uniform(kf[1], (256,), jnp.float32, -1, 1) / jnp.sqrt(128.0),
        "fc2_w": jax.random.uniform(kf[2], (256, output_dim), jnp.float32, -1, 1) / jnp.sqrt(256.0),
        "fc2_b": jax.random.uniform(kf[3], (output_dim,), jnp.float32, -1, 1) / jnp.sqrt(256.0),
    }


def _ref_block(x, bp):
    def conv(v, w, b):
        y = lax.conv_general_dilated(v, w, (1,), "SAME",
                                     dimension_numbers=("NWC", "WIO", "NWC"))
        return y + b

    def bn(y, g, b):
        m = jnp.mean(y, axis=(0, 1), keepdims=True)
        v = jnp.mean((y - m) ** 2, axis=(0, 1), keepdims=True)
        return (y - m) * lax.rsqrt(v + _EPS) * g + b

    h = jnp.maximum(bn(conv(x, bp["w1"], bp["b1"]), bp["g1"], bp["be1"]), 0.0)
    h2 = bn(conv(h, bp["w2"], bp["b2"]), bp["g2"], bp["be2"])
    res = x
    if "wl" in bp:
        res = jnp.einsum("btc,cd->btd", x, bp["wl"]) + bp["bl"]
    return jnp.maximum(h2 + res, 0.0)


def ref_forward(x, lengths, params):
    """Pure-JAX f32 reference mirroring the PyTorch forward (training-mode BN)."""
    del lengths
    h = x.astype(jnp.float32)
    for bp in params["blocks"]:
        h = _ref_block(h, bp)
    h = jnp.maximum(jnp.einsum("btc,cd->btd", h, params["fc1_w"]) + params["fc1_b"], 0.0)
    z = jnp.einsum("btc,cd->btd", h, params["fc2_w"]) + params["fc2_b"]
    return jax.nn.sigmoid(z)


# ---------------------------------- main -------------------------------------


if __name__ == "__main__":
    key = jax.random.PRNGKey(0)
    k_x, k_p = jax.random.split(key)

    B, T, D_IN, D_OUT = 2, 16, 8, 4
    x = jax.random.normal(k_x, (B, T, D_IN), jnp.float32)
    lengths = jnp.full((B,), T, jnp.int32)
    params = init_params(k_p, D_IN, D_OUT)

    out = jax.block_until_ready(residual_cnn_forward(x, lengths, params))
    ref = jax.block_until_ready(ref_forward(x, lengths, params))

    assert out.shape == (B, T, D_OUT)
    # Tolerance accounts for bf16 MXU operands (f32 accumulation) vs the f32
    # reference across 12 chained matmuls; typical error is ~1e-3 post-sigmoid.
    err = float(jnp.max(jnp.abs(out - ref)))
    assert err < 3e-2, err
    print("KERNEL_OK")
</pallas_src>

<mosaic_0001>
module attributes {stable_mosaic.version = 11 : i64} {
  func.func @kernel(%arg0: memref<32x8xf32, #tpu.memory_space<vmem>>, %arg1: memref<24x64xbf16, #tpu.memory_space<vmem>>, %arg2: memref<1x64xf32, #tpu.memory_space<vmem>>, %arg3: memref<1x64xf32, #tpu.memory_space<vmem>>, %arg4: memref<192x64xbf16, #tpu.memory_space<vmem>>, %arg5: memref<1x64xf32, #tpu.memory_space<vmem>>, %arg6: memref<1x64xf32, #tpu.memory_space<vmem>>, %arg7: memref<8x64xbf16, #tpu.memory_space<vmem>>, %arg8: memref<1x64xf32, #tpu.memory_space<vmem>>, %arg9: memref<192x64xbf16, #tpu.memory_space<vmem>>, %arg10: memref<1x64xf32, #tpu.memory_space<vmem>>, %arg11: memref<1x64xf32, #tpu.memory_space<vmem>>, %arg12: memref<192x64xbf16, #tpu.memory_space<vmem>>, %arg13: memref<1x64xf32, #tpu.memory_space<vmem>>, %arg14: memref<1x64xf32, #tpu.memory_space<vmem>>, %arg15: memref<192x64xbf16, #tpu.memory_space<vmem>>, %arg16: memref<1x64xf32, #tpu.memory_space<vmem>>, %arg17: memref<1x64xf32, #tpu.memory_space<vmem>>, %arg18: memref<192x64xbf16, #tpu.memory_space<vmem>>, %arg19: memref<1x64xf32, #tpu.memory_space<vmem>>, %arg20: memref<1x64xf32, #tpu.memory_space<vmem>>, %arg21: memref<192x128xbf16, #tpu.memory_space<vmem>>, %arg22: memref<1x128xf32, #tpu.memory_space<vmem>>, %arg23: memref<1x128xf32, #tpu.memory_space<vmem>>, %arg24: memref<384x128xbf16, #tpu.memory_space<vmem>>, %arg25: memref<1x128xf32, #tpu.memory_space<vmem>>, %arg26: memref<1x128xf32, #tpu.memory_space<vmem>>, %arg27: memref<64x128xbf16, #tpu.memory_space<vmem>>, %arg28: memref<1x128xf32, #tpu.memory_space<vmem>>, %arg29: memref<384x128xbf16, #tpu.memory_space<vmem>>, %arg30: memref<1x128xf32, #tpu.memory_space<vmem>>, %arg31: memref<1x128xf32, #tpu.memory_space<vmem>>, %arg32: memref<384x128xbf16, #tpu.memory_space<vmem>>, %arg33: memref<1x128xf32, #tpu.memory_space<vmem>>, %arg34: memref<1x128xf32, #tpu.memory_space<vmem>>, %arg35: memref<128x256xbf16, #tpu.memory_space<vmem>>, %arg36: memref<1x256xf32, #tpu.memory_space<vmem>>, %arg37: memref<256x128xbf16, #tpu.memory_space<vmem>>, %arg38: memref<1x128xf32, #tpu.memory_space<vmem>>, %arg39: memref<32x128xf32, #tpu.memory_space<vmem>>) attributes {dimension_semantics = [], scalar_prefetch = 0 : i64, scratch_operands = 0 : i64, tpu.core_type = #tpu.core_type<tc>} {
    %c0 = arith.constant 0 : index
    %c0_0 = arith.constant 0 : index
    %0 = vector.load %arg0[%c0, %c0_0] : memref<32x8xf32, #tpu.memory_space<vmem>>, vector<32x8xf32>
    %1 = tpu.iota {dimensions = array<i32: 0>} : vector<32x1xi32>
    %c16_i32 = arith.constant 16 : i32
    %c0_i32 = arith.constant 0 : i32
    %2 = arith.cmpi eq, %c16_i32, %c0_i32 : i32
    %c1_i32 = arith.constant 1 : i32
    %3 = arith.select %2, %c1_i32, %c16_i32 : i32
    %4 = vector.broadcast %3 : i32 to vector<32x1xi32>
    %5 = arith.remsi %1, %4 : vector<32x1xi32>
    %c0_i32_1 = arith.constant 0 : i32
    %6 = vector.broadcast %c0_i32_1 : i32 to vector<32x1xi32>
    %7 = arith.cmpi ne, %5, %6 : vector<32x1xi32>
    %c0_i32_2 = arith.constant 0 : i32
    %8 = vector.broadcast %c0_i32_2 : i32 to vector<32x1xi32>
    %9 = arith.cmpi slt, %5, %8 : vector<32x1xi32>
    %c0_i32_3 = arith.constant 0 : i32
    %10 = arith.cmpi slt, %3, %c0_i32_3 : i32
    %11 = vector.broadcast %10 : i1 to vector<32x1xi1>
    %12 = vector.broadcast %11 : vector<32x1xi1> to vector<32x1xi1>
    %13 = arith.xori %9, %12 : vector<32x1xi1>
    %14 = arith.andi %13, %7 : vector<32x1xi1>
    %15 = vector.broadcast %3 : i32 to vector<32x1xi32>
    %16 = arith.addi %5, %15 : vector<32x1xi32>
    %17 = arith.select %14, %16, %5 : vector<32x1xi1>, vector<32x1xi32>
    %c0_i32_4 = arith.constant 0 : i32
    %18 = vector.broadcast %c0_i32_4 : i32 to vector<32x1xi32>
    %19 = arith.cmpi ne, %17, %18 : vector<32x1xi32>
    %20 = arith.extui %19 : vector<32x1xi1> to vector<32x1xi32>
    %21 = arith.sitofp %20 : vector<32x1xi32> to vector<32x1xf32>
    %c15_i32 = arith.constant 15 : i32
    %22 = vector.broadcast %c15_i32 : i32 to vector<32x1xi32>
    %23 = arith.cmpi ne, %17, %22 : vector<32x1xi32>
    %24 = arith.extui %23 : vector<32x1xi1> to vector<32x1xi32>
    %25 = arith.sitofp %24 : vector<32x1xi32> to vector<32x1xf32>
    %c0_5 = arith.constant 0 : index
    %c0_6 = arith.constant 0 : index
    %26 = vector.load %arg1[%c0_5, %c0_6] : memref<24x64xbf16, #tpu.memory_space<vmem>>, vector<24x64xbf16>
    %c0_7 = arith.constant 0 : index
    %c0_8 = arith.constant 0 : index
    %27 = vector.load %arg2[%c0_7, %c0_8] : memref<1x64xf32, #tpu.memory_space<vmem>>, vector<1x64xf32>
    %c0_9 = arith.constant 0 : index
    %c0_10 = arith.constant 0 : index
    %28 = vector.load %arg3[%c0_9, %c0_10] : memref<1x64xf32, #tpu.memory_space<vmem>>, vector<1x64xf32>
    %c0_11 = arith.constant 0 : index
    %c0_12 = arith.constant 0 : index
    %29 = vector.load %arg4[%c0_11, %c0_12] : memref<192x64xbf16, #tpu.memory_space<vmem>>, vector<192x64xbf16>
    %c0_13 = arith.constant 0 : index
    %c0_14 = arith.constant 0 : index
    %30 = vector.load %arg5[%c0_13, %c0_14] : memref<1x64xf32, #tpu.memory_space<vmem>>, vector<1x64xf32>
    %c0_15 = arith.constant 0 : index
    %c0_16 = arith.constant 0 : index
    %31 = vector.load %arg6[%c0_15, %c0_16] : memref<1x64xf32, #tpu.memory_space<vmem>>, vector<1x64xf32>
    %c0_17 = arith.constant 0 : index
    %c0_18 = arith.constant 0 : index
    %32 = vector.load %arg7[%c0_17, %c0_18] : memref<8x64xbf16, #tpu.memory_space<vmem>>, vector<8x64xbf16>
    %c0_19 = arith.constant 0 : index
    %c0_20 = arith.constant 0 : index
    %33 = vector.load %arg8[%c0_19, %c0_20] : memref<1x64xf32, #tpu.memory_space<vmem>>, vector<1x64xf32>
    %34 = arith.truncf %0 : vector<32x8xf32> to vector<32x8xbf16>
    %cst = arith.constant dense<0.000000e+00> : vector<32x64xf32>
    %35 = tpu.matmul %34, %32, %cst {dimension_numbers = #tpu.dot_dimension_numbers<[1], [0], [0], [1], [0, 0, 1, 1], [], []>} : vector<32x8xbf16>, vector<8x64xbf16>, vector<32x64xf32> -> vector<32x64xf32>
    %36 = vector.broadcast %33 : vector<1x64xf32> to vector<32x64xf32>
    %37 = arith.addf %35, %36 : vector<32x64xf32>
    %c1_i32_21 = arith.constant 1 : i32
    %38 = tpu.dynamic_rotate %0 by %c1_i32_21 dim 0 : vector<32x8xf32>, i32 -> vector<32x8xf32>
    %39 = vector.broadcast %21 : vector<32x1xf32> to vector<32x8xf32>
    %40 = arith.mulf %38, %39 : vector<32x8xf32>
    %c31_i32 = arith.constant 31 : i32
    %41 = tpu.dynamic_rotate %0 by %c31_i32 dim 0 : vector<32x8xf32>, i32 -> vector<32x8xf32>
    %42 = vector.broadcast %25 : vector<32x1xf32> to vector<32x8xf32>
    %43 = arith.mulf %41, %42 : vector<32x8xf32>
    %44 = arith.truncf %40 : vector<32x8xf32> to vector<32x8xbf16>
    %45 = vector.extract_strided_slice %26 {offsets = [0, 0], sizes = [8, 64], strides = [1, 1]} : vector<24x64xbf16> to vector<8x64xbf16>
    %cst_22 = arith.constant dense<0.000000e+00> : vector<32x64xf32>
    %46 = tpu.matmul %44, %45, %cst_22 {dimension_numbers = #tpu.dot_dimension_numbers<[1], [0], [0], [1], [0, 0, 1, 1], [], []>} : vector<32x8xbf16>, vector<8x64xbf16>, vector<32x64xf32> -> vector<32x64xf32>
    %47 = arith.truncf %0 : vector<32x8xf32> to vector<32x8xbf16>
    %48 = vector.extract_strided_slice %26 {offsets = [8, 0], sizes = [8, 64], strides = [1, 1]} : vector<24x64xbf16> to vector<8x64xbf16>
    %cst_23 = arith.constant dense<0.000000e+00> : vector<32x64xf32>
    %49 = tpu.matmul %47, %48, %cst_23 {dimension_numbers = #tpu.dot_dimension_numbers<[1], [0], [0], [1], [0, 0, 1, 1], [], []>} : vector<32x8xbf16>, vector<8x64xbf16>, vector<32x64xf32> -> vector<32x64xf32>
    %50 = arith.addf %46, %49 : vector<32x64xf32>
    %51 = arith.truncf %43 : vector<32x8xf32> to vector<32x8xbf16>
    %52 = vector.extract_strided_slice %26 {offsets = [16, 0], sizes = [8, 64], strides = [1, 1]} : vector<24x64xbf16> to vector<8x64xbf16>
    %cst_24 = arith.constant dense<0.000000e+00> : vector<32x64xf32>
    %53 = tpu.matmul %51, %52, %cst_24 {dimension_numbers = #tpu.dot_dimension_numbers<[1], [0], [0], [1], [0, 0, 1, 1], [], []>} : vector<32x8xbf16>, vector<8x64xbf16>, vector<32x64xf32> -> vector<32x64xf32>
    %54 = arith.addf %50, %53 : vector<32x64xf32>
    %cst_25 = arith.constant dense<0.000000e+00> : vector<64xf32>
    %55 = vector.multi_reduction <add>, %54, %cst_25 [0] : vector<32x64xf32> to vector<64xf32>
    %56 = vector.shape_cast %55 : vector<64xf32> to vector<1x64xf32>
    %cst_26 = arith.constant 3.125000e-02 : f32
    %57 = vector.broadcast %cst_26 : f32 to vector<1x64xf32>
    %58 = arith.mulf %56, %57 : vector<1x64xf32>
    %59 = vector.broadcast %58 : vector<1x64xf32> to vector<32x64xf32>
    %60 = arith.subf %54, %59 : vector<32x64xf32>
    %61 = vector.broadcast %58 : vector<1x64xf32> to vector<32x64xf32>
    %62 = arith.subf %54, %61 : vector<32x64xf32>
    %63 = arith.mulf %60, %62 : vector<32x64xf32>
    %cst_27 = arith.constant dense<0.000000e+00> : vector<64xf32>
    %64 = vector.multi_reduction <add>, %63, %cst_27 [0] : vector<32x64xf32> to vector<64xf32>
    %65 = vector.shape_cast %64 : vector<64xf32> to vector<1x64xf32>
    %cst_28 = arith.constant 3.125000e-02 : f32
    %66 = vector.broadcast %cst_28 : f32 to vector<1x64xf32>
    %67 = arith.mulf %65, %66 : vector<1x64xf32>
    %cst_29 = arith.constant 9.99999974E-6 : f32
    %68 = vector.broadcast %cst_29 : f32 to vector<1x64xf32>
    %69 = arith.addf %67, %68 : vector<1x64xf32>
    %70 = math.rsqrt %69 : vector<1x64xf32>
    %71 = arith.mulf %27, %70 : vector<1x64xf32>
    %72 = arith.mulf %58, %71 : vector<1x64xf32>
    %73 = arith.subf %28, %72 : vector<1x64xf32>
    %74 = vector.broadcast %71 : vector<1x64xf32> to vector<32x64xf32>
    %75 = arith.mulf %54, %74 : vector<32x64xf32>
    %76 = vector.broadcast %73 : vector<1x64xf32> to vector<32x64xf32>
    %77 = arith.addf %75, %76 : vector<32x64xf32>
    %cst_30 = arith.constant 0.000000e+00 : f32
    %78 = vector.broadcast %cst_30 : f32 to vector<32x64xf32>
    %79 = arith.maximumf %77, %78 : vector<32x64xf32>
    %c1_i32_31 = arith.constant 1 : i32
    %80 = tpu.dynamic_rotate %79 by %c1_i32_31 dim 0 : vector<32x64xf32>, i32 -> vector<32x64xf32>
    %81 = vector.broadcast %21 : vector<32x1xf32> to vector<32x64xf32>
    %82 = arith.mulf %80, %81 : vector<32x64xf32>
    %c31_i32_32 = arith.constant 31 : i32
    %83 = tpu.dynamic_rotate %79 by %c31_i32_32 dim 0 : vector<32x64xf32>, i32 -> vector<32x64xf32>
    %84 = vector.broadcast %25 : vector<32x1xf32> to vector<32x64xf32>
    %85 = arith.mulf %83, %84 : vector<32x64xf32>
    %86 = tpu.concatenate %82, %79, %85 in 1 : vector<32x64xf32>, vector<32x64xf32>, vector<32x64xf32> -> vector<32x192xf32>
    %87 = arith.truncf %86 : vector<32x192xf32> to vector<32x192xbf16>
    %cst_33 = arith.constant dense<0.000000e+00> : vector<32x64xf32>
    %88 = tpu.matmul %87, %29, %cst_33 {dimension_numbers = #tpu.dot_dimension_numbers<[1], [0], [0], [1], [0, 0, 1, 1], [], []>} : vector<32x192xbf16>, vector<192x64xbf16>, vector<32x64xf32> -> vector<32x64xf32>
    %cst_34 = arith.constant dense<0.000000e+00> : vector<64xf32>
    %89 = vector.multi_reduction <add>, %88, %cst_34 [0] : vector<32x64xf32> to vector<64xf32>
    %90 = vector.shape_cast %89 : vector<64xf32> to vector<1x64xf32>
    %cst_35 = arith.constant 3.125000e-02 : f32
    %91 = vector.broadcast %cst_35 : f32 to vector<1x64xf32>
    %92 = arith.mulf %90, %91 : vector<1x64xf32>
    %93 = vector.broadcast %92 : vector<1x64xf32> to vector<32x64xf32>
    %94 = arith.subf %88, %93 : vector<32x64xf32>
    %95 = vector.broadcast %92 : vector<1x64xf32> to vector<32x64xf32>
    %96 = arith.subf %88, %95 : vector<32x64xf32>
    %97 = arith.mulf %94, %96 : vector<32x64xf32>
    %cst_36 = arith.constant dense<0.000000e+00> : vector<64xf32>
    %98 = vector.multi_reduction <add>, %97, %cst_36 [0] : vector<32x64xf32> to vector<64xf32>
    %99 = vector.shape_cast %98 : vector<64xf32> to vector<1x64xf32>
    %cst_37 = arith.constant 3.125000e-02 : f32
    %100 = vector.broadcast %cst_37 : f32 to vector<1x64xf32>
    %101 = arith.mulf %99, %100 : vector<1x64xf32>
    %cst_38 = arith.constant 9.99999974E-6 : f32
    %102 = vector.broadcast %cst_38 : f32 to vector<1x64xf32>
    %103 = arith.addf %101, %102 : vector<1x64xf32>
    %104 = math.rsqrt %103 : vector<1x64xf32>
    %105 = arith.mulf %30, %104 : vector<1x64xf32>
    %106 = arith.mulf %92, %105 : vector<1x64xf32>
    %107 = arith.subf %31, %106 : vector<1x64xf32>
    %108 = vector.broadcast %105 : vector<1x64xf32> to vector<32x64xf32>
    %109 = arith.mulf %88, %108 : vector<32x64xf32>
    %110 = vector.broadcast %107 : vector<1x64xf32> to vector<32x64xf32>
    %111 = arith.addf %109, %110 : vector<32x64xf32>
    %112 = arith.addf %111, %37 : vector<32x64xf32>
    %cst_39 = arith.constant 0.000000e+00 : f32
    %113 = vector.broadcast %cst_39 : f32 to vector<32x64xf32>
    %114 = arith.maximumf %112, %113 : vector<32x64xf32>
    %c0_40 = arith.constant 0 : index
    %c0_41 = arith.constant 0 : index
    %115 = vector.load %arg9[%c0_40, %c0_41] : memref<192x64xbf16, #tpu.memory_space<vmem>>, vector<192x64xbf16>
    %c0_42 = arith.constant 0 : index
    %c0_43 = arith.constant 0 : index
    %116 = vector.load %arg10[%c0_42, %c0_43] : memref<1x64xf32, #tpu.memory_space<vmem>>, vector<1x64xf32>
    %c0_44 = arith.constant 0 : index
    %c0_45 = arith.constant 0 : index
    %117 = vector.load %arg11[%c0_44, %c0_45] : memref<1x64xf32, #tpu.memory_space<vmem>>, vector<1x64xf32>
    %c0_46 = arith.constant 0 : index
    %c0_47 = arith.constant 0 : index
    %118 = vector.load %arg12[%c0_46, %c0_47] : memref<192x64xbf16, #tpu.memory_space<vmem>>, vector<192x64xbf16>
    %c0_48 = arith.constant 0 : index
    %c0_49 = arith.constant 0 : index
    %119 = vector.load %arg13[%c0_48, %c0_49] : memref<1x64xf32, #tpu.memory_space<vmem>>, vector<1x64xf32>
    %c0_50 = arith.constant 0 : index
    %c0_51 = arith.constant 0 : index
    %120 = vector.load %arg14[%c0_50, %c0_51] : memref<1x64xf32, #tpu.memory_space<vmem>>, vector<1x64xf32>
    %c1_i32_52 = arith.constant 1 : i32
    %121 = tpu.dynamic_rotate %114 by %c1_i32_52 dim 0 : vector<32x64xf32>, i32 -> vector<32x64xf32>
    %122 = vector.broadcast %21 : vector<32x1xf32> to vector<32x64xf32>
    %123 = arith.mulf %121, %122 : vector<32x64xf32>
    %c31_i32_53 = arith.constant 31 : i32
    %124 = tpu.dynamic_rotate %114 by %c31_i32_53 dim 0 : vector<32x64xf32>, i32 -> vector<32x64xf32>
    %125 = vector.broadcast %25 : vector<32x1xf32> to vector<32x64xf32>
    %126 = arith.mulf %124, %125 : vector<32x64xf32>
    %127 = tpu.concatenate %123, %114, %126 in 1 : vector<32x64xf32>, vector<32x64xf32>, vector<32x64xf32> -> vector<32x192xf32>
    %128 = arith.truncf %127 : vector<32x192xf32> to vector<32x192xbf16>
    %cst_54 = arith.constant dense<0.000000e+00> : vector<32x64xf32>
    %129 = tpu.matmul %128, %115, %cst_54 {dimension_numbers = #tpu.dot_dimension_numbers<[1], [0], [0], [1], [0, 0, 1, 1], [], []>} : vector<32x192xbf16>, vector<192x64xbf16>, vector<32x64xf32> -> vector<32x64xf32>
    %cst_55 = arith.constant dense<0.000000e+00> : vector<64xf32>
    %130 = vector.multi_reduction <add>, %129, %cst_55 [0] : vector<32x64xf32> to vector<64xf32>
    %131 = vector.shape_cast %130 : vector<64xf32> to vector<1x64xf32>
    %cst_56 = arith.constant 3.125000e-02 : f32
    %132 = vector.broadcast %cst_56 : f32 to vector<1x64xf32>
    %133 = arith.mulf %131, %132 : vector<1x64xf32>
    %134 = vector.broadcast %133 : vector<1x64xf32> to vector<32x64xf32>
    %135 = arith.subf %129, %134 : vector<32x64xf32>
    %136 = vector.broadcast %133 : vector<1x64xf32> to vector<32x64xf32>
    %137 = arith.subf %129, %136 : vector<32x64xf32>
    %138 = arith.mulf %135, %137 : vector<32x64xf32>
    %cst_57 = arith.constant dense<0.000000e+00> : vector<64xf32>
    %139 = vector.multi_reduction <add>, %138, %cst_57 [0] : vector<32x64xf32> to vector<64xf32>
    %140 = vector.shape_cast %139 : vector<64xf32> to vector<1x64xf32>
    %cst_58 = arith.constant 3.125000e-02 : f32
    %141 = vector.broadcast %cst_58 : f32 to vector<1x64xf32>
    %142 = arith.mulf %140, %141 : vector<1x64xf32>
    %cst_59 = arith.constant 9.99999974E-6 : f32
    %143 = vector.broadcast %cst_59 : f32 to vector<1x64xf32>
    %144 = arith.addf %142, %143 : vector<1x64xf32>
    %145 = math.rsqrt %144 : vector<1x64xf32>
    %146 = arith.mulf %116, %145 : vector<1x64xf32>
    %147 = arith.mulf %133, %146 : vector<1x64xf32>
    %148 = arith.subf %117, %147 : vector<1x64xf32>
    %149 = vector.broadcast %146 : vector<1x64xf32> to vector<32x64xf32>
    %150 = arith.mulf %129, %149 : vector<32x64xf32>
    %151 = vector.broadcast %148 : vector<1x64xf32> to vector<32x64xf32>
    %152 = arith.addf %150, %151 : vector<32x64xf32>
    %cst_60 = arith.constant 0.000000e+00 : f32
    %153 = vector.broadcast %cst_60 : f32 to vector<32x64xf32>
    %154 = arith.maximumf %152, %153 : vector<32x64xf32>
    %c1_i32_61 = arith.constant 1 : i32
    %155 = tpu.dynamic_rotate %154 by %c1_i32_61 dim 0 : vector<32x64xf32>, i32 -> vector<32x64xf32>
    %156 = vector.broadcast %21 : vector<32x1xf32> to vector<32x64xf32>
    %157 = arith.mulf %155, %156 : vector<32x64xf32>
    %c31_i32_62 = arith.constant 31 : i32
    %158 = tpu.dynamic_rotate %154 by %c31_i32_62 dim 0 : vector<32x64xf32>, i32 -> vector<32x64xf32>
    %159 = vector.broadcast %25 : vector<32x1xf32> to vector<32x64xf32>
    %160 = arith.mulf %158, %159 : vector<32x64xf32>
    %161 = tpu.concatenate %157, %154, %160 in 1 : vector<32x64xf32>, vector<32x64xf32>, vector<32x64xf32> -> vector<32x192xf32>
    %162 = arith.truncf %161 : vector<32x192xf32> to vector<32x192xbf16>
    %cst_63 = arith.constant dense<0.000000e+00> : vector<32x64xf32>
    %163 = tpu.matmul %162, %118, %cst_63 {dimension_numbers = #tpu.dot_dimension_numbers<[1], [0], [0], [1], [0, 0, 1, 1], [], []>} : vector<32x192xbf16>, vector<192x64xbf16>, vector<32x64xf32> -> vector<32x64xf32>
    %cst_64 = arith.constant dense<0.000000e+00> : vector<64xf32>
    %164 = vector.multi_reduction <add>, %163, %cst_64 [0] : vector<32x64xf32> to vector<64xf32>
    %165 = vector.shape_cast %164 : vector<64xf32> to vector<1x64xf32>
    %cst_65 = arith.constant 3.125000e-02 : f32
    %166 = vector.broadcast %cst_65 : f32 to vector<1x64xf32>
    %167 = arith.mulf %165, %166 : vector<1x64xf32>
    %168 = vector.broadcast %167 : vector<1x64xf32> to vector<32x64xf32>
    %169 = arith.subf %163, %168 : vector<32x64xf32>
    %170 = vector.broadcast %167 : vector<1x64xf32> to vector<32x64xf32>
    %171 = arith.subf %163, %170 : vector<32x64xf32>
    %172 = arith.mulf %169, %171 : vector<32x64xf32>
    %cst_66 = arith.constant dense<0.000000e+00> : vector<64xf32>
    %173 = vector.multi_reduction <add>, %172, %cst_66 [0] : vector<32x64xf32> to vector<64xf32>
    %174 = vector.shape_cast %173 : vector<64xf32> to vector<1x64xf32>
    %cst_67 = arith.constant 3.125000e-02 : f32
    %175 = vector.broadcast %cst_67 : f32 to vector<1x64xf32>
    %176 = arith.mulf %174, %175 : vector<1x64xf32>
    %cst_68 = arith.constant 9.99999974E-6 : f32
    %177 = vector.broadcast %cst_68 : f32 to vector<1x64xf32>
    %178 = arith.addf %176, %177 : vector<1x64xf32>
    %179 = math.rsqrt %178 : vector<1x64xf32>
    %180 = arith.mulf %119, %179 : vector<1x64xf32>
    %181 = arith.mulf %167, %180 : vector<1x64xf32>
    %182 = arith.subf %120, %181 : vector<1x64xf32>
    %183 = vector.broadcast %180 : vector<1x64xf32> to vector<32x64xf32>
    %184 = arith.mulf %163, %183 : vector<32x64xf32>
    %185 = vector.broadcast %182 : vector<1x64xf32> to vector<32x64xf32>
    %186 = arith.addf %184, %185 : vector<32x64xf32>
    %187 = arith.addf %186, %114 : vector<32x64xf32>
    %cst_69 = arith.constant 0.000000e+00 : f32
    %188 = vector.broadcast %cst_69 : f32 to vector<32x64xf32>
    %189 = arith.maximumf %187, %188 : vector<32x64xf32>
    %c0_70 = arith.constant 0 : index
    %c0_71 = arith.constant 0 : index
    %190 = vector.load %arg15[%c0_70, %c0_71] : memref<192x64xbf16, #tpu.memory_space<vmem>>, vector<192x64xbf16>
    %c0_72 = arith.constant 0 : index
    %c0_73 = arith.constant 0 : index
    %191 = vector.load %arg16[%c0_72, %c0_73] : memref<1x64xf32, #tpu.memory_space<vmem>>, vector<1x64xf32>
    %c0_74 = arith.constant 0 : index
    %c0_75 = arith.constant 0 : index
    %192 = vector.load %arg17[%c0_74, %c0_75] : memref<1x64xf32, #tpu.memory_space<vmem>>, vector<1x64xf32>
    %c0_76 = arith.constant 0 : index
    %c0_77 = arith.constant 0 : index
    %193 = vector.load %arg18[%c0_76, %c0_77] : memref<192x64xbf16, #tpu.memory_space<vmem>>, vector<192x64xbf16>
    %c0_78 = arith.constant 0 : index
    %c0_79 = arith.constant 0 : index
    %194 = vector.load %arg19[%c0_78, %c0_79] : memref<1x64xf32, #tpu.memory_space<vmem>>, vector<1x64xf32>
    %c0_80 = arith.constant 0 : index
    %c0_81 = arith.constant 0 : index
    %195 = vector.load %arg20[%c0_80, %c0_81] : memref<1x64xf32, #tpu.memory_space<vmem>>, vector<1x64xf32>
    %c1_i32_82 = arith.constant 1 : i32
    %196 = tpu.dynamic_rotate %189 by %c1_i32_82 dim 0 : vector<32x64xf32>, i32 -> vector<32x64xf32>
    %197 = vector.broadcast %21 : vector<32x1xf32> to vector<32x64xf32>
    %198 = arith.mulf %196, %197 : vector<32x64xf32>
    %c31_i32_83 = arith.constant 31 : i32
    %199 = tpu.dynamic_rotate %189 by %c31_i32_83 dim 0 : vector<32x64xf32>, i32 -> vector<32x64xf32>
    %200 = vector.broadcast %25 : vector<32x1xf32> to vector<32x64xf32>
    %201 = arith.mulf %199, %200 : vector<32x64xf32>
    %202 = tpu.concatenate %198, %189, %201 in 1 : vector<32x64xf32>, vector<32x64xf32>, vector<32x64xf32> -> vector<32x192xf32>
    %203 = arith.truncf %202 : vector<32x192xf32> to vector<32x192xbf16>
    %cst_84 = arith.constant dense<0.000000e+00> : vector<32x64xf32>
    %204 = tpu.matmul %203, %190, %cst_84 {dimension_numbers = #tpu.dot_dimension_numbers<[1], [0], [0], [1], [0, 0, 1, 1], [], []>} : vector<32x192xbf16>, vector<192x64xbf16>, vector<32x64xf32> -> vector<32x64xf32>
    %cst_85 = arith.constant dense<0.000000e+00> : vector<64xf32>
    %205 = vector.multi_reduction <add>, %204, %cst_85 [0] : vector<32x64xf32> to vector<64xf32>
    %206 = vector.shape_cast %205 : vector<64xf32> to vector<1x64xf32>
    %cst_86 = arith.constant 3.125000e-02 : f32
    %207 = vector.broadcast %cst_86 : f32 to vector<1x64xf32>
    %208 = arith.mulf %206, %207 : vector<1x64xf32>
    %209 = vector.broadcast %208 : vector<1x64xf32> to vector<32x64xf32>
    %210 = arith.subf %204, %209 : vector<32x64xf32>
    %211 = vector.broadcast %208 : vector<1x64xf32> to vector<32x64xf32>
    %212 = arith.subf %204, %211 : vector<32x64xf32>
    %213 = arith.mulf %210, %212 : vector<32x64xf32>
    %cst_87 = arith.constant dense<0.000000e+00> : vector<64xf32>
    %214 = vector.multi_reduction <add>, %213, %cst_87 [0] : vector<32x64xf32> to vector<64xf32>
    %215 = vector.shape_cast %214 : vector<64xf32> to vector<1x64xf32>
    %cst_88 = arith.constant 3.125000e-02 : f32
    %216 = vector.broadcast %cst_88 : f32 to vector<1x64xf32>
    %217 = arith.mulf %215, %216 : vector<1x64xf32>
    %cst_89 = arith.constant 9.99999974E-6 : f32
    %218 = vector.broadcast %cst_89 : f32 to vector<1x64xf32>
    %219 = arith.addf %217, %218 : vector<1x64xf32>
    %220 = math.rsqrt %219 : vector<1x64xf32>
    %221 = arith.mulf %191, %220 : vector<1x64xf32>
    %222 = arith.mulf %208, %221 : vector<1x64xf32>
    %223 = arith.subf %192, %222 : vector<1x64xf32>
    %224 = vector.broadcast %221 : vector<1x64xf32> to vector<32x64xf32>
    %225 = arith.mulf %204, %224 : vector<32x64xf32>
    %226 = vector.broadcast %223 : vector<1x64xf32> to vector<32x64xf32>
    %227 = arith.addf %225, %226 : vector<32x64xf32>
    %cst_90 = arith.constant 0.000000e+00 : f32
    %228 = vector.broadcast %cst_90 : f32 to vector<32x64xf32>
    %229 = arith.maximumf %227, %228 : vector<32x64xf32>
    %c1_i32_91 = arith.constant 1 : i32
    %230 = tpu.dynamic_rotate %229 by %c1_i32_91 dim 0 : vector<32x64xf32>, i32 -> vector<32x64xf32>
    %231 = vector.broadcast %21 : vector<32x1xf32> to vector<32x64xf32>
    %232 = arith.mulf %230, %231 : vector<32x64xf32>
    %c31_i32_92 = arith.constant 31 : i32
    %233 = tpu.dynamic_rotate %229 by %c31_i32_92 dim 0 : vector<32x64xf32>, i32 -> vector<32x64xf32>
    %234 = vector.broadcast %25 : vector<32x1xf32> to vector<32x64xf32>
    %235 = arith.mulf %233, %234 : vector<32x64xf32>
    %236 = tpu.concatenate %232, %229, %235 in 1 : vector<32x64xf32>, vector<32x64xf32>, vector<32x64xf32> -> vector<32x192xf32>
    %237 = arith.truncf %236 : vector<32x192xf32> to vector<32x192xbf16>
    %cst_93 = arith.constant dense<0.000000e+00> : vector<32x64xf32>
    %238 = tpu.matmul %237, %193, %cst_93 {dimension_numbers = #tpu.dot_dimension_numbers<[1], [0], [0], [1], [0, 0, 1, 1], [], []>} : vector<32x192xbf16>, vector<192x64xbf16>, vector<32x64xf32> -> vector<32x64xf32>
    %cst_94 = arith.constant dense<0.000000e+00> : vector<64xf32>
    %239 = vector.multi_reduction <add>, %238, %cst_94 [0] : vector<32x64xf32> to vector<64xf32>
    %240 = vector.shape_cast %239 : vector<64xf32> to vector<1x64xf32>
    %cst_95 = arith.constant 3.125000e-02 : f32
    %241 = vector.broadcast %cst_95 : f32 to vector<1x64xf32>
    %242 = arith.mulf %240, %241 : vector<1x64xf32>
    %243 = vector.broadcast %242 : vector<1x64xf32> to vector<32x64xf32>
    %244 = arith.subf %238, %243 : vector<32x64xf32>
    %245 = vector.broadcast %242 : vector<1x64xf32> to vector<32x64xf32>
    %246 = arith.subf %238, %245 : vector<32x64xf32>
    %247 = arith.mulf %244, %246 : vector<32x64xf32>
    %cst_96 = arith.constant dense<0.000000e+00> : vector<64xf32>
    %248 = vector.multi_reduction <add>, %247, %cst_96 [0] : vector<32x64xf32> to vector<64xf32>
    %249 = vector.shape_cast %248 : vector<64xf32> to vector<1x64xf32>
    %cst_97 = arith.constant 3.125000e-02 : f32
    %250 = vector.broadcast %cst_97 : f32 to vector<1x64xf32>
    %251 = arith.mulf %249, %250 : vector<1x64xf32>
    %cst_98 = arith.constant 9.99999974E-6 : f32
    %252 = vector.broadcast %cst_98 : f32 to vector<1x64xf32>
    %253 = arith.addf %251, %252 : vector<1x64xf32>
    %254 = math.rsqrt %253 : vector<1x64xf32>
    %255 = arith.mulf %194, %254 : vector<1x64xf32>
    %256 = arith.mulf %242, %255 : vector<1x64xf32>
    %257 = arith.subf %195, %256 : vector<1x64xf32>
    %258 = vector.broadcast %255 : vector<1x64xf32> to vector<32x64xf32>
    %259 = arith.mulf %238, %258 : vector<32x64xf32>
    %260 = vector.broadcast %257 : vector<1x64xf32> to vector<32x64xf32>
    %261 = arith.addf %259, %260 : vector<32x64xf32>
    %262 = arith.addf %261, %189 : vector<32x64xf32>
    %cst_99 = arith.constant 0.000000e+00 : f32
    %263 = vector.broadcast %cst_99 : f32 to vector<32x64xf32>
    %264 = arith.maximumf %262, %263 : vector<32x64xf32>
    %c0_100 = arith.constant 0 : index
    %c0_101 = arith.constant 0 : index
    %265 = vector.load %arg21[%c0_100, %c0_101] : memref<192x128xbf16, #tpu.memory_space<vmem>>, vector<192x128xbf16>
    %c0_102 = arith.constant 0 : index
    %c0_103 = arith.constant 0 : index
    %266 = vector.load %arg22[%c0_102, %c0_103] : memref<1x128xf32, #tpu.memory_space<vmem>>, vector<1x128xf32>
    %c0_104 = arith.constant 0 : index
    %c0_105 = arith.constant 0 : index
    %267 = vector.load %arg23[%c0_104, %c0_105] : memref<1x128xf32, #tpu.memory_space<vmem>>, vector<1x128xf32>
    %c0_106 = arith.constant 0 : index
    %c0_107 = arith.constant 0 : index
    %268 = vector.load %arg24[%c0_106, %c0_107] : memref<384x128xbf16, #tpu.memory_space<vmem>>, vector<384x128xbf16>
    %c0_108 = arith.constant 0 : index
    %c0_109 = arith.constant 0 : index
    %269 = vector.load %arg25[%c0_108, %c0_109] : memref<1x128xf32, #tpu.memory_space<vmem>>, vector<1x128xf32>
    %c0_110 = arith.constant 0 : index
    %c0_111 = arith.constant 0 : index
    %270 = vector.load %arg26[%c0_110, %c0_111] : memref<1x128xf32, #tpu.memory_space<vmem>>, vector<1x128xf32>
    %c0_112 = arith.constant 0 : index
    %c0_113 = arith.constant 0 : index
    %271 = vector.load %arg27[%c0_112, %c0_113] : memref<64x128xbf16, #tpu.memory_space<vmem>>, vector<64x128xbf16>
    %c0_114 = arith.constant 0 : index
    %c0_115 = arith.constant 0 : index
    %272 = vector.load %arg28[%c0_114, %c0_115] : memref<1x128xf32, #tpu.memory_space<vmem>>, vector<1x128xf32>
    %273 = arith.truncf %264 : vector<32x64xf32> to vector<32x64xbf16>
    %cst_116 = arith.constant dense<0.000000e+00> : vector<32x128xf32>
    %274 = tpu.matmul %273, %271, %cst_116 {dimension_numbers = #tpu.dot_dimension_numbers<[1], [0], [0], [1], [0, 0, 1, 1], [], []>} : vector<32x64xbf16>, vector<64x128xbf16>, vector<32x128xf32> -> vector<32x128xf32>
    %275 = vector.broadcast %272 : vector<1x128xf32> to vector<32x128xf32>
    %276 = arith.addf %274, %275 : vector<32x128xf32>
    %c1_i32_117 = arith.constant 1 : i32
    %277 = tpu.dynamic_rotate %264 by %c1_i32_117 dim 0 : vector<32x64xf32>, i32 -> vector<32x64xf32>
    %278 = vector.broadcast %21 : vector<32x1xf32> to vector<32x64xf32>
    %279 = arith.mulf %277, %278 : vector<32x64xf32>
    %c31_i32_118 = arith.constant 31 : i32
    %280 = tpu.dynamic_rotate %264 by %c31_i32_118 dim 0 : vector<32x64xf32>, i32 -> vector<32x64xf32>
    %281 = vector.broadcast %25 : vector<32x1xf32> to vector<32x64xf32>
    %282 = arith.mulf %280, %281 : vector<32x64xf32>
    %283 = tpu.concatenate %279, %264, %282 in 1 : vector<32x64xf32>, vector<32x64xf32>, vector<32x64xf32> -> vector<32x192xf32>
    %284 = arith.truncf %283 : vector<32x192xf32> to vector<32x192xbf16>
    %cst_119 = arith.constant dense<0.000000e+00> : vector<32x128xf32>
    %285 = tpu.matmul %284, %265, %cst_119 {dimension_numbers = #tpu.dot_dimension_numbers<[1], [0], [0], [1], [0, 0, 1, 1], [], []>} : vector<32x192xbf16>, vector<192x128xbf16>, vector<32x128xf32> -> vector<32x128xf32>
    %cst_120 = arith.constant dense<0.000000e+00> : vector<128xf32>
    %286 = vector.multi_reduction <add>, %285, %cst_120 [0] : vector<32x128xf32> to vector<128xf32>
    %287 = vector.shape_cast %286 : vector<128xf32> to vector<1x128xf32>
    %cst_121 = arith.constant 3.125000e-02 : f32
    %288 = vector.broadcast %cst_121 : f32 to vector<1x128xf32>
    %289 = arith.mulf %287, %288 : vector<1x128xf32>
    %290 = vector.broadcast %289 : vector<1x128xf32> to vector<32x128xf32>
    %291 = arith.subf %285, %290 : vector<32x128xf32>
    %292 = vector.broadcast %289 : vector<1x128xf32> to vector<32x128xf32>
    %293 = arith.subf %285, %292 : vector<32x128xf32>
    %294 = arith.mulf %291, %293 : vector<32x128xf32>
    %cst_122 = arith.constant dense<0.000000e+00> : vector<128xf32>
    %295 = vector.multi_reduction <add>, %294, %cst_122 [0] : vector<32x128xf32> to vector<128xf32>
    %296 = vector.shape_cast %295 : vector<128xf32> to vector<1x128xf32>
    %cst_123 = arith.constant 3.125000e-02 : f32
    %297 = vector.broadcast %cst_123 : f32 to vector<1x128xf32>
    %298 = arith.mulf %296, %297 : vector<1x128xf32>
    %cst_124 = arith.constant 9.99999974E-6 : f32
    %299 = vector.broadcast %cst_124 : f32 to vector<1x128xf32>
    %300 = arith.addf %298, %299 : vector<1x128xf32>
    %301 = math.rsqrt %300 : vector<1x128xf32>
    %302 = arith.mulf %266, %301 : vector<1x128xf32>
    %303 = arith.mulf %289, %302 : vector<1x128xf32>
    %304 = arith.subf %267, %303 : vector<1x128xf32>
    %305 = vector.broadcast %302 : vector<1x128xf32> to vector<32x128xf32>
    %306 = arith.mulf %285, %305 : vector<32x128xf32>
    %307 = vector.broadcast %304 : vector<1x128xf32> to vector<32x128xf32>
    %308 = arith.addf %306, %307 : vector<32x128xf32>
    %cst_125 = arith.constant 0.000000e+00 : f32
    %309 = vector.broadcast %cst_125 : f32 to vector<32x128xf32>
    %310 = arith.maximumf %308, %309 : vector<32x128xf32>
    %c1_i32_126 = arith.constant 1 : i32
    %311 = tpu.dynamic_rotate %310 by %c1_i32_126 dim 0 : vector<32x128xf32>, i32 -> vector<32x128xf32>
    %312 = vector.broadcast %21 : vector<32x1xf32> to vector<32x128xf32>
    %313 = arith.mulf %311, %312 : vector<32x128xf32>
    %c31_i32_127 = arith.constant 31 : i32
    %314 = tpu.dynamic_rotate %310 by %c31_i32_127 dim 0 : vector<32x128xf32>, i32 -> vector<32x128xf32>
    %315 = vector.broadcast %25 : vector<32x1xf32> to vector<32x128xf32>
    %316 = arith.mulf %314, %315 : vector<32x128xf32>
    %317 = tpu.concatenate %313, %310, %316 in 1 : vector<32x128xf32>, vector<32x128xf32>, vector<32x128xf32> -> vector<32x384xf32>
    %318 = arith.truncf %317 : vector<32x384xf32> to vector<32x384xbf16>
    %cst_128 = arith.constant dense<0.000000e+00> : vector<32x128xf32>
    %319 = tpu.matmul %318, %268, %cst_128 {dimension_numbers = #tpu.dot_dimension_numbers<[1], [0], [0], [1], [0, 0, 1, 1], [], []>} : vector<32x384xbf16>, vector<384x128xbf16>, vector<32x128xf32> -> vector<32x128xf32>
    %cst_129 = arith.constant dense<0.000000e+00> : vector<128xf32>
    %320 = vector.multi_reduction <add>, %319, %cst_129 [0] : vector<32x128xf32> to vector<128xf32>
    %321 = vector.shape_cast %320 : vector<128xf32> to vector<1x128xf32>
    %cst_130 = arith.constant 3.125000e-02 : f32
    %322 = vector.broadcast %cst_130 : f32 to vector<1x128xf32>
    %323 = arith.mulf %321, %322 : vector<1x128xf32>
    %324 = vector.broadcast %323 : vector<1x128xf32> to vector<32x128xf32>
    %325 = arith.subf %319, %324 : vector<32x128xf32>
    %326 = vector.broadcast %323 : vector<1x128xf32> to vector<32x128xf32>
    %327 = arith.subf %319, %326 : vector<32x128xf32>
    %328 = arith.mulf %325, %327 : vector<32x128xf32>
    %cst_131 = arith.constant dense<0.000000e+00> : vector<128xf32>
    %329 = vector.multi_reduction <add>, %328, %cst_131 [0] : vector<32x128xf32> to vector<128xf32>
    %330 = vector.shape_cast %329 : vector<128xf32> to vector<1x128xf32>
    %cst_132 = arith.constant 3.125000e-02 : f32
    %331 = vector.broadcast %cst_132 : f32 to vector<1x128xf32>
    %332 = arith.mulf %330, %331 : vector<1x128xf32>
    %cst_133 = arith.constant 9.99999974E-6 : f32
    %333 = vector.broadcast %cst_133 : f32 to vector<1x128xf32>
    %334 = arith.addf %332, %333 : vector<1x128xf32>
    %335 = math.rsqrt %334 : vector<1x128xf32>
    %336 = arith.mulf %269, %335 : vector<1x128xf32>
    %337 = arith.mulf %323, %336 : vector<1x128xf32>
    %338 = arith.subf %270, %337 : vector<1x128xf32>
    %339 = vector.broadcast %336 : vector<1x128xf32> to vector<32x128xf32>
    %340 = arith.mulf %319, %339 : vector<32x128xf32>
    %341 = vector.broadcast %338 : vector<1x128xf32> to vector<32x128xf32>
    %342 = arith.addf %340, %341 : vector<32x128xf32>
    %343 = arith.addf %342, %276 : vector<32x128xf32>
    %cst_134 = arith.constant 0.000000e+00 : f32
    %344 = vector.broadcast %cst_134 : f32 to vector<32x128xf32>
    %345 = arith.maximumf %343, %344 : vector<32x128xf32>
    %c0_135 = arith.constant 0 : index
    %c0_136 = arith.constant 0 : index
    %346 = vector.load %arg29[%c0_135, %c0_136] : memref<384x128xbf16, #tpu.memory_space<vmem>>, vector<384x128xbf16>
    %c0_137 = arith.constant 0 : index
    %c0_138 = arith.constant 0 : index
    %347 = vector.load %arg30[%c0_137, %c0_138] : memref<1x128xf32, #tpu.memory_space<vmem>>, vector<1x128xf32>
    %c0_139 = arith.constant 0 : index
    %c0_140 = arith.constant 0 : index
    %348 = vector.load %arg31[%c0_139, %c0_140] : memref<1x128xf32, #tpu.memory_space<vmem>>, vector<1x128xf32>
    %c0_141 = arith.constant 0 : index
    %c0_142 = arith.constant 0 : index
    %349 = vector.load %arg32[%c0_141, %c0_142] : memref<384x128xbf16, #tpu.memory_space<vmem>>, vector<384x128xbf16>
    %c0_143 = arith.constant 0 : index
    %c0_144 = arith.constant 0 : index
    %350 = vector.load %arg33[%c0_143, %c0_144] : memref<1x128xf32, #tpu.memory_space<vmem>>, vector<1x128xf32>
    %c0_145 = arith.constant 0 : index
    %c0_146 = arith.constant 0 : index
    %351 = vector.load %arg34[%c0_145, %c0_146] : memref<1x128xf32, #tpu.memory_space<vmem>>, vector<1x128xf32>
    %c1_i32_147 = arith.constant 1 : i32
    %352 = tpu.dynamic_rotate %345 by %c1_i32_147 dim 0 : vector<32x128xf32>, i32 -> vector<32x128xf32>
    %353 = vector.broadcast %21 : vector<32x1xf32> to vector<32x128xf32>
    %354 = arith.mulf %352, %353 : vector<32x128xf32>
    %c31_i32_148 = arith.constant 31 : i32
    %355 = tpu.dynamic_rotate %345 by %c31_i32_148 dim 0 : vector<32x128xf32>, i32 -> vector<32x128xf32>
    %356 = vector.broadcast %25 : vector<32x1xf32> to vector<32x128xf32>
    %357 = arith.mulf %355, %356 : vector<32x128xf32>
    %358 = tpu.concatenate %354, %345, %357 in 1 : vector<32x128xf32>, vector<32x128xf32>, vector<32x128xf32> -> vector<32x384xf32>
    %359 = arith.truncf %358 : vector<32x384xf32> to vector<32x384xbf16>
    %cst_149 = arith.constant dense<0.000000e+00> : vector<32x128xf32>
    %360 = tpu.matmul %359, %346, %cst_149 {dimension_numbers = #tpu.dot_dimension_numbers<[1], [0], [0], [1], [0, 0, 1, 1], [], []>} : vector<32x384xbf16>, vector<384x128xbf16>, vector<32x128xf32> -> vector<32x128xf32>
    %cst_150 = arith.constant dense<0.000000e+00> : vector<128xf32>
    %361 = vector.multi_reduction <add>, %360, %cst_150 [0] : vector<32x128xf32> to vector<128xf32>
    %362 = vector.shape_cast %361 : vector<128xf32> to vector<1x128xf32>
    %cst_151 = arith.constant 3.125000e-02 : f32
    %363 = vector.broadcast %cst_151 : f32 to vector<1x128xf32>
    %364 = arith.mulf %362, %363 : vector<1x128xf32>
    %365 = vector.broadcast %364 : vector<1x128xf32> to vector<32x128xf32>
    %366 = arith.subf %360, %365 : vector<32x128xf32>
    %367 = vector.broadcast %364 : vector<1x128xf32> to vector<32x128xf32>
    %368 = arith.subf %360, %367 : vector<32x128xf32>
    %369 = arith.mulf %366, %368 : vector<32x128xf32>
    %cst_152 = arith.constant dense<0.000000e+00> : vector<128xf32>
    %370 = vector.multi_reduction <add>, %369, %cst_152 [0] : vector<32x128xf32> to vector<128xf32>
    %371 = vector.shape_cast %370 : vector<128xf32> to vector<1x128xf32>
    %cst_153 = arith.constant 3.125000e-02 : f32
    %372 = vector.broadcast %cst_153 : f32 to vector<1x128xf32>
    %373 = arith.mulf %371, %372 : vector<1x128xf32>
    %cst_154 = arith.constant 9.99999974E-6 : f32
    %374 = vector.broadcast %cst_154 : f32 to vector<1x128xf32>
    %375 = arith.addf %373, %374 : vector<1x128xf32>
    %376 = math.rsqrt %375 : vector<1x128xf32>
    %377 = arith.mulf %347, %376 : vector<1x128xf32>
    %378 = arith.mulf %364, %377 : vector<1x128xf32>
    %379 = arith.subf %348, %378 : vector<1x128xf32>
    %380 = vector.broadcast %377 : vector<1x128xf32> to vector<32x128xf32>
    %381 = arith.mulf %360, %380 : vector<32x128xf32>
    %382 = vector.broadcast %379 : vector<1x128xf32> to vector<32x128xf32>
    %383 = arith.addf %381, %382 : vector<32x128xf32>
    %cst_155 = arith.constant 0.000000e+00 : f32
    %384 = vector.broadcast %cst_155 : f32 to vector<32x128xf32>
    %385 = arith.maximumf %383, %384 : vector<32x128xf32>
    %c1_i32_156 = arith.constant 1 : i32
    %386 = tpu.dynamic_rotate %385 by %c1_i32_156 dim 0 : vector<32x128xf32>, i32 -> vector<32x128xf32>
    %387 = vector.broadcast %21 : vector<32x1xf32> to vector<32x128xf32>
    %388 = arith.mulf %386, %387 : vector<32x128xf32>
    %c31_i32_157 = arith.constant 31 : i32
    %389 = tpu.dynamic_rotate %385 by %c31_i32_157 dim 0 : vector<32x128xf32>, i32 -> vector<32x128xf32>
    %390 = vector.broadcast %25 : vector<32x1xf32> to vector<32x128xf32>
    %391 = arith.mulf %389, %390 : vector<32x128xf32>
    %392 = tpu.concatenate %388, %385, %391 in 1 : vector<32x128xf32>, vector<32x128xf32>, vector<32x128xf32> -> vector<32x384xf32>
    %393 = arith.truncf %392 : vector<32x384xf32> to vector<32x384xbf16>
    %cst_158 = arith.constant dense<0.000000e+00> : vector<32x128xf32>
    %394 = tpu.matmul %393, %349, %cst_158 {dimension_numbers = #tpu.dot_dimension_numbers<[1], [0], [0], [1], [0, 0, 1, 1], [], []>} : vector<32x384xbf16>, vector<384x128xbf16>, vector<32x128xf32> -> vector<32x128xf32>
    %cst_159 = arith.constant dense<0.000000e+00> : vector<128xf32>
    %395 = vector.multi_reduction <add>, %394, %cst_159 [0] : vector<32x128xf32> to vector<128xf32>
    %396 = vector.shape_cast %395 : vector<128xf32> to vector<1x128xf32>
    %cst_160 = arith.constant 3.125000e-02 : f32
    %397 = vector.broadcast %cst_160 : f32 to vector<1x128xf32>
    %398 = arith.mulf %396, %397 : vector<1x128xf32>
    %399 = vector.broadcast %398 : vector<1x128xf32> to vector<32x128xf32>
    %400 = arith.subf %394, %399 : vector<32x128xf32>
    %401 = vector.broadcast %398 : vector<1x128xf32> to vector<32x128xf32>
    %402 = arith.subf %394, %401 : vector<32x128xf32>
    %403 = arith.mulf %400, %402 : vector<32x128xf32>
    %cst_161 = arith.constant dense<0.000000e+00> : vector<128xf32>
    %404 = vector.multi_reduction <add>, %403, %cst_161 [0] : vector<32x128xf32> to vector<128xf32>
    %405 = vector.shape_cast %404 : vector<128xf32> to vector<1x128xf32>
    %cst_162 = arith.constant 3.125000e-02 : f32
    %406 = vector.broadcast %cst_162 : f32 to vector<1x128xf32>
    %407 = arith.mulf %405, %406 : vector<1x128xf32>
    %cst_163 = arith.constant 9.99999974E-6 : f32
    %408 = vector.broadcast %cst_163 : f32 to vector<1x128xf32>
    %409 = arith.addf %407, %408 : vector<1x128xf32>
    %410 = math.rsqrt %409 : vector<1x128xf32>
    %411 = arith.mulf %350, %410 : vector<1x128xf32>
    %412 = arith.mulf %398, %411 : vector<1x128xf32>
    %413 = arith.subf %351, %412 : vector<1x128xf32>
    %414 = vector.broadcast %411 : vector<1x128xf32> to vector<32x128xf32>
    %415 = arith.mulf %394, %414 : vector<32x128xf32>
    %416 = vector.broadcast %413 : vector<1x128xf32> to vector<32x128xf32>
    %417 = arith.addf %415, %416 : vector<32x128xf32>
    %418 = arith.addf %417, %345 : vector<32x128xf32>
    %cst_164 = arith.constant 0.000000e+00 : f32
    %419 = vector.broadcast %cst_164 : f32 to vector<32x128xf32>
    %420 = arith.maximumf %418, %419 : vector<32x128xf32>
    %c0_165 = arith.constant 0 : index
    %c0_166 = arith.constant 0 : index
    %421 = vector.load %arg35[%c0_165, %c0_166] : memref<128x256xbf16, #tpu.memory_space<vmem>>, vector<128x256xbf16>
    %c0_167 = arith.constant 0 : index
    %c0_168 = arith.constant 0 : index
    %422 = vector.load %arg36[%c0_167, %c0_168] : memref<1x256xf32, #tpu.memory_space<vmem>>, vector<1x256xf32>
    %c0_169 = arith.constant 0 : index
    %c0_170 = arith.constant 0 : index
    %423 = vector.load %arg37[%c0_169, %c0_170] : memref<256x128xbf16, #tpu.memory_space<vmem>>, vector<256x128xbf16>
    %c0_171 = arith.constant 0 : index
    %c0_172 = arith.constant 0 : index
    %424 = vector.load %arg38[%c0_171, %c0_172] : memref<1x128xf32, #tpu.memory_space<vmem>>, vector<1x128xf32>
    %425 = arith.truncf %420 : vector<32x128xf32> to vector<32x128xbf16>
    %cst_173 = arith.constant dense<0.000000e+00> : vector<32x256xf32>
    %426 = tpu.matmul %425, %421, %cst_173 {dimension_numbers = #tpu.dot_dimension_numbers<[1], [0], [0], [1], [0, 0, 1, 1], [], []>} : vector<32x128xbf16>, vector<128x256xbf16>, vector<32x256xf32> -> vector<32x256xf32>
    %427 = vector.broadcast %422 : vector<1x256xf32> to vector<32x256xf32>
    %428 = arith.addf %426, %427 : vector<32x256xf32>
    %cst_174 = arith.constant 0.000000e+00 : f32
    %429 = vector.broadcast %cst_174 : f32 to vector<32x256xf32>
    %430 = arith.maximumf %428, %429 : vector<32x256xf32>
    %431 = arith.truncf %430 : vector<32x256xf32> to vector<32x256xbf16>
    %cst_175 = arith.constant dense<0.000000e+00> : vector<32x128xf32>
    %432 = tpu.matmul %431, %423, %cst_175 {dimension_numbers = #tpu.dot_dimension_numbers<[1], [0], [0], [1], [0, 0, 1, 1], [], []>} : vector<32x256xbf16>, vector<256x128xbf16>, vector<32x128xf32> -> vector<32x128xf32>
    %433 = vector.broadcast %424 : vector<1x128xf32> to vector<32x128xf32>
    %434 = arith.addf %432, %433 : vector<32x128xf32>
    %cst_176 = arith.constant 0.000000e+00 : f32
    %435 = vector.broadcast %cst_176 : f32 to vector<32x128xf32>
    %436 = arith.subf %435, %434 : vector<32x128xf32>
    %437 = math.exp %436 : vector<32x128xf32>
    %cst_177 = arith.constant 1.000000e+00 : f32
    %438 = vector.broadcast %cst_177 : f32 to vector<32x128xf32>
    %439 = arith.addf %438, %437 : vector<32x128xf32>
    %cst_178 = arith.constant 1.000000e+00 : f32
    %440 = vector.broadcast %cst_178 : f32 to vector<32x128xf32>
    %441 = arith.divf %440, %439 : vector<32x128xf32>
    %c0_179 = arith.constant 0 : index
    %c0_180 = arith.constant 0 : index
    %442 = vector.load %arg39[%c0_179, %c0_180] : memref<32x128xf32, #tpu.memory_space<vmem>>, vector<32x128xf32>
    tpu.vector_store %arg39[%c0_179, %c0_180], %441 {strides = array<i32>} : memref<32x128xf32, #tpu.memory_space<vmem>>, vector<32x128xf32>,
    return
  }
}

</mosaic_0001>

<bundles_post_ra>
// kernel: tpu_custom_call.1
= control target key start
LH: loop header
LB: loop body
LE: loop exit
PB: predicated region body
PF: predicated region fallthrough
CT: control target
= control target key end

     0   :  { %s5446_s6 = smov 1   ;;  %s5447_s10 = smov 2   ;;  %s6555_s0 = inlined_call_operand.smem [shape: u32[40], index: -1, kind: input, shape index: {}] }
   0x1   :  { %s5520_s5 = sld [smem:[%s6555_s0]]   ;;  %s5448_s14 = smov 3  }
   0x2   :  { %s5525_s9 = sld [smem:[%s6555_s0 + %s5446_s6]]   ;;  %s5449_s18 = smov 4  }
   0x3   :  { %s5530_s13 = sld [smem:[%s6555_s0 + %s5447_s10]]   ;;  %s5450_s22 = smov 5  }
   0x4   :  { %s5535_s17 = sld [smem:[%s6555_s0 + %s5448_s14]]   ;;  %s5451_s26 = smov 6  }
   0x5   :  { %s5540_s21 = sld [smem:[%s6555_s0 + %s5449_s18]]   ;;  %s5452_s30 = smov 7  }
   0x6   :  { %s5545_s25 = sld [smem:[%s6555_s0 + %s5450_s22]]   ;;  %s5453_s4 = smov 8  }
   0x7   :  { %6573 = sst [smem:[#allocation47_spill]] %s5520_s5  ;;  %s5454_s10 = smov 9  }
   0x8   :  { %s5550_s29 = sld [smem:[%s6555_s0 + %s5451_s26]]   ;;  %s5455_s15 = smov 10  }
   0x9   :  { %s5555_s3 = sld [smem:[%s6555_s0 + %s5452_s30]]   ;;  %s5456_s20 = smov 11  }
   0xa   :  { %s5560_s8 = sld [smem:[%s6555_s0 + %s5453_s4]]   ;;  %s5457_s26 = smov 12  }
   0xb   :  { %6574 = sst [smem:[#allocation48_spill]] %s5540_s21  ;;  %s5458_s1 = smov 13  }
   0xc   :  { %s5565_s14 = sld [smem:[%s6555_s0 + %s5454_s10]]   ;;  %s5459_s7 = smov 14  }
   0xd   :  { %s5570_s19 = sld [smem:[%s6555_s0 + %s5455_s15]]   ;;  %s5460_s15 = smov 15  }
   0xe   :  { %s5575_s24 = sld [smem:[%s6555_s0 + %s5456_s20]]   ;;  %s5461_s22 = smov 16  }
   0xf   :  { %s5580_s30 = sld [smem:[%s6555_s0 + %s5457_s26]]   ;;  %s5462_s28 = smov 17  }
  0x10   :  { %s5585_s6 = sld [smem:[%s6555_s0 + %s5458_s1]]  }
  0x11   :  { %s5590_s12 = sld [smem:[%s6555_s0 + %s5459_s7]]   ;;  %s5463_s7 = smov 18  }
  0x12   :  { %6575 = sst [smem:[#allocation49_spill]] %s5565_s14 }
  0x13   :  { %s5595_s20 = sld [smem:[%s6555_s0 + %s5460_s15]]   ;;  %s5464_s15 = smov 19  }
  0x14   :  { %s5600_s27 = sld [smem:[%s6555_s0 + %s5461_s22]]   ;;  %s5465_s22 = smov 20  }
  0x15   :  { %6576 = sst [smem:[#allocation50_spill]] %s5580_s30 }
  0x16   :  { %s5605_s4 = sld [smem:[%s6555_s0 + %s5462_s28]]   ;;  %s5466_s28 = smov 21  }
  0x17   :  { %6577 = sst [smem:[#allocation51_spill]] %s5590_s12 }
  0x18   :  { %s5610_s30 = sld [smem:[%s6555_s0 + %s5463_s7]]   ;;  %s5467_s7 = smov 22  }
  0x19   :  { %6578 = sst [smem:[#allocation52_spill]] %s5595_s20 }
  0x1a   :  { %s5615_s20 = sld [smem:[%s6555_s0 + %s5464_s15]]   ;;  %s5468_s15 = smov 23  }
  0x1b   :  { %s5620_s14 = sld [smem:[%s6555_s0 + %s5465_s22]]   ;;  %s5469_s22 = smov 24  }
  0x1c   :  { %6579 = sst [smem:[#allocation53_spill]] %s5605_s4 }
  0x1d   :  { %s5625_s21 = sld [smem:[%s6555_s0 + %s5466_s28]]   ;;  %s5470_s28 = smov 25  }
  0x1e   :  { %6580 = sst [smem:[#allocation54_spill]] %s5610_s30 }
  0x1f   :  { %s5630_s30 = sld [smem:[%s6555_s0 + %s5467_s7]]   ;;  %s5471_s7 = smov 26  }
  0x20   :  { %s5635_s5 = sld [smem:[%s6555_s0 + %s5468_s15]]   ;;  %s5472_s15 = smov 27  }
  0x21   :  { %6581 = sst [smem:[#allocation55_spill]] %s5620_s14 }
  0x22   :  { %s5640_s14 = sld [smem:[%s6555_s0 + %s5469_s22]]   ;;  %s5473_s22 = smov 28  }
  0x23   :  { %s5645_s4 = sld [smem:[%s6555_s0 + %s5470_s28]]   ;;  %s5474_s28 = smov 29  }
  0x24   :  { %s5655_s12 = sld [smem:[%s6555_s0 + %s5472_s15]]   ;;  %s5476_s15 = smov 31  }
  0x25   :  { %6582 = sst [smem:[#allocation56_spill]] %s5630_s30 }
  0x26   :  { %s5650_s30 = sld [smem:[%s6555_s0 + %s5471_s7]]   ;;  %s5475_s7 = smov 30  }
  0x28   :  { %6583 = sst [smem:[#allocation57_spill]] %s5640_s14 }
  0x29   :  { %6584 = sst [smem:[#allocation58_spill]] %s5645_s4 }
  0x2a   :  { %6586 = sst [smem:[#allocation60_spill]] %s5655_s12 }
  0x2b   :  { %s5660_s14 = sld [smem:[%s6555_s0 + %s5473_s22]]   ;;  %s5477_s22 = smov 32  }
  0x2c   :  { %6585 = sst [smem:[#allocation59_spill]] %s5650_s30 }
  0x2d   :  { %s5665_s4 = sld [smem:[%s6555_s0 + %s5474_s28]]   ;;  %s5478_s28 = smov 33  }
  0x2e   :  { %s5670_s30 = sld [smem:[%s6555_s0 + %s5475_s7]]   ;;  %s5479_s7 = smov 34  }
  0x2f   :  { %s5675_s12 = sld [smem:[%s6555_s0 + %s5476_s15]]   ;;  %s5480_s15 = smov 35  }
  0x31   :  { %6587 = sst [smem:[#allocation61_spill]] %s5660_s14 }
  0x32   :  { %s5680_s14 = sld [smem:[%s6555_s0 + %s5477_s22]]   ;;  %s5481_s22 = smov 36  }
  0x33   :  { %6588 = sst [smem:[#allocation62_spill]] %s5665_s4 }
  0x34   :  { %6589 = sst [smem:[#allocation63_spill]] %s5670_s30 }
  0x35   :  { %6590 = sst [smem:[#allocation64_spill]] %s5675_s12 }
  0x36   :  { %s5685_s4 = sld [smem:[%s6555_s0 + %s5478_s28]]   ;;  %s5482_s28 = smov 37  }
  0x37   :  { %s5690_s30 = sld [smem:[%s6555_s0 + %s5479_s7]]   ;;  %s5483_s7 = smov 38  }
  0x38   :  { %6591 = sst [smem:[#allocation65_spill]] %s5680_s14 }
  0x39   :  { %s5695_s12 = sld [smem:[%s6555_s0 + %s5480_s15]]   ;;  %s5484_s15 = smov 39  }
  0x3a   :  { %s5700_s14 = sld [smem:[%s6555_s0 + %s5481_s22]]  }
  0x3c   :  { %6592 = sst [smem:[#allocation66_spill]] %s5685_s4 }
  0x3d   :  { %6593 = sst [smem:[#allocation67_spill]] %s5690_s30 }
  0x3e   :  { %s5705_s4 = sld [smem:[%s6555_s0 + %s5482_s28]]  }
  0x3f   :  { %6594 = sst [smem:[#allocation68_spill]] %s5695_s12 }
  0x40   :  { %s5710_s30 = sld [smem:[%s6555_s0 + %s5483_s7]]  }
  0x41   :  { %s5715_s12 = sld [smem:[%s6555_s0 + %s5484_s15]]  }
  0x42   :  { %84 = vsyncpa [#allocation3], 0 }
  0x43   :  { %85 = vsyncpa [#allocation6], 0 }
  0x44   :  { %86 = vsyncpa [#allocation9], 0 }
  0x45   :  { %87 = vsyncpa [#allocation12], 0 }
  0x46   :  { %88 = vsyncpa [#allocation15], 0 }
  0x47   :  { %89 = vsyncpa [#allocation18], 0 }
  0x48   :  { %90 = vsyncpa [#allocation21], 0 }
  0x49   :  { %91 = vsyncpa [#allocation24], 0 }
  0x4a   :  { %92 = vsyncpa [#allocation27], 0 }
  0x4b   :  { %93 = vsyncpa [#allocation30], 0 }
  0x4c   :  { %94 = vsyncpa [#allocation33], 0 }
  0x4d   :  { %95 = vsyncpa [#allocation4], 0  ;;  %s5485_s22 = smov [#allocation5]   ;;  %s5486_s26 = smov [#allocation8]  }
  0x4e   :  { %s116_s23 = sshll.u32 %s5485_s22, 4  ;;  %s138_s0 = sshll.u32 %s5486_s26, 4  ;;  %s117_s23 = int_to_ptr.vmem [resolvable:$true] %s116_s23  ;;  %s139_s0 = int_to_ptr.vmem [resolvable:$true] %s138_s0 }
  0x4f   :  { %s4960_s28 = scalar_lea.hbm %s5530_s13, 16 }
  0x50   :  { %p4961_p0 = scmp.ne.s32.totalorder %s5530_s13, %s4960_s28  ;;  %p4964_p1 = scmp.lt.u32.totalorder %s4960_s28, %s5530_s13 }
  0x52   :  { %p4966_p2 = pnand %p4964_p1, %p4961_p0 }
  0x54   :  { %4969 = shalt.err (!%p4966_p2)
}
  0x55   :  { %s4970_s1 = scalar_lea.vmem %s117_s23, 16  ;;  %s4974_s2 = scalar_lea.vmem %s117_s23, 32 }
  0x56   :  { %p4971_p3 = scmp.ne.s32.totalorder %s117_s23, %s4970_s1  ;;  %p4975_p4 = scmp.lt.s32.totalorder %s117_s23, %s117_s23 }
  0x57   :  { %p4976_p5 = scmp.lt.s32.totalorder %s4974_s2, %s4970_s1 }
  0x59   :  { %p4977_p6 = por %p4976_p5, %p4975_p4 }
  0x5b   :  { %p4978_p7 = pnand %p4977_p6, %p4971_p3 }
  0x5d   :  { %4981 = shalt.err (!%p4978_p7)
}
  0x5e   :  { %119 = dma.hbm_to_vmem [thread:$0]  %s5530_s13, 16, %s117_s23, [#allocation6]  }
  0x5f   :  { %s4982_s7 = scalar_lea.hbm %s5545_s25, 16 }
  0x60   :  { %p4983_p8 = scmp.ne.s32.totalorder %s5545_s25, %s4982_s7  ;;  %p4986_p9 = scmp.lt.u32.totalorder %s4982_s7, %s5545_s25 }
  0x62   :  { %p4988_p10 = pnand %p4986_p9, %p4983_p8 }
  0x64   :  { %4991 = shalt.err (!%p4988_p10)
}
  0x65   :  { %s4992_s10 = scalar_lea.vmem %s139_s0, 16  ;;  %s4996_s11 = scalar_lea.vmem %s139_s0, 32 }
  0x66   :  { %p4993_p11 = scmp.ne.s32.totalorder %s139_s0, %s4992_s10  ;;  %p4997_p12 = scmp.lt.s32.totalorder %s139_s0, %s139_s0 }
  0x67   :  { %p4998_p13 = scmp.lt.s32.totalorder %s4996_s11, %s4992_s10 }
  0x69   :  { %p4999_p0 = por %p4998_p13, %p4997_p12 }
  0x6b   :  { %p5000_p1 = pnand %p4999_p0, %p4993_p11 }
  0x6d   :  { %5003 = shalt.err (!%p5000_p1)
}
  0x6e   :  { %141 = dma.hbm_to_vmem [thread:$0]  %s5545_s25, 16, %s139_s0, [#allocation9]  }
  0x6f   :  { %s5487_s15 = smov [#allocation11]   ;;  %s5488_s16 = smov [#allocation14]  }
  0x70   :  { %s158_s13 = sshll.u32 %s5487_s15, 4  ;;  %s180_s18 = sshll.u32 %s5488_s16, 4  ;;  %s159_s13 = int_to_ptr.vmem [resolvable:$true] %s158_s13  ;;  %s181_s18 = int_to_ptr.vmem [resolvable:$true] %s180_s18 }
  0x71   :  { %s5004_s22 = scalar_lea.hbm %s5555_s3, 64 }
  0x72   :  { %p5005_p2 = scmp.ne.s32.totalorder %s5555_s3, %s5004_s22  ;;  %p5008_p3 = scmp.lt.u32.totalorder %s5004_s22, %s5555_s3 }
  0x74   :  { %p5010_p4 = pnand %p5008_p3, %p5005_p2 }
  0x76   :  { %5013 = shalt.err (!%p5010_p4)
}
  0x77   :  { %s5014_s23 = scalar_lea.vmem %s159_s13, 64  ;;  %p5019_p6 = scmp.lt.s32.totalorder %s159_s13, %s159_s13 }
  0x78   :  { %p5015_p5 = scmp.ne.s32.totalorder %s159_s13, %s5014_s23  ;;  %p5020_p7 = scmp.lt.s32.totalorder %s5014_s23, %s5014_s23 }
  0x7a   :  { %p5021_p8 = por %p5020_p7, %p5019_p6 }
  0x7c   :  { %p5022_p9 = pnand %p5021_p8, %p5015_p5 }
  0x7e   :  { %5025 = shalt.err (!%p5022_p9)
}
  0x7f   :  { %161 = dma.hbm_to_vmem [thread:$0]  %s5555_s3, 64, %s159_s13, [#allocation12]  }
  0x80   :  { %s5026_s25 = scalar_lea.hbm %s5570_s19, 16 }
  0x81   :  { %p5027_p10 = scmp.ne.s32.totalorder %s5570_s19, %s5026_s25  ;;  %p5030_p11 = scmp.lt.u32.totalorder %s5026_s25, %s5570_s19 }
  0x83   :  { %p5032_p12 = pnand %p5030_p11, %p5027_p10 }
  0x85   :  { %5035 = shalt.err (!%p5032_p12)
}
  0x86   :  { %s5036_s26 = scalar_lea.vmem %s181_s18, 16  ;;  %s5040_s0 = scalar_lea.vmem %s181_s18, 32 }
  0x87   :  { %p5037_p13 = scmp.ne.s32.totalorder %s181_s18, %s5036_s26  ;;  %p5041_p0 = scmp.lt.s32.totalorder %s181_s18, %s181_s18 }
  0x88   :  { %p5042_p1 = scmp.lt.s32.totalorder %s5040_s0, %s5036_s26 }
  0x8a   :  { %p5043_p2 = por %p5042_p1, %p5041_p0 }
  0x8c   :  { %p5044_p3 = pnand %p5043_p2, %p5037_p13 }
  0x8e   :  { %5047 = shalt.err (!%p5044_p3)
}
  0x8f   :  { %183 = dma.hbm_to_vmem [thread:$0]  %s5570_s19, 16, %s181_s18, [#allocation15]  }
  0x90   :  { %s5489_s28 = smov [#allocation17]   ;;  %s5490_s1 = smov [#allocation20]  }
  0x91   :  { %s202_s3 = sshll.u32 %s5489_s28, 4  ;;  %s224_s2 = sshll.u32 %s5490_s1, 4  ;;  %s203_s3 = int_to_ptr.vmem [resolvable:$true] %s202_s3  ;;  %s225_s2 = int_to_ptr.vmem [resolvable:$true] %s224_s2 }
  0x92   :  { %s5048_s7 = scalar_lea.hbm %s5585_s6, 16 }
  0x93   :  { %p5049_p4 = scmp.ne.s32.totalorder %s5585_s6, %s5048_s7  ;;  %p5052_p5 = scmp.lt.u32.totalorder %s5048_s7, %s5585_s6 }
  0x95   :  { %p5054_p6 = pnand %p5052_p5, %p5049_p4 }
  0x97   :  { %5057 = shalt.err (!%p5054_p6)
}
  0x98   :  { %s5058_s10 = scalar_lea.vmem %s203_s3, 16  ;;  %s5062_s11 = scalar_lea.vmem %s203_s3, 32 }
  0x99   :  { %p5059_p7 = scmp.ne.s32.totalorder %s203_s3, %s5058_s10  ;;  %p5063_p8 = scmp.lt.s32.totalorder %s203_s3, %s203_s3 }
  0x9a   :  { %p5064_p9 = scmp.lt.s32.totalorder %s5062_s11, %s5058_s10 }
  0x9c   :  { %p5065_p10 = por %p5064_p9, %p5063_p8 }
  0x9e   :  { %p5066_p11 = pnand %p5065_p10, %p5059_p7 }
  0xa0   :  { %5069 = shalt.err (!%p5066_p11)
}
  0xa1   :  { %205 = dma.hbm_to_vmem [thread:$0]  %s5585_s6, 16, %s203_s3, [#allocation18]  }
  0xa2   :  { %s5070_s19 = scalar_lea.hbm %s5600_s27, 16 }
  0xa3   :  { %p5071_p12 = scmp.ne.s32.totalorder %s5600_s27, %s5070_s19  ;;  %p5074_p13 = scmp.lt.u32.totalorder %s5070_s19, %s5600_s27 }
  0xa5   :  { %p5076_p0 = pnand %p5074_p13, %p5071_p12 }
  0xa7   :  { %5079 = shalt.err (!%p5076_p0)
}
  0xa8   :  { %s5080_s15 = scalar_lea.vmem %s225_s2, 16  ;;  %s5084_s13 = scalar_lea.vmem %s225_s2, 32 }
  0xa9   :  { %p5081_p1 = scmp.ne.s32.totalorder %s225_s2, %s5080_s15  ;;  %p5085_p2 = scmp.lt.s32.totalorder %s225_s2, %s225_s2 }
  0xaa   :  { %p5086_p3 = scmp.lt.s32.totalorder %s5084_s13, %s5080_s15 }
  0xac   :  { %p5087_p4 = por %p5086_p3, %p5085_p2 }
  0xae   :  { %p5088_p5 = pnand %p5087_p4, %p5081_p1 }
  0xb0   :  { %5091 = shalt.err (!%p5088_p5)
}
  0xb1   :  { %227 = dma.hbm_to_vmem [thread:$0]  %s5600_s27, 16, %s225_s2, [#allocation21]  }
  0xb2   :  { %s5491_s16 = smov [#allocation23]   ;;  %s5092_s18 = scalar_lea.hbm %s5615_s20, 16 }
  0xb3   :  { %s246_s6 = sshll.u32 %s5491_s16, 4  ;;  %p5093_p6 = scmp.ne.s32.totalorder %s5615_s20, %s5092_s18  ;;  %s247_s6 = int_to_ptr.vmem [resolvable:$true] %s246_s6 }
  0xb4   :  { %p5096_p7 = scmp.lt.u32.totalorder %s5092_s18, %s5615_s20 }
  0xb6   :  { %p5098_p8 = pnand %p5096_p7, %p5093_p6 }
  0xb8   :  { %5101 = shalt.err (!%p5098_p8)
}
  0xb9   :  { %s5102_s22 = scalar_lea.vmem %s247_s6, 16  ;;  %s5106_s23 = scalar_lea.vmem %s247_s6, 32 }
  0xba   :  { %p5103_p9 = scmp.ne.s32.totalorder %s247_s6, %s5102_s22  ;;  %p5107_p10 = scmp.lt.s32.totalorder %s247_s6, %s247_s6 }
  0xbb   :  { %p5108_p11 = scmp.lt.s32.totalorder %s5106_s23, %s5102_s22 }
  0xbd   :  { %p5109_p12 = por %p5108_p11, %p5107_p10 }
  0xbf   :  { %p5110_p13 = pnand %p5109_p12, %p5103_p9 }
  0xc1   :  { %5113 = shalt.err (!%p5110_p13)
}
  0xc2   :  { %249 = dma.hbm_to_vmem [thread:$0]  %s5615_s20, 16, %s247_s6, [#allocation24]  }
  0xc3   :  { %s5492_s27 = smov [#allocation26]   ;;  %s5493_s26 = smov [#allocation29]  }
  0xc4   :  { %s265_s25 = sshll.u32 %s5492_s27, 4  ;;  %s288_s0 = sshll.u32 %s5493_s26, 4  ;;  %s266_s25 = int_to_ptr.vmem [resolvable:$true] %s265_s25  ;;  %s289_s0 = int_to_ptr.vmem [resolvable:$true] %s288_s0 }
  0xc5   :  { %s5114_s28 = scalar_lea.hbm %s5625_s21, 1536 }
  0xc6   :  { %p5115_p0 = scmp.ne.s32.totalorder %s5625_s21, %s5114_s28  ;;  %p5118_p1 = scmp.lt.u32.totalorder %s5114_s28, %s5625_s21 }
  0xc8   :  { %p5120_p2 = pnand %p5118_p1, %p5115_p0 }
  0xca   :  { %5123 = shalt.err (!%p5120_p2)
}
  0xcb   :  { %s5124_s3 = scalar_lea.vmem %s266_s25, 1536  ;;  %p5129_p4 = scmp.lt.s32.totalorder %s266_s25, %s266_s25 }
  0xcc   :  { %p5125_p3 = scmp.ne.s32.totalorder %s266_s25, %s5124_s3  ;;  %p5130_p5 = scmp.lt.s32.totalorder %s5124_s3, %s5124_s3 }
  0xce   :  { %p5131_p6 = por %p5130_p5, %p5129_p4 }
  0xd0   :  { %p5132_p7 = pnand %p5131_p6, %p5125_p3 }
  0xd2   :  { %5135 = shalt.err (!%p5132_p7)
}
  0xd3   :  { %s5494_s1 = smov 64   ;;  %s5495_s20 = smov 4  }
  0xd4   :  { %271 = dma.hbm_to_vmem [thread:$0]  %s5625_s21, 1536, %s266_s25, [#allocation27], %s5494_s1, %s5494_s1, %s5495_s20  }
  0xd5   :  { %s5136_s2 = scalar_lea.hbm %s5635_s5, 16 }
  0xd6   :  { %p5137_p8 = scmp.ne.s32.totalorder %s5635_s5, %s5136_s2  ;;  %p5140_p9 = scmp.lt.u32.totalorder %s5136_s2, %s5635_s5 }
  0xd8   :  { %p5142_p10 = pnand %p5140_p9, %p5137_p8 }
  0xda   :  { %5145 = shalt.err (!%p5142_p10)
}
  0xdb   :  { %s5146_s7 = scalar_lea.vmem %s289_s0, 16  ;;  %s5150_s10 = scalar_lea.vmem %s289_s0, 32 }
  0xdc   :  { %p5147_p11 = scmp.ne.s32.totalorder %s289_s0, %s5146_s7  ;;  %p5151_p12 = scmp.lt.s32.totalorder %s289_s0, %s289_s0 }
  0xdd   :  { %p5152_p13 = scmp.lt.s32.totalorder %s5150_s10, %s5146_s7 }
  0xdf   :  { %p5153_p0 = por %p5152_p13, %p5151_p12 }
  0xe1   :  { %p5154_p1 = pnand %p5153_p0, %p5147_p11 }
  0xe3   :  { %5157 = shalt.err (!%p5154_p1)
}
  0xe4   :  { %291 = dma.hbm_to_vmem [thread:$0]  %s5635_s5, 16, %s289_s0, [#allocation30]  }
  0xe5   :  { %s5496_s21 = smov [#allocation2]   ;;  %s5497_s19 = smov [#allocation7]  }
  0xe6   :  { %s103_s11 = sshll.u32 %s5496_s21, 4  ;;  %s126_s15 = sshll.u32 %s5497_s19, 4  ;;  %s104_s11 = int_to_ptr.vmem [resolvable:$true] %s103_s11  ;;  %s127_s15 = int_to_ptr.vmem [resolvable:$true] %s126_s15 }
  0xe7   :  { %s5158_s13 = scalar_lea.hbm %s5525_s9, 192 }
  0xe8   :  { %p5159_p2 = scmp.ne.s32.totalorder %s5525_s9, %s5158_s13  ;;  %p5162_p3 = scmp.lt.u32.totalorder %s5158_s13, %s5525_s9 }
  0xea   :  { %p5164_p4 = pnand %p5162_p3, %p5159_p2 }
  0xec   :  { %5167 = shalt.err (!%p5164_p4)
}
  0xed   :  { %s5168_s16 = scalar_lea.vmem %s104_s11, 192  ;;  %p5173_p6 = scmp.lt.s32.totalorder %s104_s11, %s104_s11 }
  0xee   :  { %p5169_p5 = scmp.ne.s32.totalorder %s104_s11, %s5168_s16  ;;  %p5174_p7 = scmp.lt.s32.totalorder %s5168_s16, %s5168_s16 }
  0xf0   :  { %p5175_p8 = por %p5174_p7, %p5173_p6 }
  0xf2   :  { %p5176_p9 = pnand %p5175_p8, %p5169_p5 }
  0xf4   :  { %5179 = shalt.err (!%p5176_p9)
}
  0xf5   :  { %109 = dma.hbm_to_vmem [thread:$0]  %s5525_s9, 192, %s104_s11, [#allocation3], %s5494_s1, %s5494_s1, %s5495_s20  }
  0xf6   :  { %s5180_s5 = scalar_lea.hbm %s5535_s17, 16 }
  0xf7   :  { %p5181_p10 = scmp.ne.s32.totalorder %s5535_s17, %s5180_s5  ;;  %p5184_p11 = scmp.lt.u32.totalorder %s5180_s5, %s5535_s17 }
  0xf9   :  { %p5186_p12 = pnand %p5184_p11, %p5181_p10 }
  0xfb   :  { %5189 = shalt.err (!%p5186_p12)
}
  0xfc   :  { %s5190_s6 = scalar_lea.vmem %s127_s15, 16  ;;  %s5194_s18 = scalar_lea.vmem %s127_s15, 32 }
  0xfd   :  { %p5191_p13 = scmp.ne.s32.totalorder %s127_s15, %s5190_s6  ;;  %p5195_p0 = scmp.lt.s32.totalorder %s127_s15, %s127_s15 }
  0xfe   :  { %p5196_p1 = scmp.lt.s32.totalorder %s5194_s18, %s5190_s6 }
 0x100   :  { %p5197_p2 = por %p5196_p1, %p5195_p0 }
 0x102   :  { %p5198_p3 = pnand %p5197_p2, %p5191_p13 }
 0x104   :  { %5201 = shalt.err (!%p5198_p3)
}
 0x105   :  { %129 = dma.hbm_to_vmem [thread:$0]  %s5535_s17, 16, %s127_s15, [#allocation6]  }
 0x106   :  { %s5498_s9 = smov [#allocation10]   ;;  %s5499_s23 = smov [#allocation13]  }
 0x107   :  { %s148_s22 = sshll.u32 %s5498_s9, 4  ;;  %s168_s27 = sshll.u32 %s5499_s23, 4  ;;  %s149_s22 = int_to_ptr.vmem [resolvable:$true] %s148_s22  ;;  %s169_s27 = int_to_ptr.vmem [resolvable:$true] %s168_s27 }
 0x108   :  { %s5202_s25 = scalar_lea.hbm %s5550_s29, 16 }
 0x109   :  { %p5203_p4 = scmp.ne.s32.totalorder %s5550_s29, %s5202_s25  ;;  %p5206_p5 = scmp.lt.u32.totalorder %s5202_s25, %s5550_s29 }
 0x10b   :  { %p5208_p6 = pnand %p5206_p5, %p5203_p4 }
 0x10d   :  { %5211 = shalt.err (!%p5208_p6)
}
 0x10e   :  { %s5212_s26 = scalar_lea.vmem %s149_s22, 16  ;;  %s5216_s0 = scalar_lea.vmem %s149_s22, 32 }
 0x10f   :  { %p5213_p7 = scmp.ne.s32.totalorder %s149_s22, %s5212_s26  ;;  %p5217_p8 = scmp.lt.s32.totalorder %s149_s22, %s149_s22 }
 0x110   :  { %p5218_p9 = scmp.lt.s32.totalorder %s5216_s0, %s5212_s26 }
 0x112   :  { %p5219_p10 = por %p5218_p9, %p5217_p8 }
 0x114   :  { %p5220_p11 = pnand %p5219_p10, %p5213_p7 }
 0x116   :  { %5223 = shalt.err (!%p5220_p11)
}
 0x117   :  { %151 = dma.hbm_to_vmem [thread:$0]  %s5550_s29, 16, %s149_s22, [#allocation9]  }
 0x118   :  { %s5224_s17 = scalar_lea.hbm %s5560_s8, 16 }
 0x119   :  { %p5225_p12 = scmp.ne.s32.totalorder %s5560_s8, %s5224_s17  ;;  %p5228_p13 = scmp.lt.u32.totalorder %s5224_s17, %s5560_s8 }
 0x11b   :  { %p5230_p0 = pnand %p5228_p13, %p5225_p12 }
 0x11d   :  { %5233 = shalt.err (!%p5230_p0)
}
 0x11e   :  { %s5234_s28 = scalar_lea.vmem %s169_s27, 16  ;;  %s5238_s3 = scalar_lea.vmem %s169_s27, 32 }
 0x11f   :  { %p5235_p1 = scmp.ne.s32.totalorder %s169_s27, %s5234_s28  ;;  %p5239_p2 = scmp.lt.s32.totalorder %s169_s27, %s169_s27 }
 0x120   :  { %p5240_p3 = scmp.lt.s32.totalorder %s5238_s3, %s5234_s28 }
 0x122   :  { %p5241_p4 = por %p5240_p3, %p5239_p2 }
 0x124   :  { %p5242_p5 = pnand %p5241_p4, %p5235_p1 }
 0x126   :  { %5245 = shalt.err (!%p5242_p5)
}
 0x127   :  { %171 = dma.hbm_to_vmem [thread:$0]  %s5560_s8, 16, %s169_s27, [#allocation12]  }
 0x128   :  { %s5500_s29 = smov [#allocation16]   ;;  %s5501_s2 = smov [#allocation19]  }
 0x129   :  { %s190_s20 = sshll.u32 %s5500_s29, 4  ;;  %s212_s7 = sshll.u32 %s5501_s2, 4  ;;  %s191_s20 = int_to_ptr.vmem [resolvable:$true] %s190_s20  ;;  %s213_s7 = int_to_ptr.vmem [resolvable:$true] %s212_s7 }
 0x12a   :  { %s5246_s10 = scalar_lea.hbm %s5575_s24, 16 }
 0x12b   :  { %p5247_p6 = scmp.ne.s32.totalorder %s5575_s24, %s5246_s10  ;;  %p5250_p7 = scmp.lt.u32.totalorder %s5246_s10, %s5575_s24 }
 0x12d   :  { %p5252_p8 = pnand %p5250_p7, %p5247_p6 }
 0x12f   :  { %5255 = shalt.err (!%p5252_p8)
}
 0x130   :  { %s5256_s21 = scalar_lea.vmem %s191_s20, 16  ;;  %s5260_s11 = scalar_lea.vmem %s191_s20, 32 }
 0x131   :  { %p5257_p9 = scmp.ne.s32.totalorder %s191_s20, %s5256_s21  ;;  %p5261_p10 = scmp.lt.s32.totalorder %s191_s20, %s191_s20 }
 0x132   :  { %p5262_p11 = scmp.lt.s32.totalorder %s5260_s11, %s5256_s21 }
 0x134   :  { %p5263_p12 = por %p5262_p11, %p5261_p10 }
 0x136   :  { %p5264_p13 = pnand %p5263_p12, %p5257_p9 }
 0x138   :  { %5267 = shalt.err (!%p5264_p13)
}
 0x139   :  { %s6595_s8 = sld [smem:[#allocation51_spill]] }
 0x13a   :  { %193 = dma.hbm_to_vmem [thread:$0]  %s5575_s24, 16, %s191_s20, [#allocation15]  }
 0x13f   :  { %s5268_s19 = scalar_lea.hbm %s6595_s8, 16 }
 0x140   :  { %p5269_p0 = scmp.ne.s32.totalorder %s6595_s8, %s5268_s19  ;;  %p5272_p1 = scmp.lt.u32.totalorder %s5268_s19, %s6595_s8 }
 0x142   :  { %p5274_p2 = pnand %p5272_p1, %p5269_p0 }
 0x144   :  { %5277 = shalt.err (!%p5274_p2)
}
 0x145   :  { %s5278_s15 = scalar_lea.vmem %s213_s7, 16  ;;  %s5282_s13 = scalar_lea.vmem %s213_s7, 32 }
 0x146   :  { %p5279_p3 = scmp.ne.s32.totalorder %s213_s7, %s5278_s15  ;;  %p5283_p4 = scmp.lt.s32.totalorder %s213_s7, %s213_s7 }
 0x147   :  { %p5284_p5 = scmp.lt.s32.totalorder %s5282_s13, %s5278_s15 }
 0x149   :  { %p5285_p6 = por %p5284_p5, %p5283_p4 }
 0x14b   :  { %p5286_p7 = pnand %p5285_p6, %p5279_p3 }
 0x14d   :  { %5289 = shalt.err (!%p5286_p7)
}
 0x14e   :  { %s6596_s16 = sld [smem:[#allocation53_spill]]  ;;  %s5502_s24 = smov [#allocation22]  }
 0x14f   :  { %215 = dma.hbm_to_vmem [thread:$0]  %s6595_s8, 16, %s213_s7, [#allocation18]  }
 0x150   :  { %s234_s5 = sshll.u32 %s5502_s24, 4  ;;  %s5503_s6 = smov [#allocation25]   ;;  %s235_s5 = int_to_ptr.vmem [resolvable:$true] %s234_s5 }
 0x151   :  { %s256_s18 = sshll.u32 %s5503_s6, 4  ;;  %s257_s18 = int_to_ptr.vmem [resolvable:$true] %s256_s18 }
 0x154   :  { %s5290_s9 = scalar_lea.hbm %s6596_s16, 16 }
 0x155   :  { %p5291_p8 = scmp.ne.s32.totalorder %s6596_s16, %s5290_s9  ;;  %p5294_p9 = scmp.lt.u32.totalorder %s5290_s9, %s6596_s16 }
 0x157   :  { %p5296_p10 = pnand %p5294_p9, %p5291_p8 }
 0x159   :  { %5299 = shalt.err (!%p5296_p10)
}
 0x15a   :  { %s5300_s22 = scalar_lea.vmem %s235_s5, 16  ;;  %s5304_s23 = scalar_lea.vmem %s235_s5, 32 }
 0x15b   :  { %p5301_p11 = scmp.ne.s32.totalorder %s235_s5, %s5300_s22  ;;  %p5305_p12 = scmp.lt.s32.totalorder %s235_s5, %s235_s5 }
 0x15c   :  { %p5306_p13 = scmp.lt.s32.totalorder %s5304_s23, %s5300_s22 }
 0x15e   :  { %p5307_p0 = por %p5306_p13, %p5305_p12 }
 0x160   :  { %p5308_p1 = pnand %p5307_p0, %p5301_p11 }
 0x162   :  { %5311 = shalt.err (!%p5308_p1)
}
 0x163   :  { %s6597_s27 = sld [smem:[#allocation55_spill]] }
 0x164   :  { %237 = dma.hbm_to_vmem [thread:$0]  %s6596_s16, 16, %s235_s5, [#allocation21]  }
 0x169   :  { %s5312_s25 = scalar_lea.hbm %s6597_s27, 16 }
 0x16a   :  { %p5313_p2 = scmp.ne.s32.totalorder %s6597_s27, %s5312_s25  ;;  %p5316_p3 = scmp.lt.u32.totalorder %s5312_s25, %s6597_s27 }
 0x16c   :  { %p5318_p4 = pnand %p5316_p3, %p5313_p2 }
 0x16e   :  { %5321 = shalt.err (!%p5318_p4)
}
 0x16f   :  { %s5322_s26 = scalar_lea.vmem %s257_s18, 16  ;;  %s5326_s0 = scalar_lea.vmem %s257_s18, 32 }
 0x170   :  { %p5323_p5 = scmp.ne.s32.totalorder %s257_s18, %s5322_s26  ;;  %p5327_p6 = scmp.lt.s32.totalorder %s257_s18, %s257_s18 }
 0x171   :  { %p5328_p7 = scmp.lt.s32.totalorder %s5326_s0, %s5322_s26 }
 0x173   :  { %p5329_p8 = por %p5328_p7, %p5327_p6 }
 0x175   :  { %p5330_p9 = pnand %p5329_p8, %p5323_p5 }
 0x177   :  { %5333 = shalt.err (!%p5330_p9)
}
 0x178   :  { %s6598_s17 = sld [smem:[#allocation56_spill]]  ;;  %s5504_s28 = smov [#allocation28]  }
 0x179   :  { %259 = dma.hbm_to_vmem [thread:$0]  %s6597_s27, 16, %s257_s18, [#allocation24]  }
 0x17a   :  { %s278_s3 = sshll.u32 %s5504_s28, 4  ;;  %s5505_s29 = smov [#allocation31]   ;;  %s279_s3 = int_to_ptr.vmem [resolvable:$true] %s278_s3 }
 0x17b   :  { %s300_s20 = sshll.u32 %s5505_s29, 4  ;;  %s301_s20 = int_to_ptr.vmem [resolvable:$true] %s300_s20 }
 0x17e   :  { %s5334_s2 = scalar_lea.hbm %s6598_s17, 16 }
 0x17f   :  { %p5335_p10 = scmp.ne.s32.totalorder %s6598_s17, %s5334_s2  ;;  %p5338_p11 = scmp.lt.u32.totalorder %s5334_s2, %s6598_s17 }
 0x181   :  { %p5340_p12 = pnand %p5338_p11, %p5335_p10 }
 0x183   :  { %5343 = shalt.err (!%p5340_p12)
}
 0x184   :  { %s5344_s7 = scalar_lea.vmem %s279_s3, 16  ;;  %s5348_s10 = scalar_lea.vmem %s279_s3, 32 }
 0x185   :  { %p5345_p13 = scmp.ne.s32.totalorder %s279_s3, %s5344_s7  ;;  %p5349_p0 = scmp.lt.s32.totalorder %s279_s3, %s279_s3 }
 0x186   :  { %p5350_p1 = scmp.lt.s32.totalorder %s5348_s10, %s5344_s7 }
 0x188   :  { %p5351_p2 = por %p5350_p1, %p5349_p0 }
 0x18a   :  { %p5352_p3 = pnand %p5351_p2, %p5345_p13 }
 0x18c   :  { %5355 = shalt.err (!%p5352_p3)
}
 0x18d   :  { %s6599_s21 = sld [smem:[#allocation58_spill]] }
 0x18e   :  { %281 = dma.hbm_to_vmem [thread:$0]  %s6598_s17, 16, %s279_s3, [#allocation27]  }
 0x193   :  { %s5356_s11 = scalar_lea.hbm %s6599_s21, 16 }
 0x194   :  { %p5357_p4 = scmp.ne.s32.totalorder %s6599_s21, %s5356_s11  ;;  %p5360_p5 = scmp.lt.u32.totalorder %s5356_s11, %s6599_s21 }
 0x196   :  { %p5362_p6 = pnand %p5360_p5, %p5357_p4 }
 0x198   :  { %5365 = shalt.err (!%p5362_p6)
}
 0x199   :  { %s5366_s8 = scalar_lea.vmem %s301_s20, 16  ;;  %s5370_s19 = scalar_lea.vmem %s301_s20, 32 }
 0x19a   :  { %p5367_p7 = scmp.ne.s32.totalorder %s301_s20, %s5366_s8  ;;  %p5371_p8 = scmp.lt.s32.totalorder %s301_s20, %s301_s20 }
 0x19b   :  { %p5372_p9 = scmp.lt.s32.totalorder %s5370_s19, %s5366_s8 }
 0x19d   :  { %p5373_p10 = por %p5372_p9, %p5371_p8 }
 0x19f   :  { %p5374_p11 = pnand %p5373_p10, %p5367_p7 }
 0x1a1   :  { %5377 = shalt.err (!%p5374_p11)
}
 0x1a2   :  { %s6600_s15 = sld [smem:[#allocation59_spill]]  ;;  %s5506_s13 = smov [#allocation32]  }
 0x1a3   :  { %303 = dma.hbm_to_vmem [thread:$0]  %s6599_s21, 16, %s301_s20, [#allocation30]  }
 0x1a4   :  { %s310_s16 = sshll.u32 %s5506_s13, 4  ;;  %s311_s16 = int_to_ptr.vmem [resolvable:$true] %s310_s16 }
 0x1a8   :  { %s5378_s24 = scalar_lea.hbm %s6600_s15, 16 }
 0x1a9   :  { %p5379_p12 = scmp.ne.s32.totalorder %s6600_s15, %s5378_s24  ;;  %p5382_p13 = scmp.lt.u32.totalorder %s5378_s24, %s6600_s15 }
 0x1ab   :  { %p5384_p0 = pnand %p5382_p13, %p5379_p12 }
 0x1ad   :  { %5387 = shalt.err (!%p5384_p0)
}
 0x1ae   :  { %s5388_s5 = scalar_lea.vmem %s311_s16, 16  ;;  %s5392_s6 = scalar_lea.vmem %s311_s16, 32 }
 0x1af   :  { %p5389_p1 = scmp.ne.s32.totalorder %s311_s16, %s5388_s5  ;;  %p5393_p2 = scmp.lt.s32.totalorder %s311_s16, %s311_s16 }
 0x1b0   :  { %p5394_p3 = scmp.lt.s32.totalorder %s5392_s6, %s5388_s5 }
 0x1b2   :  { %p5395_p4 = por %p5394_p3, %p5393_p2 }
 0x1b4   :  { %p5396_p5 = pnand %p5395_p4, %p5389_p1 }
 0x1b6   :  { %5399 = shalt.err (!%p5396_p5)
}
 0x1b7   :  { %313 = dma.hbm_to_vmem [thread:$0]  %s6600_s15, 16, %s311_s16, [#allocation33]  }
 0x1b8   :  { %5422 = dma.done.wait [#allocation3], 192  }
 0x1b9   :  { %5423 = vsyncadd [#allocation3], 4294967104 }
 0x1ba   :  { %5424 = dma.done.wait [#allocation6], 32  }
 0x1bb   :  { %5425 = vsyncadd [#allocation6], 4294967264 }
 0x1bc   :  { %5426 = dma.done.wait [#allocation9], 32  }
 0x1bd   :  { %5427 = vsyncadd [#allocation9], 4294967264 }
 0x1be   :  { %5428 = dma.done.wait [#allocation12], 80  }
 0x1bf   :  { %5429 = vsyncadd [#allocation12], 4294967216 }
 0x1c0   :  { %5430 = dma.done.wait [#allocation15], 32  }
 0x1c1   :  { %5431 = vsyncadd [#allocation15], 4294967264 }
 0x1c2   :  { %5432 = dma.done.wait [#allocation18], 32  }
 0x1c3   :  { %5433 = vsyncadd [#allocation18], 4294967264 }
 0x1c4   :  { %5434 = dma.done.wait [#allocation21], 32  }
 0x1c5   :  { %5435 = vsyncadd [#allocation21], 4294967264 }
 0x1c6   :  { %5436 = dma.done.wait [#allocation24], 32  }
 0x1c7   :  { %5437 = vsyncadd [#allocation24], 4294967264 }
 0x1c8   :  { %5438 = dma.done.wait [#allocation27], 1552  }
 0x1c9   :  { %5439 = vsyncadd [#allocation27], 4294965744 }
 0x1ca   :  { %5440 = dma.done.wait [#allocation30], 32  }
 0x1cb   :  { %5441 = vsyncadd [#allocation30], 4294967264 }
 0x1cc   :  { %5442 = dma.done.wait [#allocation33], 16  }
 0x1cd   :  { %5443 = vsyncadd [#allocation33], 4294967280  ;;  %s6601_s18 = sld [smem:[#allocation47_spill]]  ;;  %v403_v0 = vlaneseq  ;;  %vm528_vm0 = vcmask 1043456   ;;  %vm521_vm1 = vcmask 64512   ;;  %v5507_v9 = vmov 0.0  }
 0x1ce   :  { %v481_v6 = vld [vmem:[#allocation2 + $0x4] sm:$0xf]  ;;  %v480_v22 = vld [vmem:[#allocation2] sm:$0xf]  ;;  %v482_v27 = vld [vmem:[#allocation2 + $0x8] sm:$0xf] }
 0x1cf   :  { %v5803_v1 = vshrl.u32 %v403_v0, 7  ;;  %4607 = vmatprep.subr.msk.bf16.mxu1 %vm528_vm0, %v481_v6  ;;  %v610_v12 = vsel %vm528_vm0, %v481_v6, 0  ;;  %v668_v26 = vsel %vm528_vm0, %v480_v22, 0  ;;  %v728_v28 = vsel %vm528_vm0, %v482_v27, 0  ;;  %s6602_s9 = sld [smem:[#allocation48_spill]]  ;;  %s6603_s22 = sld [smem:[#allocation49_spill]] }
 0x1d0   :  { %4493 = vmatpush3.bf16.msra.mxu1 %v610_v12  ;;  %v511_v50 = vld [vmem:[#allocation11] sm:$0xf]  ;;  %v5508_v53 = vmov 0   ;;  %vm783_vm8 = vcmask 523264   ;;  %s6604_s23 = sld [smem:[#allocation50_spill]]  ;;  %s6605_s27 = sld [smem:[#allocation52_spill]] }
 0x1d1   :  { %v412_v2 = vand.u32 15, %v5803_v1  ;;  %vm585_vm2 = vcmp.lt.s32.totalorder %v5803_v1, 1  ;;  %v406_v3 = vadd.s32 16, %v5803_v1  ;;  %vm598_vm4 = vcmp.lt.s32.totalorder %v5803_v1, 7  ;;  %4608 = vmatprep.subr.msk.bf16.mxu1 %vm528_vm0, %v480_v22  ;;  %4606 = vmatprep.subr.msk.bf16.mxu0 %vm528_vm0, %v511_v50  ;;  %s6606_s25 = sld [smem:[#allocation54_spill]]  ;;  %s6607_s26 = sld [smem:[#allocation60_spill]] }
 0x1d2   :  { %v405_v4 = vadd.s32 8, %v5803_v1  ;;  %v407_v5 = vadd.s32 24, %v5803_v1  ;;  %v530_v51 = vsel %vm528_vm0, %v511_v50, 0  ;;  %v484_v50 = vld [vmem:[#allocation7] sm:$0x1]  ;;  %s6609_s0 = sld [smem:[#allocation62_spill]] }
 0x1d3   :  { %vm456_vm3 = vcmp.ne.s32.totalorder %v412_v2, 0  ;;  %v399_v7 = vld [vmem:[%s6601_s18] sm:$0xff]  ;;  %v400_v8 = vld [vmem:[%s6601_s18 + $0x8] sm:$0xff]  ;;  %v426_v11 = vand.u32 15, %v406_v3  ;;  %v401_v16 = vld [vmem:[%s6601_s18 + $0x10] sm:$0xff]  ;;  %4487 = vmatpush3.bf16.msra.mxu0 %v530_v51  ;;  %s6610_s17 = sld [smem:[#allocation61_spill]] }
 0x1d4   :  { %v5813_v10 = vsel %vm456_vm3, 1.0, %v5507_v9  ;;  %v513_v13 = vpack.c.bf16 %v400_v8, %v399_v7  ;;  %v581_v14 = vrot.slane %v399_v7, 7  ;;  %v582_v15 = vrot.slane %v400_v8, 7  ;;  %v402_v17 = vld [vmem:[%s6601_s18 + $0x18] sm:$0xff]  ;;  %975 = vmatprep.subr.bf16.mxu0 %v5508_v53  ;;  %s6611_s28 = sld [smem:[#allocation65_spill]]  ;;  %s6612_s3 = sld [smem:[#allocation63_spill]] }
 0x1d5   :  { %v594_v18 = vrot.slane %v399_v7, 1  ;;  %v595_v19 = vrot.slane %v400_v8, 1  ;;  %v514_v20 = vpack.c.bf16 %v402_v17, %v401_v16  ;;  %v583_v21 = vrot.slane %v401_v16, 7  ;;  %v4736_v52 = vld [vmem:[%s6602_s9] sm:$0xff]   ;;  %v4737_v54 = vld [vmem:[%s6602_s9 + $0x8] sm:$0xff]   ;;  %v4738_v55 = vld [vmem:[%s6602_s9 + $0x10] sm:$0xff]  }
 0x1d6   :  { %4494 = vmatprep.mubr.msk.bf16.mxu1 %vm521_vm1, %v513_v13  ;;  %v584_v23 = vrot.slane %v402_v17, 7  ;;  %v596_v24 = vrot.slane %v401_v16, 1  ;;  %v597_v25 = vrot.slane %v402_v17, 1  ;;  %vm458_vm5 = vcmp.ne.s32.totalorder %v426_v11, 0  ;;  %4488 = vmatprep.mubr.msk.bf16.mxu0 %vm521_vm1, %v513_v13  ;;  %v4739_v56 = vld [vmem:[%s6602_s9 + $0x18] sm:$0xff]   ;;  %v4740_v57 = vld [vmem:[%s6602_s9 + $0x20] sm:$0xff]  }
 0x1d7   :  { %4495 = vmatmul.mubr.msk.bf16.vlgmr.msra.gmra.mrb[0].mxu1 %vm521_vm1, %v514_v20  ;;  %v588_v29 = vsel %vm585_vm2, %v581_v14, %v582_v15  ;;  %v5829_v31 = vsel %vm458_vm5, 1.0, %v5507_v9  ;;  %v419_v32 = vand.u32 15, %v405_v4  ;;  %v587_v34 = vsel %vm585_vm2, %v582_v15, %v583_v21  ;;  %4489 = vmatmul.mubr.msk.bf16.vlgmr.msra.gmra.mrb[0].mxu0 %vm521_vm1, %v514_v20  ;;  %v4741_v58 = vld [vmem:[%s6602_s9 + $0x28] sm:$0xff]   ;;  %v4742_v59 = vld [vmem:[%s6602_s9 + $0x30] sm:$0xff]   ;;  %v4743_v60 = vld [vmem:[%s6602_s9 + $0x38] sm:$0xff]   ;;  %s6613_s29 = sld [smem:[#allocation64_spill]] }
 0x1d8   :  { %v589_v30 = vsel %vm585_vm2, %v584_v23, %v581_v14  ;;  %4499 = vmatpush3.bf16.msra.mxu1 %v668_v26  ;;  %v600_v35 = vsel %vm598_vm4, %v595_v19, %v596_v24  ;;  %v433_v36 = vand.u32 15, %v407_v5  ;;  %v592_v39 = vmul.f32 %v5829_v31, %v587_v34  ;;  %976 = vmatpush1.bf16.msra.mxu0 %v4736_v52  ;;  %v4744_v61 = vld [vmem:[%s6602_s9 + $0x40] sm:$0xff]   ;;  %v4745_v62 = vld [vmem:[%s6602_s9 + $0x48] sm:$0xff]   ;;  %v4746_v63 = vld [vmem:[%s6602_s9 + $0x50] sm:$0xff]   ;;  %s6614_s20 = sld [smem:[#allocation68_spill]]  ;;  %s6615_s2 = sld [smem:[#allocation66_spill]] }
 0x1d9   :  { %v590_v33 = vmul.f32 %v5813_v10, %v589_v30  ;;  %4609 = vmatprep.subr.msk.bf16.mxu1 %vm528_vm0, %v482_v27  ;;  %vm469_vm6 = vcmp.ne.s32.totalorder %v419_v32, 15  ;;  %v586_v40 = vsel %vm585_vm2, %v583_v21, %v584_v23  ;;  %v601_v43 = vsel %vm598_vm4, %v594_v18, %v595_v19  ;;  %977 = vmatprep.subr.bf16.mxu0 %v5508_v53  ;;  %s6616_s7 = sld [smem:[#allocation67_spill]] }
 0x1da   :  { %v5837_v38 = vsel %vm469_vm6, 1.0, %v5507_v9  ;;  %vm471_vm7 = vcmp.ne.s32.totalorder %v433_v36, 15  ;;  %v608_v44 = vpack.c.bf16 %v586_v40, %v592_v39  ;;  %v602_v46 = vsel %vm598_vm4, %v597_v25, %v594_v18 }
 0x1db   :  { %v607_v37 = vpack.c.bf16 %v588_v29, %v590_v33  ;;  %v604_v41 = vmul.f32 %v5837_v38, %v600_v35  ;;  %v5844_v42 = vsel %vm471_vm7, 1.0, %v5507_v9  ;;  %v599_v48 = vsel %vm598_vm4, %v596_v24, %v597_v25 }
 0x1dc   :  { %v606_v47 = vmul.f32 %v5844_v42, %v602_v46  ;;  %978 = vmatpush1.bf16.msra.mxu0 %v4737_v54  ;;  %v483_v46 = vld [vmem:[#allocation5] sm:$0x1]  ;;  %v4747_v54 = vld [vmem:[%s6602_s9 + $0x58] sm:$0xff]  }
 0x1dd   :  { %4500 = vmatprep.mubr.msk.bf16.mxu1 %vm521_vm1, %v607_v37  ;;  %v719_v45 = vpack.c.bf16 %v604_v41, %v601_v43  ;;  %979 = vmatprep.subr.bf16.mxu0 %v5508_v53 }
 0x1de   :  { %v720_v49 = vpack.c.bf16 %v606_v47, %v599_v48  ;;  %v5892_v47 = vsub.s32 0, %v5803_v1 }
 0x1e0   :  { %980 = vmatpush1.bf16.msra.mxu0 %v4738_v55 }
 0x1e1   :  { %981 = vmatprep.subr.bf16.mxu0 %v5508_v53 }
 0x1e3   :  { %4501 = vmatmul.mubr.msk.bf16.vlgmr.msra.gmra.mrb[0].mxu1 %vm521_vm1, %v608_v44 }
 0x1e4   :  { %4505 = vmatpush3.bf16.msra.mxu1 %v728_v28  ;;  %4506 = vmatprep.mubr.msk.bf16.mxu1 %vm521_vm1, %v719_v45 }
 0x1e5   :  { %1271 = vmatprep.subr.bf16.mxu1 %v5508_v53  ;;  %982 = vmatpush1.bf16.msra.mxu0 %v4739_v56 }
 0x1e6   :  { %983 = vmatprep.subr.bf16.mxu0 %v5508_v53 }
 0x1e9   :  { %984 = vmatpush1.bf16.msra.mxu0 %v4740_v57 }
 0x1ea   :  { %985 = vmatprep.subr.bf16.mxu0 %v5508_v53 }
 0x1ed   :  { %986 = vmatpush1.bf16.msra.mxu0 %v4741_v58 }
 0x1ee   :  { %987 = vmatprep.subr.bf16.mxu0 %v5508_v53 }
 0x1ef   :  { %4507 = vmatmul.mubr.msk.bf16.vlgmr.msra.gmra.mrb[0].mxu1 %vm521_vm1, %v720_v49 }
 0x1f1   :  { %988 = vmatpush1.bf16.msra.mxu0 %v4742_v59 }
 0x1f2   :  { %989 = vmatprep.subr.bf16.mxu0 %v5508_v53 }
 0x1f5   :  { %990 = vmatpush1.bf16.msra.mxu0 %v4743_v60 }
 0x1f6   :  { %991 = vmatprep.subr.bf16.mxu0 %v5508_v53 }
 0x1f9   :  { %992 = vmatpush1.bf16.msra.mxu0 %v4744_v61 }
 0x1fa   :  { %993 = vmatprep.subr.bf16.mxu0 %v5508_v53 }
 0x1fd   :  { %994 = vmatpush1.bf16.msra.mxu0 %v4745_v62 }
 0x1fe   :  { %995 = vmatprep.subr.bf16.mxu0 %v5508_v53 }
 0x201   :  { %996 = vmatpush1.bf16.msra.mxu0 %v4746_v63 }
 0x202   :  { %997 = vmatprep.subr.bf16.mxu0 %v5508_v53 }
 0x205   :  { %998 = vmatpush1.bf16.msra.mxu0 %v4747_v54  ;;  %v4750_v54 = vld [vmem:[%s6603_s22 + $0x10] sm:$0xff]  }
 0x206   :  { %1511 = vmatprep.subr.bf16.mxu0 %v5508_v53 }
 0x2c2   :  { %v4508_v0 = vpop.f32.mrb[0].mxu1 }
 0x2c3   :  { %v764_v2 = vpop.f32.mrb[1].mxu1  ;;  %v787_v8 = vsel %vm783_vm8, %v4508_v0, 0.0 }
 0x2c4   :  { %v4509_v3 = vpop.f32.mrb[2].mxu1  ;;  %v784_v5 = vsel %vm783_vm8, %v764_v2, 0.0 }
 0x2c5   :  { %v767_v4 = vpop.f32.mrb[3].mxu1  ;;  %v789_v11 = vsel %vm783_vm8, %v4509_v3, 0.0 }
 0x2c6   :  { %v785_v6 = vsel %vm783_vm8, %v767_v4, 0.0 }
 0x2c7   :  { %v786_v7 = vadd.f32 %v785_v6, %v784_v5 }
 0x2c9   :  { %v788_v9 = vadd.f32 %v787_v8, %v786_v7 }
 0x2cb   :  { %v790_v12 = vadd.f32 %v789_v11, %v788_v9 }
 0x2cd   :  { %v791_v13 = vrot.slane %v790_v12, 4 }
 0x2cf   :  { %v792_v14 = vadd.f32 %v791_v13, %v790_v12 }
 0x2d1   :  { %v793_v15 = vrot.slane %v792_v14, 2 }
 0x2d3   :  { %v794_v16 = vadd.f32 %v793_v15, %v792_v14 }
 0x2d5   :  { %v795_v17 = vrot.slane %v794_v16, 1 }
 0x2d7   :  { %v796_v18 = vadd.f32 %v795_v17, %v794_v16 }
 0x2d9   :  { %v797_v19 = vmul.f32 0.03125, %v796_v18 }
 0x2db   :  { %v798_v20 = vsub.f32 %v764_v2, %v797_v19  ;;  %v799_v21 = vsub.f32 %v767_v4, %v797_v19  ;;  %v800_v22 = vsub.f32 %v4508_v0, %v797_v19  ;;  %v801_v23 = vsub.f32 %v4509_v3, %v797_v19 }
 0x2dd   :  { %v802_v24 = vmul.f32 %v798_v20, %v798_v20  ;;  %v803_v25 = vmul.f32 %v799_v21, %v799_v21  ;;  %v804_v26 = vmul.f32 %v800_v22, %v800_v22  ;;  %v805_v27 = vmul.f32 %v801_v23, %v801_v23 }
 0x2df   :  { %v806_v28 = vsel %vm783_vm8, %v802_v24, 0.0  ;;  %v807_v29 = vsel %vm783_vm8, %v803_v25, 0.0  ;;  %v809_v32 = vsel %vm783_vm8, %v804_v26, 0.0  ;;  %v811_v34 = vsel %vm783_vm8, %v805_v27, 0.0 }
 0x2e0   :  { %v808_v30 = vadd.f32 %v807_v29, %v806_v28  ;;  %v5919_v29 = vpop.f32.mrb[0].mxu0 }
 0x2e2   :  { %v810_v33 = vadd.f32 %v809_v32, %v808_v30  ;;  %v5921_v30 = vpop.f32.mrb[1].mxu0 }
 0x2e3   :  { %v5923_v32 = vpop.f32.mrb[2].mxu0 }
 0x2e4   :  { %v812_v35 = vadd.f32 %v811_v34, %v810_v33  ;;  %v5925_v33 = vpop.f32.mrb[3].mxu0 }
 0x2e6   :  { %v813_v36 = vrot.slane %v812_v35, 4 }
 0x2e8   :  { %v814_v37 = vadd.f32 %v813_v36, %v812_v35 }
 0x2ea   :  { %v815_v39 = vrot.slane %v814_v37, 2 }
 0x2ec   :  { %v816_v40 = vadd.f32 %v815_v39, %v814_v37 }
 0x2ee   :  { %v817_v41 = vrot.slane %v816_v40, 1 }
 0x2f0   :  { %v818_v43 = vadd.f32 %v817_v41, %v816_v40 }
 0x2f2   :  { %v819_v44 = vmul.f32 0.03125, %v818_v43 }
 0x2f4   :  { %v820_v45 = vadd.f32 1e-05, %v819_v44 }
 0x2f6   :  { %4924 = vrsqrt.f32 %v820_v45 }
 0x300   :  { %v4925_v48 = vpop.eup %4924 }
 0x301   :  { %v822_v49 = vmul.f32 %v4925_v48, %v483_v46 }
 0x303   :  { %v823_v51 = vmul.f32 %v822_v49, %v797_v19  ;;  %v829_v52 = vrot.slane %v822_v49, %v5892_v47 }
 0x305   :  { %v832_v55 = vmul.f32 %v829_v52, %v767_v4  ;;  %v824_v56 = vsub.f32 %v484_v50, %v823_v51  ;;  %v831_v57 = vmul.f32 %v829_v52, %v764_v2  ;;  %v833_v58 = vmul.f32 %v4508_v0, %v829_v52  ;;  %v4748_v51 = vld [vmem:[%s6603_s22] sm:$0xff]  }
 0x306   :  { %v834_v59 = vmul.f32 %v4509_v3, %v829_v52  ;;  %1272 = vmatpush1.bf16.msra.mxu1 %v4748_v51  ;;  %v4749_v52 = vld [vmem:[%s6603_s22 + $0x8] sm:$0xff]  }
 0x307   :  { %v839_v60 = vrot.slane %v824_v56, %v5892_v47  ;;  %1273 = vmatprep.subr.bf16.mxu1 %v5508_v53  ;;  %v4752_v56 = vld [vmem:[%s6603_s22 + $0x20] sm:$0xff]  }
 0x309   :  { %v841_v61 = vadd.f32 %v839_v60, %v831_v57  ;;  %v842_v62 = vadd.f32 %v839_v60, %v832_v55  ;;  %v843_v63 = vadd.f32 %v839_v60, %v833_v58  ;;  %v844_v5 = vadd.f32 %v839_v60, %v834_v59  ;;  %v4751_v55 = vld [vmem:[%s6603_s22 + $0x18] sm:$0xff]   ;;  %v4753_v57 = vld [vmem:[%s6603_s22 + $0x28] sm:$0xff]   ;;  %v4754_v58 = vld [vmem:[%s6603_s22 + $0x30] sm:$0xff]  }
 0x30a   :  { %1274 = vmatpush1.bf16.msra.mxu1 %v4749_v52  ;;  %v4755_v59 = vld [vmem:[%s6603_s22 + $0x38] sm:$0xff]   ;;  %v4756_v60 = vld [vmem:[%s6603_s22 + $0x40] sm:$0xff]  }
 0x30b   :  { %v845_v6 = vmax.f32 %v841_v61, 0.0  ;;  %v846_v7 = vmax.f32 %v842_v62, 0.0  ;;  %v847_v8 = vmax.f32 %v843_v63, 0.0  ;;  %v848_v9 = vmax.f32 %v844_v5, 0.0  ;;  %1275 = vmatprep.subr.bf16.mxu1 %v5508_v53  ;;  %v4757_v61 = vld [vmem:[%s6603_s22 + $0x48] sm:$0xff]   ;;  %v4758_v62 = vld [vmem:[%s6603_s22 + $0x50] sm:$0xff]  }
 0x30d   :  { %v850_v11 = vrot.slane %v846_v7, 7  ;;  %v862_v12 = vrot.slane %v846_v7, 1  ;;  %v4676_v4 = vpack.i.bf16 %v846_v7, %v845_v6  ;;  %v849_v13 = vrot.slane %v845_v6, 7 }
 0x30e   :  { %v861_v2 = vrot.slane %v845_v6, 1  ;;  %v852_v0 = vrot.slane %v848_v9, 7  ;;  %v864_v3 = vrot.slane %v848_v9, 1  ;;  %v4681_v14 = vpack.i.bf16 %v848_v9, %v847_v8  ;;  %1276 = vmatpush1.bf16.msra.mxu1 %v4750_v54 }
 0x30f   :  { %4677 = vrot.lane.b32.xlu0 %v4676_v4, %s5494_s1  ;;  %v851_v15 = vrot.slane %v847_v8, 7  ;;  %v863_v16 = vrot.slane %v847_v8, 1  ;;  %v855_v17 = vsel %vm585_vm2, %v849_v13, %v850_v11  ;;  %1277 = vmatprep.subr.bf16.mxu1 %v5508_v53 }
 0x310   :  { %v867_v18 = vsel %vm598_vm4, %v861_v2, %v862_v12  ;;  %v856_v19 = vsel %vm585_vm2, %v852_v0, %v849_v13  ;;  %v868_v20 = vsel %vm598_vm4, %v864_v3, %v861_v2 }
 0x311   :  { %v866_v21 = vsel %vm598_vm4, %v862_v12, %v863_v16  ;;  %v865_v22 = vsel %vm598_vm4, %v863_v16, %v864_v3  ;;  %v872_v23 = vmul.f32 %v5844_v42, %v868_v20  ;;  %v853_v25 = vsel %vm585_vm2, %v851_v15, %v852_v0 }
 0x312   :  { %v870_v24 = vmul.f32 %v5837_v38, %v866_v21  ;;  %v854_v26 = vsel %vm585_vm2, %v850_v11, %v851_v15  ;;  %v857_v37 = vmul.f32 %v5813_v10, %v856_v19  ;;  %1278 = vmatpush1.bf16.msra.mxu1 %v4751_v55  ;;  %v509_v55 = vld [vmem:[#allocation8] sm:$0x1] }
 0x313   :  { %4682 = vrot.lane.b32.xlu0 %v4681_v14, %s5494_s1  ;;  %v896_v27 = vpack.c.bf16 %v872_v23, %v865_v22  ;;  %v859_v46 = vmul.f32 %v5829_v31, %v854_v26  ;;  %1279 = vmatprep.subr.bf16.mxu1 %v5508_v53 }
 0x314   :  { %v894_v28 = vpack.c.bf16 %v870_v24, %v867_v18 }
 0x316   :  { %4142 = vmatprep.mubr.msk.bf16.mxu0 %vm783_vm8, %v894_v28  ;;  %1280 = vmatpush1.bf16.msra.mxu1 %v4752_v56 }
 0x317   :  { %1281 = vmatprep.subr.bf16.mxu1 %v5508_v53 }
 0x31a   :  { %1282 = vmatpush1.bf16.msra.mxu1 %v4753_v57 }
 0x31b   :  { %1283 = vmatprep.subr.bf16.mxu1 %v5508_v53 }
 0x31e   :  { %1284 = vmatpush1.bf16.msra.mxu1 %v4754_v58  ;;  %v510_v58 = vld [vmem:[#allocation10] sm:$0x1] }
 0x31f   :  { %1285 = vmatprep.subr.bf16.mxu1 %v5508_v53 }
 0x322   :  { %1286 = vmatpush1.bf16.msra.mxu1 %v4755_v59 }
 0x323   :  { %1287 = vmatprep.subr.bf16.mxu1 %v5508_v53 }
 0x326   :  { %1288 = vmatpush1.bf16.msra.mxu1 %v4756_v60 }
 0x327   :  { %1289 = vmatprep.subr.bf16.mxu1 %v5508_v53 }
 0x32a   :  { %1290 = vmatpush1.bf16.msra.mxu1 %v4757_v61  ;;  %v4121_v61 = vld [vmem:[#allocation13] ss:$0 sm:$0xff] }
 0x32b   :  { %1291 = vmatprep.subr.bf16.mxu1 %v5508_v53 }
 0x32e   :  { %1292 = vmatpush1.bf16.msra.mxu1 %v4758_v62 }
 0x32f   :  { %1293 = vmatprep.subr.bf16.mxu1 %v5508_v53 }
 0x381   :  { %v4678_v34 = vpop.permute.xlu0 %4677 }
 0x382   :  { %v4680_v35 = vunpack.i.h.bf16 %v4678_v34  ;;  %v4679_v36 = vunpack.i.l.bf16 %v4678_v34 }
 0x384   :  { %v889_v39 = vsel %vm783_vm8, %v857_v37, %v4679_v36  ;;  %v890_v40 = vsel %vm783_vm8, %v855_v17, %v4680_v35 }
 0x385   :  { %v893_v41 = vpack.c.bf16 %v890_v40, %v889_v39  ;;  %v4683_v43 = vpop.permute.xlu0 %4682 }
 0x386   :  { %v4685_v44 = vunpack.i.h.bf16 %v4683_v43  ;;  %v4684_v45 = vunpack.i.l.bf16 %v4683_v43 }
 0x387   :  { %1008 = vmatmul.mubr.bf16.vlgmr.msra.gmra.mrb[4].mxu0 %v893_v41 }
 0x388   :  { %4143 = vmatprep.mubr.msk.bf16.mxu0 %vm783_vm8, %v896_v27  ;;  %v891_v48 = vsel %vm783_vm8, %v859_v46, %v4684_v45  ;;  %v892_v49 = vsel %vm783_vm8, %v853_v25, %v4685_v44 }
 0x389   :  { %v895_v50 = vpack.c.bf16 %v892_v49, %v891_v48 }
 0x38f   :  { %1016 = vmatmul.mubr.bf16.gmra.mrb[8].mxu0 %v895_v50 }
 0x45a   :  { %v1009_v63 = vpop.f32.mrb[4].mxu0 }
 0x45b   :  { %v1011_v5 = vpop.f32.mrb[5].mxu0  ;;  %v1024_v7 = vsel %vm783_vm8, %v1009_v63, 0.0 }
 0x45c   :  { %v1012_v6 = vpop.f32.mrb[6].mxu0 }
 0x45d   :  { %v1025_v8 = vsel %vm783_vm8, %v1012_v6, 0.0  ;;  %v1014_v9 = vpop.f32.mrb[7].mxu0 }
 0x45e   :  { %v1026_v11 = vadd.f32 %v1025_v8, %v1024_v7 }
 0x462   :  { %v1017_v12 = vpop.f32.mrb[8].mxu0 }
 0x463   :  { %v1027_v4 = vsel %vm783_vm8, %v1017_v12, 0.0  ;;  %v1019_v13 = vpop.f32.mrb[9].mxu0 }
 0x464   :  { %v1028_v2 = vadd.f32 %v1027_v4, %v1026_v11  ;;  %v1020_v0 = vpop.f32.mrb[10].mxu0  ;;  %v4759_v4 = vld [vmem:[%s6603_s22 + $0x58] sm:$0xff]   ;;  %v575_v13 = vadd.f32 %v5919_v29, %v4121_v61 }
 0x465   :  { %v1029_v3 = vsel %vm783_vm8, %v1020_v0, 0.0  ;;  %v1022_v14 = vpop.f32.mrb[11].mxu0  ;;  %1294 = vmatpush1.bf16.msra.mxu1 %v4759_v4  ;;  %v4764_v4 = vld [vmem:[%s6604_s23 + $0x20] sm:$0xff]  }
 0x466   :  { %v1030_v15 = vadd.f32 %v1029_v3, %v1028_v2  ;;  %v567_v2 = vadd.f32 %v4121_v61, %v5921_v30  ;;  %v578_v3 = vadd.f32 %v5923_v32, %v4121_v61  ;;  %v570_v14 = vadd.f32 %v4121_v61, %v5925_v33  ;;  %1807 = vmatprep.subr.bf16.mxu1 %v5508_v53 }
 0x468   :  { %v1031_v16 = vrot.slane %v1030_v15, 4 }
 0x46a   :  { %v1032_v17 = vadd.f32 %v1031_v16, %v1030_v15 }
 0x46c   :  { %v1033_v18 = vrot.slane %v1032_v17, 2 }
 0x46e   :  { %v1034_v19 = vadd.f32 %v1033_v18, %v1032_v17 }
 0x470   :  { %v1035_v20 = vrot.slane %v1034_v19, 1 }
 0x472   :  { %v1036_v21 = vadd.f32 %v1035_v20, %v1034_v19 }
 0x474   :  { %v1037_v22 = vmul.f32 0.03125, %v1036_v21 }
 0x476   :  { %v1038_v23 = vsub.f32 %v1009_v63, %v1037_v22  ;;  %v1039_v24 = vsub.f32 %v1012_v6, %v1037_v22  ;;  %v1040_v25 = vsub.f32 %v1017_v12, %v1037_v22  ;;  %v1041_v26 = vsub.f32 %v1020_v0, %v1037_v22 }
 0x478   :  { %v1042_v27 = vmul.f32 %v1038_v23, %v1038_v23  ;;  %v1043_v28 = vmul.f32 %v1039_v24, %v1039_v24  ;;  %v1044_v34 = vmul.f32 %v1040_v25, %v1040_v25  ;;  %v1045_v35 = vmul.f32 %v1041_v26, %v1041_v26 }
 0x47a   :  { %v1046_v36 = vsel %vm783_vm8, %v1042_v27, 0.0  ;;  %v1047_v37 = vsel %vm783_vm8, %v1043_v28, 0.0  ;;  %v1049_v40 = vsel %vm783_vm8, %v1044_v34, 0.0  ;;  %v1051_v43 = vsel %vm783_vm8, %v1045_v35, 0.0 }
 0x47b   :  { %v1048_v39 = vadd.f32 %v1047_v37, %v1046_v36 }
 0x47d   :  { %v1050_v41 = vadd.f32 %v1049_v40, %v1048_v39 }
 0x47f   :  { %v1052_v44 = vadd.f32 %v1051_v43, %v1050_v41 }
 0x481   :  { %v1053_v45 = vrot.slane %v1052_v44, 4 }
 0x483   :  { %v1054_v46 = vadd.f32 %v1053_v45, %v1052_v44 }
 0x485   :  { %v1055_v48 = vrot.slane %v1054_v46, 2 }
 0x487   :  { %v1056_v49 = vadd.f32 %v1055_v48, %v1054_v46 }
 0x489   :  { %v1057_v50 = vrot.slane %v1056_v49, 1 }
 0x48b   :  { %v1058_v51 = vadd.f32 %v1057_v50, %v1056_v49 }
 0x48d   :  { %v1059_v52 = vmul.f32 0.03125, %v1058_v51 }
 0x48f   :  { %v1060_v54 = vadd.f32 1e-05, %v1059_v52 }
 0x491   :  { %4926 = vrsqrt.f32 %v1060_v54 }
 0x49b   :  { %v4927_v56 = vpop.eup %4926 }
 0x49c   :  { %v1062_v57 = vmul.f32 %v4927_v56, %v509_v55 }
 0x49e   :  { %v1063_v59 = vmul.f32 %v1062_v57, %v1037_v22  ;;  %v1069_v60 = vrot.slane %v1062_v57, %v5892_v47 }
 0x4a0   :  { %v1064_v62 = vsub.f32 %v510_v58, %v1063_v59  ;;  %v1074_v5 = vmul.f32 %v1069_v60, %v1020_v0  ;;  %v1071_v7 = vmul.f32 %v1069_v60, %v1009_v63  ;;  %v1072_v8 = vmul.f32 %v1069_v60, %v1012_v6 }
 0x4a1   :  { %v1073_v9 = vmul.f32 %v1069_v60, %v1017_v12 }
 0x4a2   :  { %v1079_v11 = vrot.slane %v1064_v62, %v5892_v47 }
 0x4a4   :  { %v1084_v15 = vadd.f32 %v1079_v11, %v1074_v5  ;;  %v1081_v16 = vadd.f32 %v1079_v11, %v1071_v7  ;;  %v1082_v17 = vadd.f32 %v1079_v11, %v1072_v8  ;;  %v1083_v18 = vadd.f32 %v1079_v11, %v1073_v9  ;;  %v4760_v7 = vld [vmem:[%s6604_s23] sm:$0xff]   ;;  %v4761_v8 = vld [vmem:[%s6604_s23 + $0x8] sm:$0xff]   ;;  %v4762_v9 = vld [vmem:[%s6604_s23 + $0x10] sm:$0xff]  }
 0x4a5   :  { %1512 = vmatpush1.bf16.msra.mxu0 %v4760_v7  ;;  %v4763_v11 = vld [vmem:[%s6604_s23 + $0x18] sm:$0xff]  }
 0x4a6   :  { %v1088_v63 = vadd.f32 %v1084_v15, %v578_v3  ;;  %v1085_v6 = vadd.f32 %v1081_v16, %v567_v2  ;;  %v1086_v12 = vadd.f32 %v1082_v17, %v570_v14  ;;  %v1087_v0 = vadd.f32 %v1083_v18, %v575_v13  ;;  %1513 = vmatprep.subr.bf16.mxu0 %v5508_v53  ;;  %v4765_v13 = vld [vmem:[%s6604_s23 + $0x28] sm:$0xff]   ;;  %v4766_v2 = vld [vmem:[%s6604_s23 + $0x30] sm:$0xff]   ;;  %v4767_v3 = vld [vmem:[%s6604_s23 + $0x38] sm:$0xff]  }
 0x4a7   :  { %v4768_v14 = vld [vmem:[%s6604_s23 + $0x40] sm:$0xff]   ;;  %v4769_v15 = vld [vmem:[%s6604_s23 + $0x48] sm:$0xff]   ;;  %v4770_v16 = vld [vmem:[%s6604_s23 + $0x50] sm:$0xff]  }
 0x4a8   :  { %v5972_v19 = vmax.f32 %v1088_v63, 0.0  ;;  %v5974_v29 = vmax.f32 %v1085_v6, 0.0  ;;  %v5976_v30 = vmax.f32 %v1086_v12, 0.0  ;;  %v5978_v32 = vmax.f32 %v1087_v0, 0.0 }
 0x4a9   :  { %1514 = vmatpush1.bf16.msra.mxu0 %v4761_v8 }
 0x4aa   :  { %v4686_v33 = vpack.i.bf16 %v5976_v30, %v5974_v29  ;;  %v1157_v20 = vrot.slane %v5974_v29, 1  ;;  %v1158_v21 = vrot.slane %v5976_v30, 1  ;;  %v1159_v22 = vrot.slane %v5978_v32, 1  ;;  %1515 = vmatprep.subr.bf16.mxu0 %v5508_v53 }
 0x4ab   :  { %v1160_v23 = vrot.slane %v5972_v19, 1  ;;  %v4691_v25 = vpack.i.bf16 %v5972_v19, %v5978_v32  ;;  %v1148_v39 = vrot.slane %v5972_v19, 7  ;;  %v1145_v40 = vrot.slane %v5974_v29, 7 }
 0x4ac   :  { %4687 = vrot.lane.b32.xlu1 %v4686_v33, %s5494_s1  ;;  %v1162_v24 = vsel %vm598_vm4, %v1158_v21, %v1159_v22  ;;  %v1163_v28 = vsel %vm598_vm4, %v1157_v20, %v1158_v21  ;;  %v1146_v41 = vrot.slane %v5976_v30, 7  ;;  %v1147_v45 = vrot.slane %v5978_v32, 7 }
 0x4ad   :  { %v1166_v26 = vmul.f32 %v5837_v38, %v1162_v24  ;;  %v1164_v27 = vsel %vm598_vm4, %v1160_v23, %v1157_v20  ;;  %v1161_v36 = vsel %vm598_vm4, %v1159_v22, %v1160_v23  ;;  %v1152_v43 = vsel %vm585_vm2, %v1148_v39, %v1145_v40  ;;  %1516 = vmatpush1.bf16.msra.mxu0 %v4762_v9 }
 0x4ae   :  { %v1168_v34 = vmul.f32 %v5844_v42, %v1164_v27  ;;  %v1153_v49 = vmul.f32 %v5813_v10, %v1152_v43  ;;  %v1151_v50 = vsel %vm585_vm2, %v1145_v40, %v1146_v41  ;;  %v1150_v56 = vsel %vm585_vm2, %v1146_v41, %v1147_v45  ;;  %1517 = vmatprep.subr.bf16.mxu0 %v5508_v53 }
 0x4af   :  { %v1190_v35 = vpack.c.bf16 %v1166_v26, %v1163_v28  ;;  %v1155_v59 = vmul.f32 %v5829_v31, %v1150_v56  ;;  %v1149_v60 = vsel %vm585_vm2, %v1147_v45, %v1148_v39 }
 0x4b0   :  { %4692 = vrot.lane.b32.xlu1 %v4691_v25, %s5494_s1  ;;  %v1192_v37 = vpack.c.bf16 %v1168_v34, %v1161_v36 }
 0x4b1   :  { %4156 = vmatprep.mubr.msk.bf16.mxu1 %vm783_vm8, %v1190_v35  ;;  %1518 = vmatpush1.bf16.msra.mxu0 %v4763_v11  ;;  %v1117_v11 = vld [vmem:[#allocation14] sm:$0x1] }
 0x4b2   :  { %1519 = vmatprep.subr.bf16.mxu0 %v5508_v53 }
 0x4b5   :  { %1520 = vmatpush1.bf16.msra.mxu0 %v4764_v4 }
 0x4b6   :  { %1521 = vmatprep.subr.bf16.mxu0 %v5508_v53 }
 0x4b9   :  { %1522 = vmatpush1.bf16.msra.mxu0 %v4765_v13 }
 0x4ba   :  { %1523 = vmatprep.subr.bf16.mxu0 %v5508_v53 }
 0x4bd   :  { %1524 = vmatpush1.bf16.msra.mxu0 %v4766_v2  ;;  %v1118_v2 = vld [vmem:[#allocation16] sm:$0x1] }
 0x4be   :  { %1525 = vmatprep.subr.bf16.mxu0 %v5508_v53 }
 0x4c1   :  { %1526 = vmatpush1.bf16.msra.mxu0 %v4767_v3 }
 0x4c2   :  { %1527 = vmatprep.subr.bf16.mxu0 %v5508_v53 }
 0x4c5   :  { %1528 = vmatpush1.bf16.msra.mxu0 %v4768_v14 }
 0x4c6   :  { %1529 = vmatprep.subr.bf16.mxu0 %v5508_v53 }
 0x4c9   :  { %1530 = vmatpush1.bf16.msra.mxu0 %v4769_v15 }
 0x4ca   :  { %1531 = vmatprep.subr.bf16.mxu0 %v5508_v53 }
 0x4cd   :  { %1532 = vmatpush1.bf16.msra.mxu0 %v4770_v16 }
 0x4ce   :  { %1533 = vmatprep.subr.bf16.mxu0 %v5508_v53 }
 0x51e   :  { %v4688_v44 = vpop.permute.xlu1 %4687 }
 0x51f   :  { %v4690_v46 = vunpack.i.h.bf16 %v4688_v44  ;;  %v4689_v48 = vunpack.i.l.bf16 %v4688_v44 }
 0x521   :  { %v1185_v51 = vsel %vm783_vm8, %v1153_v49, %v4689_v48  ;;  %v1186_v52 = vsel %vm783_vm8, %v1151_v50, %v4690_v46 }
 0x522   :  { %v1189_v54 = vpack.c.bf16 %v1186_v52, %v1185_v51  ;;  %v4693_v55 = vpop.permute.xlu1 %4692 }
 0x523   :  { %v4695_v57 = vunpack.i.h.bf16 %v4693_v55  ;;  %v4694_v58 = vunpack.i.l.bf16 %v4693_v55 }
 0x524   :  { %1304 = vmatmul.mubr.bf16.vlgmr.msra.gmra.mrb[4].mxu1 %v1189_v54 }
 0x525   :  { %4157 = vmatprep.mubr.msk.bf16.mxu1 %vm783_vm8, %v1192_v37  ;;  %v1187_v61 = vsel %vm783_vm8, %v1155_v59, %v4694_v58  ;;  %v1188_v62 = vsel %vm783_vm8, %v1149_v60, %v4695_v57 }
 0x526   :  { %v1191_v5 = vpack.c.bf16 %v1188_v62, %v1187_v61 }
 0x52c   :  { %1312 = vmatmul.mubr.bf16.gmra.mrb[8].mxu1 %v1191_v5 }
 0x5f7   :  { %v1305_v17 = vpop.f32.mrb[4].mxu1 }
 0x5f8   :  { %v1307_v18 = vpop.f32.mrb[5].mxu1  ;;  %v1320_v6 = vsel %vm783_vm8, %v1305_v17, 0.0 }
 0x5f9   :  { %v1308_v63 = vpop.f32.mrb[6].mxu1 }
 0x5fa   :  { %v1321_v12 = vsel %vm783_vm8, %v1308_v63, 0.0  ;;  %v1310_v0 = vpop.f32.mrb[7].mxu1 }
 0x5fb   :  { %v1322_v33 = vadd.f32 %v1321_v12, %v1320_v6  ;;  %v4771_v12 = vld [vmem:[%s6604_s23 + $0x58] sm:$0xff]  }
 0x5fc   :  { %1534 = vmatpush1.bf16.msra.mxu0 %v4771_v12  ;;  %v4778_v12 = vld [vmem:[%s6605_s27 + $0x30] sm:$0xff]  }
 0x5fd   :  { %2047 = vmatprep.subr.bf16.mxu0 %v5508_v53 }
 0x5ff   :  { %v1313_v20 = vpop.f32.mrb[8].mxu1 }
 0x600   :  { %v1323_v21 = vsel %vm783_vm8, %v1313_v20, 0.0  ;;  %v1315_v22 = vpop.f32.mrb[9].mxu1 }
 0x601   :  { %v1324_v23 = vadd.f32 %v1323_v21, %v1322_v33  ;;  %v1316_v24 = vpop.f32.mrb[10].mxu1 }
 0x602   :  { %v1325_v25 = vsel %vm783_vm8, %v1316_v24, 0.0  ;;  %v1318_v26 = vpop.f32.mrb[11].mxu1 }
 0x603   :  { %v1326_v27 = vadd.f32 %v1325_v25, %v1324_v23 }
 0x605   :  { %v1327_v28 = vrot.slane %v1326_v27, 4 }
 0x607   :  { %v1328_v34 = vadd.f32 %v1327_v28, %v1326_v27 }
 0x609   :  { %v1329_v35 = vrot.slane %v1328_v34, 2 }
 0x60b   :  { %v1330_v36 = vadd.f32 %v1329_v35, %v1328_v34 }
 0x60d   :  { %v1331_v37 = vrot.slane %v1330_v36, 1 }
 0x60f   :  { %v1332_v39 = vadd.f32 %v1331_v37, %v1330_v36 }
 0x611   :  { %v1333_v40 = vmul.f32 0.03125, %v1332_v39 }
 0x613   :  { %v1334_v41 = vsub.f32 %v1305_v17, %v1333_v40  ;;  %v1335_v43 = vsub.f32 %v1308_v63, %v1333_v40  ;;  %v1336_v44 = vsub.f32 %v1313_v20, %v1333_v40  ;;  %v1337_v45 = vsub.f32 %v1316_v24, %v1333_v40 }
 0x615   :  { %v1338_v46 = vmul.f32 %v1334_v41, %v1334_v41  ;;  %v1339_v48 = vmul.f32 %v1335_v43, %v1335_v43  ;;  %v1340_v49 = vmul.f32 %v1336_v44, %v1336_v44  ;;  %v1341_v50 = vmul.f32 %v1337_v45, %v1337_v45 }
 0x617   :  { %v1342_v51 = vsel %vm783_vm8, %v1338_v46, 0.0  ;;  %v1343_v52 = vsel %vm783_vm8, %v1339_v48, 0.0  ;;  %v1345_v55 = vsel %vm783_vm8, %v1340_v49, 0.0  ;;  %v1347_v57 = vsel %vm783_vm8, %v1341_v50, 0.0 }
 0x618   :  { %v1344_v54 = vadd.f32 %v1343_v52, %v1342_v51 }
 0x61a   :  { %v1346_v56 = vadd.f32 %v1345_v55, %v1344_v54 }
 0x61c   :  { %v1348_v58 = vadd.f32 %v1347_v57, %v1346_v56 }
 0x61e   :  { %v1349_v59 = vrot.slane %v1348_v58, 4 }
 0x620   :  { %v1350_v60 = vadd.f32 %v1349_v59, %v1348_v58 }
 0x622   :  { %v1351_v61 = vrot.slane %v1350_v60, 2 }
 0x624   :  { %v1352_v62 = vadd.f32 %v1351_v61, %v1350_v60 }
 0x626   :  { %v1353_v5 = vrot.slane %v1352_v62, 1 }
 0x628   :  { %v1354_v7 = vadd.f32 %v1353_v5, %v1352_v62 }
 0x62a   :  { %v1355_v8 = vmul.f32 0.03125, %v1354_v7 }
 0x62c   :  { %v1356_v9 = vadd.f32 1e-05, %v1355_v8 }
 0x62e   :  { %4928 = vrsqrt.f32 %v1356_v9 }
 0x638   :  { %v4929_v4 = vpop.eup %4928 }
 0x639   :  { %v1358_v13 = vmul.f32 %v4929_v4, %v1117_v11 }
 0x63b   :  { %v1359_v3 = vmul.f32 %v1358_v13, %v1333_v40  ;;  %v1365_v14 = vrot.slane %v1358_v13, %v5892_v47 }
 0x63d   :  { %v1360_v15 = vsub.f32 %v1118_v2, %v1359_v3  ;;  %v1370_v16 = vmul.f32 %v1365_v14, %v1316_v24  ;;  %v1369_v18 = vmul.f32 %v1365_v14, %v1313_v20  ;;  %v1367_v6 = vmul.f32 %v1365_v14, %v1305_v17  ;;  %v4772_v3 = vld [vmem:[%s6605_s27] sm:$0xff]  }
 0x63e   :  { %v1368_v0 = vmul.f32 %v1365_v14, %v1308_v63  ;;  %1808 = vmatpush1.bf16.msra.mxu1 %v4772_v3  ;;  %v4773_v14 = vld [vmem:[%s6605_s27 + $0x8] sm:$0xff]  }
 0x63f   :  { %v1375_v33 = vrot.slane %v1360_v15, %v5892_v47  ;;  %1809 = vmatprep.subr.bf16.mxu1 %v5508_v53  ;;  %v4774_v15 = vld [vmem:[%s6605_s27 + $0x10] sm:$0xff]  }
 0x641   :  { %v1380_v21 = vadd.f32 %v1375_v33, %v1370_v16  ;;  %v1379_v22 = vadd.f32 %v1375_v33, %v1369_v18  ;;  %v1377_v23 = vadd.f32 %v1375_v33, %v1367_v6  ;;  %v1378_v25 = vadd.f32 %v1375_v33, %v1368_v0  ;;  %v4775_v16 = vld [vmem:[%s6605_s27 + $0x18] sm:$0xff]   ;;  %v4776_v18 = vld [vmem:[%s6605_s27 + $0x20] sm:$0xff]   ;;  %v4777_v6 = vld [vmem:[%s6605_s27 + $0x28] sm:$0xff]  }
 0x642   :  { %1810 = vmatpush1.bf16.msra.mxu1 %v4773_v14  ;;  %v4779_v0 = vld [vmem:[%s6605_s27 + $0x38] sm:$0xff]   ;;  %v4780_v33 = vld [vmem:[%s6605_s27 + $0x40] sm:$0xff]  }
 0x643   :  { %v1383_v26 = vmax.f32 %v1379_v22, 0.0  ;;  %v1384_v27 = vmax.f32 %v1380_v21, 0.0  ;;  %v1381_v28 = vmax.f32 %v1377_v23, 0.0  ;;  %v1382_v34 = vmax.f32 %v1378_v25, 0.0  ;;  %1811 = vmatprep.subr.bf16.mxu1 %v5508_v53  ;;  %v4781_v21 = vld [vmem:[%s6605_s27 + $0x48] sm:$0xff]   ;;  %v4782_v22 = vld [vmem:[%s6605_s27 + $0x50] sm:$0xff]  }
 0x645   :  { %v1388_v35 = vrot.slane %v1384_v27, 7  ;;  %v1400_v36 = vrot.slane %v1384_v27, 1  ;;  %v4701_v24 = vpack.i.bf16 %v1384_v27, %v1383_v26  ;;  %v1387_v20 = vrot.slane %v1383_v26, 7 }
 0x646   :  { %v1399_v17 = vrot.slane %v1383_v26, 1  ;;  %v1386_v37 = vrot.slane %v1382_v34, 7  ;;  %v1398_v63 = vrot.slane %v1382_v34, 1  ;;  %v4696_v39 = vpack.i.bf16 %v1382_v34, %v1381_v28  ;;  %1812 = vmatpush1.bf16.msra.mxu1 %v4774_v15 }
 0x647   :  { %4702 = vrot.lane.b32.xlu1 %v4701_v24, %s5494_s1  ;;  %v1385_v40 = vrot.slane %v1381_v28, 7  ;;  %v1397_v41 = vrot.slane %v1381_v28, 1  ;;  %v1389_v43 = vsel %vm585_vm2, %v1387_v20, %v1388_v35  ;;  %1813 = vmatprep.subr.bf16.mxu1 %v5508_v53 }
 0x648   :  { %4697 = vrot.lane.b32.xlu0 %v4696_v39, %s5494_s1  ;;  %v1402_v44 = vsel %vm598_vm4, %v1398_v63, %v1399_v17  ;;  %v1401_v45 = vsel %vm598_vm4, %v1399_v17, %v1400_v36  ;;  %v1390_v46 = vsel %vm585_vm2, %v1386_v37, %v1387_v20 }
 0x649   :  { %v1403_v48 = vsel %vm598_vm4, %v1397_v41, %v1398_v63  ;;  %v1406_v49 = vmul.f32 %v5837_v38, %v1402_v44  ;;  %v1391_v50 = vsel %vm585_vm2, %v1385_v40, %v1386_v37  ;;  %v1392_v51 = vsel %vm585_vm2, %v1388_v35, %v1385_v40 }
 0x64a   :  { %v1404_v52 = vsel %vm598_vm4, %v1400_v36, %v1397_v41  ;;  %v1395_v61 = vmul.f32 %v5829_v31, %v1390_v46  ;;  %v1393_v7 = vmul.f32 %v5813_v10, %v1392_v51  ;;  %1814 = vmatpush1.bf16.msra.mxu1 %v4775_v16  ;;  %v1143_v16 = vld [vmem:[#allocation17] sm:$0x1] }
 0x64b   :  { %v1430_v54 = vpack.c.bf16 %v1406_v49, %v1403_v48  ;;  %v1408_v55 = vmul.f32 %v5844_v42, %v1404_v52  ;;  %1815 = vmatprep.subr.bf16.mxu1 %v5508_v53 }
 0x64d   :  { %4170 = vmatprep.mubr.msk.bf16.mxu0 %vm783_vm8, %v1430_v54  ;;  %v1432_v56 = vpack.c.bf16 %v1408_v55, %v1401_v45 }
 0x64e   :  { %1816 = vmatpush1.bf16.msra.mxu1 %v4776_v18 }
 0x64f   :  { %1817 = vmatprep.subr.bf16.mxu1 %v5508_v53 }
 0x652   :  { %1818 = vmatpush1.bf16.msra.mxu1 %v4777_v6 }
 0x653   :  { %1819 = vmatprep.subr.bf16.mxu1 %v5508_v53 }
 0x656   :  { %1820 = vmatpush1.bf16.msra.mxu1 %v4778_v12  ;;  %v1144_v12 = vld [vmem:[#allocation19] sm:$0x1] }
 0x657   :  { %1821 = vmatprep.subr.bf16.mxu1 %v5508_v53 }
 0x65a   :  { %1822 = vmatpush1.bf16.msra.mxu1 %v4779_v0 }
 0x65b   :  { %1823 = vmatprep.subr.bf16.mxu1 %v5508_v53 }
 0x65e   :  { %1824 = vmatpush1.bf16.msra.mxu1 %v4780_v33 }
 0x65f   :  { %1825 = vmatprep.subr.bf16.mxu1 %v5508_v53 }
 0x662   :  { %1826 = vmatpush1.bf16.msra.mxu1 %v4781_v21 }
 0x663   :  { %1827 = vmatprep.subr.bf16.mxu1 %v5508_v53 }
 0x666   :  { %1828 = vmatpush1.bf16.msra.mxu1 %v4782_v22 }
 0x667   :  { %1829 = vmatprep.subr.bf16.mxu1 %v5508_v53 }
 0x6b9   :  { %v4703_v57 = vpop.permute.xlu1 %4702 }
 0x6ba   :  { %v4705_v58 = vunpack.i.h.bf16 %v4703_v57  ;;  %v4704_v59 = vunpack.i.l.bf16 %v4703_v57  ;;  %v4698_v60 = vpop.permute.xlu0 %4697 }
 0x6bb   :  { %v4700_v62 = vunpack.i.h.bf16 %v4698_v60  ;;  %v4699_v5 = vunpack.i.l.bf16 %v4698_v60 }
 0x6bc   :  { %v1427_v8 = vsel %vm783_vm8, %v1395_v61, %v4704_v59  ;;  %v1428_v9 = vsel %vm783_vm8, %v1389_v43, %v4705_v58 }
 0x6bd   :  { %v1425_v11 = vsel %vm783_vm8, %v1393_v7, %v4699_v5  ;;  %v1426_v4 = vsel %vm783_vm8, %v1391_v50, %v4700_v62  ;;  %v1431_v13 = vpack.c.bf16 %v1428_v9, %v1427_v8 }
 0x6be   :  { %v1429_v2 = vpack.c.bf16 %v1426_v4, %v1425_v11 }
 0x6c0   :  { %1544 = vmatmul.mubr.bf16.vlgmr.msra.gmra.mrb[12].mxu0 %v1429_v2 }
 0x6c1   :  { %4171 = vmatprep.mubr.msk.bf16.mxu0 %vm783_vm8, %v1432_v56 }
 0x6c8   :  { %1552 = vmatmul.mubr.bf16.gmra.mrb[16].mxu0 %v1431_v13 }
 0x793   :  { %v1545_v23 = vpop.f32.mrb[12].mxu0 }
 0x794   :  { %v1547_v25 = vpop.f32.mrb[13].mxu0  ;;  %v1560_v27 = vsel %vm783_vm8, %v1545_v23, 0.0 }
 0x795   :  { %v1548_v26 = vpop.f32.mrb[14].mxu0 }
 0x796   :  { %v1561_v28 = vsel %vm783_vm8, %v1548_v26, 0.0  ;;  %v1550_v34 = vpop.f32.mrb[15].mxu0 }
 0x797   :  { %v1562_v35 = vadd.f32 %v1561_v28, %v1560_v27  ;;  %v4783_v34 = vld [vmem:[%s6605_s27 + $0x58] sm:$0xff]  }
 0x798   :  { %1830 = vmatpush1.bf16.msra.mxu1 %v4783_v34  ;;  %v4791_v34 = vld [vmem:[%s6606_s25 + $0x38] sm:$0xff]  }
 0x79b   :  { %v1553_v36 = vpop.f32.mrb[16].mxu0 }
 0x79c   :  { %v1563_v24 = vsel %vm783_vm8, %v1553_v36, 0.0  ;;  %v1555_v20 = vpop.f32.mrb[17].mxu0 }
 0x79d   :  { %v1564_v17 = vadd.f32 %v1563_v24, %v1562_v35  ;;  %v1556_v37 = vpop.f32.mrb[18].mxu0 }
 0x79e   :  { %v1565_v63 = vsel %vm783_vm8, %v1556_v37, 0.0  ;;  %v1558_v39 = vpop.f32.mrb[19].mxu0 }
 0x79f   :  { %v1566_v40 = vadd.f32 %v1565_v63, %v1564_v17 }
 0x7a1   :  { %v1567_v41 = vrot.slane %v1566_v40, 4 }
 0x7a3   :  { %v1568_v43 = vadd.f32 %v1567_v41, %v1566_v40 }
 0x7a5   :  { %v1569_v44 = vrot.slane %v1568_v43, 2 }
 0x7a7   :  { %v1570_v45 = vadd.f32 %v1569_v44, %v1568_v43 }
 0x7a9   :  { %v1571_v46 = vrot.slane %v1570_v45, 1 }
 0x7ab   :  { %v1572_v48 = vadd.f32 %v1571_v46, %v1570_v45 }
 0x7ad   :  { %v1573_v49 = vmul.f32 0.03125, %v1572_v48 }
 0x7af   :  { %v1574_v50 = vsub.f32 %v1545_v23, %v1573_v49  ;;  %v1575_v51 = vsub.f32 %v1548_v26, %v1573_v49  ;;  %v1576_v52 = vsub.f32 %v1553_v36, %v1573_v49  ;;  %v1577_v54 = vsub.f32 %v1556_v37, %v1573_v49 }
 0x7b1   :  { %v1578_v55 = vmul.f32 %v1574_v50, %v1574_v50  ;;  %v1579_v56 = vmul.f32 %v1575_v51, %v1575_v51  ;;  %v1580_v57 = vmul.f32 %v1576_v52, %v1576_v52  ;;  %v1581_v58 = vmul.f32 %v1577_v54, %v1577_v54 }
 0x7b3   :  { %v1582_v59 = vsel %vm783_vm8, %v1578_v55, 0.0  ;;  %v1583_v60 = vsel %vm783_vm8, %v1579_v56, 0.0  ;;  %v1585_v62 = vsel %vm783_vm8, %v1580_v57, 0.0  ;;  %v1587_v7 = vsel %vm783_vm8, %v1581_v58, 0.0 }
 0x7b4   :  { %v1584_v61 = vadd.f32 %v1583_v60, %v1582_v59 }
 0x7b6   :  { %v1586_v5 = vadd.f32 %v1585_v62, %v1584_v61 }
 0x7b8   :  { %v1588_v8 = vadd.f32 %v1587_v7, %v1586_v5 }
 0x7ba   :  { %v1589_v9 = vrot.slane %v1588_v8, 4 }
 0x7bc   :  { %v1590_v11 = vadd.f32 %v1589_v9, %v1588_v8 }
 0x7be   :  { %v1591_v4 = vrot.slane %v1590_v11, 2 }
 0x7c0   :  { %v1592_v13 = vadd.f32 %v1591_v4, %v1590_v11 }
 0x7c2   :  { %v1593_v2 = vrot.slane %v1592_v13, 1 }
 0x7c4   :  { %v1594_v3 = vadd.f32 %v1593_v2, %v1592_v13 }
 0x7c6   :  { %v1595_v14 = vmul.f32 0.03125, %v1594_v3 }
 0x7c8   :  { %v1596_v15 = vadd.f32 1e-05, %v1595_v14 }
 0x7ca   :  { %4930 = vrsqrt.f32 %v1596_v15 }
 0x7d4   :  { %v4931_v18 = vpop.eup %4930 }
 0x7d5   :  { %v1598_v6 = vmul.f32 %v4931_v18, %v1143_v16 }
 0x7d7   :  { %v1599_v0 = vmul.f32 %v1598_v6, %v1573_v49  ;;  %v1605_v33 = vrot.slane %v1598_v6, %v5892_v47 }
 0x7d9   :  { %v1600_v21 = vsub.f32 %v1144_v12, %v1599_v0  ;;  %v1610_v22 = vmul.f32 %v1605_v33, %v1556_v37  ;;  %v1609_v25 = vmul.f32 %v1605_v33, %v1553_v36  ;;  %v1607_v27 = vmul.f32 %v1605_v33, %v1545_v23  ;;  %v4784_v0 = vld [vmem:[%s6606_s25] sm:$0xff]  }
 0x7da   :  { %v1608_v28 = vmul.f32 %v1605_v33, %v1548_v26  ;;  %2048 = vmatpush1.bf16.msra.mxu0 %v4784_v0  ;;  %v4785_v33 = vld [vmem:[%s6606_s25 + $0x8] sm:$0xff]  }
 0x7db   :  { %v1615_v35 = vrot.slane %v1600_v21, %v5892_v47  ;;  %2049 = vmatprep.subr.bf16.mxu0 %v5508_v53  ;;  %v4786_v21 = vld [vmem:[%s6606_s25 + $0x10] sm:$0xff]  }
 0x7dd   :  { %v1620_v24 = vadd.f32 %v1615_v35, %v1610_v22  ;;  %v1619_v20 = vadd.f32 %v1615_v35, %v1609_v25  ;;  %v1617_v17 = vadd.f32 %v1615_v35, %v1607_v27  ;;  %v1618_v63 = vadd.f32 %v1615_v35, %v1608_v28  ;;  %v4787_v22 = vld [vmem:[%s6606_s25 + $0x18] sm:$0xff]   ;;  %v4788_v25 = vld [vmem:[%s6606_s25 + $0x20] sm:$0xff]   ;;  %v4789_v27 = vld [vmem:[%s6606_s25 + $0x28] sm:$0xff]  }
 0x7de   :  { %2050 = vmatpush1.bf16.msra.mxu0 %v4785_v33  ;;  %v4790_v28 = vld [vmem:[%s6606_s25 + $0x30] sm:$0xff]   ;;  %v4792_v35 = vld [vmem:[%s6606_s25 + $0x40] sm:$0xff]  }
 0x7df   :  { %v1624_v39 = vadd.f32 %v1620_v24, %v5972_v19  ;;  %v1623_v40 = vadd.f32 %v1619_v20, %v5978_v32  ;;  %v1621_v41 = vadd.f32 %v1617_v17, %v5974_v29  ;;  %v1622_v43 = vadd.f32 %v1618_v63, %v5976_v30  ;;  %2051 = vmatprep.subr.bf16.mxu0 %v5508_v53  ;;  %v4793_v24 = vld [vmem:[%s6606_s25 + $0x48] sm:$0xff]   ;;  %v4794_v20 = vld [vmem:[%s6606_s25 + $0x50] sm:$0xff]  }
 0x7e1   :  { %v6119_v37 = vmax.f32 %v1624_v39, 0.0  ;;  %v6121_v23 = vmax.f32 %v1623_v40, 0.0  ;;  %v6123_v26 = vmax.f32 %v1621_v41, 0.0  ;;  %v6125_v36 = vmax.f32 %v1622_v43, 0.0 }
 0x7e2   :  { %2052 = vmatpush1.bf16.msra.mxu0 %v4786_v21 }
 0x7e3   :  { %v4711_v44 = vpack.i.bf16 %v6119_v37, %v6121_v23  ;;  %v4706_v19 = vpack.i.bf16 %v6125_v36, %v6123_v26  ;;  %v1693_v32 = vrot.slane %v6123_v26, 1  ;;  %v1694_v29 = vrot.slane %v6125_v36, 1  ;;  %2053 = vmatprep.subr.bf16.mxu0 %v5508_v53 }
 0x7e4   :  { %v1695_v30 = vrot.slane %v6121_v23, 1  ;;  %v1696_v45 = vrot.slane %v6119_v37, 1  ;;  %v1684_v56 = vrot.slane %v6119_v37, 7  ;;  %v1681_v57 = vrot.slane %v6123_v26, 7 }
 0x7e5   :  { %4712 = vrot.lane.b32.xlu1 %v4711_v44, %s5494_s1  ;;  %4707 = vrot.lane.b32.xlu0 %v4706_v19, %s5494_s1  ;;  %v1699_v50 = vsel %vm598_vm4, %v1693_v32, %v1694_v29  ;;  %v1682_v58 = vrot.slane %v6125_v36, 7  ;;  %v1683_v61 = vrot.slane %v6121_v23, 7 }
 0x7e6   :  { %v1698_v46 = vsel %vm598_vm4, %v1694_v29, %v1695_v30  ;;  %v1700_v49 = vsel %vm598_vm4, %v1696_v45, %v1693_v32  ;;  %v1697_v54 = vsel %vm598_vm4, %v1695_v30, %v1696_v45  ;;  %v1688_v59 = vsel %vm585_vm2, %v1684_v56, %v1681_v57  ;;  %2054 = vmatpush1.bf16.msra.mxu0 %v4787_v22  ;;  %v1653_v22 = vld [vmem:[#allocation20] sm:$0x1] }
 0x7e7   :  { %v1702_v48 = vmul.f32 %v5837_v38, %v1698_v46  ;;  %v1704_v51 = vmul.f32 %v5844_v42, %v1700_v49  ;;  %v1689_v7 = vmul.f32 %v5813_v10, %v1688_v59  ;;  %v1687_v9 = vsel %vm585_vm2, %v1681_v57, %v1682_v58  ;;  %2055 = vmatprep.subr.bf16.mxu0 %v5508_v53 }
 0x7e8   :  { %v1686_v2 = vsel %vm585_vm2, %v1682_v58, %v1683_v61  ;;  %v1685_v16 = vsel %vm585_vm2, %v1683_v61, %v1684_v56 }
 0x7e9   :  { %v1726_v52 = vpack.c.bf16 %v1702_v48, %v1699_v50  ;;  %v1728_v55 = vpack.c.bf16 %v1704_v51, %v1697_v54  ;;  %v1691_v15 = vmul.f32 %v5829_v31, %v1686_v2 }
 0x7ea   :  { %2056 = vmatpush1.bf16.msra.mxu0 %v4788_v25 }
 0x7eb   :  { %4184 = vmatprep.mubr.msk.bf16.mxu1 %vm783_vm8, %v1726_v52  ;;  %2057 = vmatprep.subr.bf16.mxu0 %v5508_v53 }
 0x7ee   :  { %2058 = vmatpush1.bf16.msra.mxu0 %v4789_v27 }
 0x7ef   :  { %2059 = vmatprep.subr.bf16.mxu0 %v5508_v53 }
 0x7f2   :  { %2060 = vmatpush1.bf16.msra.mxu0 %v4790_v28  ;;  %v1654_v28 = vld [vmem:[#allocation22] sm:$0x1] }
 0x7f3   :  { %2061 = vmatprep.subr.bf16.mxu0 %v5508_v53 }
 0x7f6   :  { %2062 = vmatpush1.bf16.msra.mxu0 %v4791_v34 }
 0x7f7   :  { %2063 = vmatprep.subr.bf16.mxu0 %v5508_v53 }
 0x7fa   :  { %2064 = vmatpush1.bf16.msra.mxu0 %v4792_v35 }
 0x7fb   :  { %2065 = vmatprep.subr.bf16.mxu0 %v5508_v53 }
 0x7fe   :  { %2066 = vmatpush1.bf16.msra.mxu0 %v4793_v24 }
 0x7ff   :  { %2067 = vmatprep.subr.bf16.mxu0 %v5508_v53 }
 0x802   :  { %2068 = vmatpush1.bf16.msra.mxu0 %v4794_v20 }
 0x803   :  { %2069 = vmatprep.subr.bf16.mxu0 %v5508_v53 }
 0x857   :  { %v4708_v60 = vpop.permute.xlu0 %4707  ;;  %v4713_v8 = vpop.permute.xlu1 %4712 }
 0x858   :  { %v4710_v62 = vunpack.i.h.bf16 %v4708_v60  ;;  %v4709_v5 = vunpack.i.l.bf16 %v4708_v60  ;;  %v4715_v3 = vunpack.i.h.bf16 %v4713_v8  ;;  %v4714_v14 = vunpack.i.l.bf16 %v4713_v8 }
 0x85a   :  { %v1721_v11 = vsel %vm783_vm8, %v1689_v7, %v4709_v5  ;;  %v1722_v4 = vsel %vm783_vm8, %v1687_v9, %v4710_v62  ;;  %v1723_v18 = vsel %vm783_vm8, %v1691_v15, %v4714_v14  ;;  %v1724_v6 = vsel %vm783_vm8, %v1685_v16, %v4715_v3 }
 0x85b   :  { %v1725_v13 = vpack.c.bf16 %v1722_v4, %v1721_v11  ;;  %v1727_v12 = vpack.c.bf16 %v1724_v6, %v1723_v18 }
 0x85d   :  { %1840 = vmatmul.mubr.bf16.vlgmr.msra.gmra.mrb[12].mxu1 %v1725_v13 }
 0x85e   :  { %4185 = vmatprep.mubr.msk.bf16.mxu1 %vm783_vm8, %v1728_v55 }
 0x865   :  { %1848 = vmatmul.mubr.bf16.gmra.mrb[16].mxu1 %v1727_v12 }
 0x930   :  { %v1841_v17 = vpop.f32.mrb[12].mxu1 }
 0x931   :  { %v1843_v63 = vpop.f32.mrb[13].mxu1  ;;  %v1856_v40 = vsel %vm783_vm8, %v1841_v17, 0.0 }
 0x932   :  { %v1844_v39 = vpop.f32.mrb[14].mxu1 }
 0x933   :  { %v1857_v41 = vsel %vm783_vm8, %v1844_v39, 0.0  ;;  %v1846_v43 = vpop.f32.mrb[15].mxu1 }
 0x934   :  { %v1858_v44 = vadd.f32 %v1857_v41, %v1856_v40  ;;  %v4795_v41 = vld [vmem:[%s6606_s25 + $0x58] sm:$0xff]  }
 0x935   :  { %2070 = vmatpush1.bf16.msra.mxu0 %v4795_v41 }
 0x938   :  { %v1849_v19 = vpop.f32.mrb[16].mxu1 }
 0x939   :  { %v1859_v32 = vsel %vm783_vm8, %v1849_v19, 0.0  ;;  %v1851_v29 = vpop.f32.mrb[17].mxu1 }
 0x93a   :  { %v1860_v30 = vadd.f32 %v1859_v32, %v1858_v44  ;;  %v1852_v45 = vpop.f32.mrb[18].mxu1 }
 0x93b   :  { %v1861_v46 = vsel %vm783_vm8, %v1852_v45, 0.0  ;;  %v1854_v48 = vpop.f32.mrb[19].mxu1 }
 0x93c   :  { %v1862_v49 = vadd.f32 %v1861_v46, %v1860_v30 }
 0x93e   :  { %v1863_v50 = vrot.slane %v1862_v49, 4 }
 0x940   :  { %v1864_v51 = vadd.f32 %v1863_v50, %v1862_v49 }
 0x942   :  { %v1865_v52 = vrot.slane %v1864_v51, 2 }
 0x944   :  { %v1866_v54 = vadd.f32 %v1865_v52, %v1864_v51 }
 0x946   :  { %v1867_v55 = vrot.slane %v1866_v54, 1 }
 0x948   :  { %v1868_v56 = vadd.f32 %v1867_v55, %v1866_v54 }
 0x94a   :  { %v1869_v57 = vmul.f32 0.03125, %v1868_v56 }
 0x94c   :  { %v1870_v58 = vsub.f32 %v1841_v17, %v1869_v57  ;;  %v1871_v59 = vsub.f32 %v1844_v39, %v1869_v57  ;;  %v1872_v60 = vsub.f32 %v1849_v19, %v1869_v57  ;;  %v1873_v61 = vsub.f32 %v1852_v45, %v1869_v57 }
 0x94e   :  { %v1874_v62 = vmul.f32 %v1870_v58, %v1870_v58  ;;  %v1875_v5 = vmul.f32 %v1871_v59, %v1871_v59  ;;  %v1876_v7 = vmul.f32 %v1872_v60, %v1872_v60  ;;  %v1877_v8 = vmul.f32 %v1873_v61, %v1873_v61 }
 0x950   :  { %v1878_v9 = vsel %vm783_vm8, %v1874_v62, 0.0  ;;  %v1879_v11 = vsel %vm783_vm8, %v1875_v5, 0.0  ;;  %v1881_v13 = vsel %vm783_vm8, %v1876_v7, 0.0  ;;  %v1883_v3 = vsel %vm783_vm8, %v1877_v8, 0.0 }
 0x951   :  { %v1880_v4 = vadd.f32 %v1879_v11, %v1878_v9 }
 0x953   :  { %v1882_v2 = vadd.f32 %v1881_v13, %v1880_v4 }
 0x955   :  { %v1884_v14 = vadd.f32 %v1883_v3, %v1882_v2 }
 0x957   :  { %v1885_v15 = vrot.slane %v1884_v14, 4 }
 0x959   :  { %v1886_v16 = vadd.f32 %v1885_v15, %v1884_v14 }
 0x95b   :  { %v1887_v18 = vrot.slane %v1886_v16, 2 }
 0x95d   :  { %v1888_v6 = vadd.f32 %v1887_v18, %v1886_v16 }
 0x95f   :  { %v1889_v12 = vrot.slane %v1888_v6, 1 }
 0x961   :  { %v1890_v0 = vadd.f32 %v1889_v12, %v1888_v6 }
 0x963   :  { %v1891_v33 = vmul.f32 0.03125, %v1890_v0 }
 0x965   :  { %v1892_v21 = vadd.f32 1e-05, %v1891_v33 }
 0x967   :  { %4932 = vrsqrt.f32 %v1892_v21 }
 0x971   :  { %v4933_v25 = vpop.eup %4932 }
 0x972   :  { %v1894_v27 = vmul.f32 %v4933_v25, %v1653_v22 }
 0x974   :  { %v1895_v34 = vmul.f32 %v1894_v27, %v1869_v57  ;;  %v1901_v35 = vrot.slane %v1894_v27, %v5892_v47 }
 0x976   :  { %v1896_v24 = vsub.f32 %v1654_v28, %v1895_v34  ;;  %v1906_v20 = vmul.f32 %v1901_v35, %v1852_v45  ;;  %v1905_v63 = vmul.f32 %v1901_v35, %v1849_v19  ;;  %v1903_v40 = vmul.f32 %v1901_v35, %v1841_v17  ;;  %v4796_v34 = vld [vmem:[%s6607_s26] sm:$0xff]  }
 0x977   :  { %v1904_v43 = vmul.f32 %v1901_v35, %v1844_v39  ;;  %4510 = vmatprep.subr.bf16.mxu1 %v4796_v34  ;;  %v4797_v35 = vld [vmem:[%s6607_s26 + $0x8] sm:$0xff]  }
 0x978   :  { %v1911_v44 = vrot.slane %v1896_v24, %v5892_v47  ;;  %4511 = vmatpush3.bf16.msra.mxu1 %v4796_v34  ;;  %v4798_v24 = vld [vmem:[%s6607_s26 + $0x10] sm:$0xff]  }
 0x979   :  { %4512 = vmatprep.subr.bf16.mxu1 %v4797_v35 }
 0x97a   :  { %v1916_v32 = vadd.f32 %v1911_v44, %v1906_v20  ;;  %v1915_v29 = vadd.f32 %v1911_v44, %v1905_v63  ;;  %v1913_v30 = vadd.f32 %v1911_v44, %v1903_v40  ;;  %v1914_v46 = vadd.f32 %v1911_v44, %v1904_v43  ;;  %v4799_v20 = vld [vmem:[%s6607_s26 + $0x18] sm:$0xff]  }
 0x97c   :  { %v1919_v48 = vmax.f32 %v1915_v29, 0.0  ;;  %v1920_v49 = vmax.f32 %v1916_v32, 0.0  ;;  %v1917_v50 = vmax.f32 %v1913_v30, 0.0  ;;  %v1918_v51 = vmax.f32 %v1914_v46, 0.0  ;;  %4513 = vmatpush3.bf16.msra.mxu1 %v4797_v35 }
 0x97d   :  { %4514 = vmatprep.subr.bf16.mxu1 %v4798_v24 }
 0x97e   :  { %v1924_v52 = vrot.slane %v1920_v49, 7  ;;  %v1936_v54 = vrot.slane %v1920_v49, 1  ;;  %v4721_v55 = vpack.i.bf16 %v1920_v49, %v1919_v48  ;;  %v1923_v56 = vrot.slane %v1919_v48, 7 }
 0x97f   :  { %v1935_v45 = vrot.slane %v1919_v48, 1  ;;  %v1922_v19 = vrot.slane %v1918_v51, 7  ;;  %v1934_v17 = vrot.slane %v1918_v51, 1  ;;  %v4716_v57 = vpack.i.bf16 %v1918_v51, %v1917_v50 }
 0x980   :  { %4722 = vrot.lane.b32.xlu1 %v4721_v55, %s5494_s1  ;;  %v1921_v39 = vrot.slane %v1917_v50, 7  ;;  %v1933_v58 = vrot.slane %v1917_v50, 1  ;;  %v1925_v59 = vsel %vm585_vm2, %v1923_v56, %v1924_v52  ;;  %4515 = vmatpush3.bf16.msra.mxu1 %v4798_v24 }
 0x981   :  { %4717 = vrot.lane.b32.xlu0 %v4716_v57, %s5494_s1  ;;  %v1938_v60 = vsel %vm598_vm4, %v1934_v17, %v1935_v45  ;;  %v1937_v61 = vsel %vm598_vm4, %v1935_v45, %v1936_v54  ;;  %v1926_v62 = vsel %vm585_vm2, %v1922_v19, %v1923_v56  ;;  %4516 = vmatprep.subr.bf16.mxu1 %v4799_v20 }
 0x982   :  { %v1939_v5 = vsel %vm598_vm4, %v1933_v58, %v1934_v17  ;;  %v1942_v7 = vmul.f32 %v5837_v38, %v1938_v60  ;;  %v1927_v8 = vsel %vm585_vm2, %v1921_v39, %v1922_v19  ;;  %v1928_v9 = vsel %vm585_vm2, %v1924_v52, %v1921_v39 }
 0x983   :  { %v1940_v11 = vsel %vm598_vm4, %v1936_v54, %v1933_v58  ;;  %v1931_v18 = vmul.f32 %v5829_v31, %v1926_v62  ;;  %v1929_v0 = vmul.f32 %v5813_v10, %v1928_v9 }
 0x984   :  { %v1966_v4 = vpack.c.bf16 %v1942_v7, %v1939_v5  ;;  %v1944_v13 = vmul.f32 %v5844_v42, %v1940_v11  ;;  %4517 = vmatpush3.bf16.msra.mxu1 %v4799_v20 }
 0x985   :  { %2463 = vmatprep.subr.bf16.mxu1 %v5508_v53 }
 0x986   :  { %4198 = vmatprep.mubr.msk.bf16.mxu0 %vm783_vm8, %v1966_v4  ;;  %v1968_v2 = vpack.c.bf16 %v1944_v13, %v1937_v61 }
 0x9f2   :  { %v4723_v3 = vpop.permute.xlu1 %4722 }
 0x9f3   :  { %v4725_v14 = vunpack.i.h.bf16 %v4723_v3  ;;  %v4724_v15 = vunpack.i.l.bf16 %v4723_v3  ;;  %v4718_v16 = vpop.permute.xlu0 %4717 }
 0x9f4   :  { %v4720_v6 = vunpack.i.h.bf16 %v4718_v16  ;;  %v4719_v12 = vunpack.i.l.bf16 %v4718_v16 }
 0x9f5   :  { %v1963_v33 = vsel %vm783_vm8, %v1931_v18, %v4724_v15  ;;  %v1964_v21 = vsel %vm783_vm8, %v1925_v59, %v4725_v14 }
 0x9f6   :  { %v1961_v22 = vsel %vm783_vm8, %v1929_v0, %v4719_v12  ;;  %v1962_v25 = vsel %vm783_vm8, %v1927_v8, %v4720_v6  ;;  %v1967_v27 = vpack.c.bf16 %v1964_v21, %v1963_v33 }
 0x9f7   :  { %v1965_v28 = vpack.c.bf16 %v1962_v25, %v1961_v22  ;;  %v1679_v22 = vld [vmem:[#allocation23] sm:$0x1] }
 0x9f9   :  { %2080 = vmatmul.mubr.bf16.vlgmr.msra.gmra.mrb[20].mxu0 %v1965_v28  ;;  %v1680_v28 = vld [vmem:[#allocation25] sm:$0x1] }
 0x9fa   :  { %4199 = vmatprep.mubr.msk.bf16.mxu0 %vm783_vm8, %v1968_v2 }
 0xa01   :  { %2088 = vmatmul.mubr.bf16.gmra.mrb[24].mxu0 %v1967_v27 }
 0xacc   :  { %v2081_v63 = vpop.f32.mrb[20].mxu0 }
 0xacd   :  { %v2083_v40 = vpop.f32.mrb[21].mxu0  ;;  %v2096_v43 = vsel %vm783_vm8, %v2081_v63, 0.0 }
 0xace   :  { %v2084_v41 = vpop.f32.mrb[22].mxu0 }
 0xacf   :  { %v2097_v44 = vsel %vm783_vm8, %v2084_v41, 0.0  ;;  %v2086_v32 = vpop.f32.mrb[23].mxu0 }
 0xad0   :  { %v2098_v29 = vadd.f32 %v2097_v44, %v2096_v43 }
 0xad4   :  { %v2089_v30 = vpop.f32.mrb[24].mxu0 }
 0xad5   :  { %v2099_v46 = vsel %vm783_vm8, %v2089_v30, 0.0  ;;  %v2091_v48 = vpop.f32.mrb[25].mxu0 }
 0xad6   :  { %v2100_v49 = vadd.f32 %v2099_v46, %v2098_v29  ;;  %v2092_v50 = vpop.f32.mrb[26].mxu0 }
 0xad7   :  { %v2101_v51 = vsel %vm783_vm8, %v2092_v50, 0.0  ;;  %v2094_v52 = vpop.f32.mrb[27].mxu0 }
 0xad8   :  { %v2102_v54 = vadd.f32 %v2101_v51, %v2100_v49 }
 0xada   :  { %v2103_v55 = vrot.slane %v2102_v54, 4 }
 0xadc   :  { %v2104_v56 = vadd.f32 %v2103_v55, %v2102_v54 }
 0xade   :  { %v2105_v45 = vrot.slane %v2104_v56, 2 }
 0xae0   :  { %v2106_v19 = vadd.f32 %v2105_v45, %v2104_v56 }
 0xae2   :  { %v2107_v17 = vrot.slane %v2106_v19, 1 }
 0xae4   :  { %v2108_v57 = vadd.f32 %v2107_v17, %v2106_v19 }
 0xae6   :  { %v2109_v39 = vmul.f32 0.03125, %v2108_v57 }
 0xae8   :  { %v2110_v58 = vsub.f32 %v2081_v63, %v2109_v39  ;;  %v2111_v59 = vsub.f32 %v2084_v41, %v2109_v39  ;;  %v2112_v60 = vsub.f32 %v2089_v30, %v2109_v39  ;;  %v2113_v61 = vsub.f32 %v2092_v50, %v2109_v39 }
 0xaea   :  { %v2114_v62 = vmul.f32 %v2110_v58, %v2110_v58  ;;  %v2115_v5 = vmul.f32 %v2111_v59, %v2111_v59  ;;  %v2116_v7 = vmul.f32 %v2112_v60, %v2112_v60  ;;  %v2117_v8 = vmul.f32 %v2113_v61, %v2113_v61  ;;  %v4800_v59 = vld [vmem:[#allocation26] sm:$0xff]  }
 0xaec   :  { %v2118_v9 = vsel %vm783_vm8, %v2114_v62, 0.0  ;;  %v2119_v11 = vsel %vm783_vm8, %v2115_v5, 0.0  ;;  %v2121_v13 = vsel %vm783_vm8, %v2116_v7, 0.0  ;;  %v2123_v3 = vsel %vm783_vm8, %v2117_v8, 0.0 }
 0xaed   :  { %v2120_v4 = vadd.f32 %v2119_v11, %v2118_v9  ;;  %v4801_v11 = vld [vmem:[#allocation26 + $0x8] sm:$0xff]  }
 0xaef   :  { %v2122_v2 = vadd.f32 %v2121_v13, %v2120_v4 }
 0xaf1   :  { %v2124_v14 = vadd.f32 %v2123_v3, %v2122_v2 }
 0xaf3   :  { %v2125_v15 = vrot.slane %v2124_v14, 4 }
 0xaf5   :  { %v2126_v16 = vadd.f32 %v2125_v15, %v2124_v14 }
 0xaf7   :  { %v2127_v18 = vrot.slane %v2126_v16, 2 }
 0xaf9   :  { %v2128_v6 = vadd.f32 %v2127_v18, %v2126_v16  ;;  %v4802_v16 = vld [vmem:[#allocation26 + $0x10] sm:$0xff]   ;;  %v4803_v18 = vld [vmem:[#allocation26 + $0x18] sm:$0xff]  }
 0xafb   :  { %v2129_v12 = vrot.slane %v2128_v6, 1 }
 0xafd   :  { %v2130_v0 = vadd.f32 %v2129_v12, %v2128_v6  ;;  %v4804_v6 = vld [vmem:[#allocation26 + $0x20] sm:$0xff]   ;;  %v4805_v12 = vld [vmem:[#allocation26 + $0x28] sm:$0xff]  }
 0xaff   :  { %v2131_v33 = vmul.f32 0.03125, %v2130_v0  ;;  %v4806_v0 = vld [vmem:[#allocation26 + $0x30] sm:$0xff]  }
 0xb01   :  { %v2132_v21 = vadd.f32 1e-05, %v2131_v33  ;;  %v4807_v33 = vld [vmem:[#allocation26 + $0x38] sm:$0xff]  }
 0xb03   :  { %4934 = vrsqrt.f32 %v2132_v21  ;;  %v4808_v21 = vld [vmem:[#allocation26 + $0x40] sm:$0xff]  }
 0xb0d   :  { %v4935_v25 = vpop.eup %4934 }
 0xb0e   :  { %v2134_v27 = vmul.f32 %v4935_v25, %v1679_v22  ;;  %v4809_v22 = vld [vmem:[#allocation26 + $0x48] sm:$0xff]   ;;  %v4810_v25 = vld [vmem:[#allocation26 + $0x50] sm:$0xff]  }
 0xb10   :  { %v2135_v34 = vmul.f32 %v2134_v27, %v2109_v39  ;;  %v2141_v35 = vrot.slane %v2134_v27, %v5892_v47  ;;  %v4811_v27 = vld [vmem:[#allocation26 + $0x58] sm:$0xff]  }
 0xb12   :  { %v2136_v24 = vsub.f32 %v1680_v28, %v2135_v34  ;;  %v2146_v20 = vmul.f32 %v2141_v35, %v2092_v50  ;;  %v2145_v40 = vmul.f32 %v2141_v35, %v2089_v30  ;;  %v2143_v43 = vmul.f32 %v2141_v35, %v2081_v63 }
 0xb13   :  { %v2144_v44 = vmul.f32 %v2141_v35, %v2084_v41 }
 0xb14   :  { %v2151_v32 = vrot.slane %v2136_v24, %v5892_v47 }
 0xb16   :  { %v2156_v29 = vadd.f32 %v2151_v32, %v2146_v20  ;;  %v2155_v46 = vadd.f32 %v2151_v32, %v2145_v40  ;;  %v2153_v48 = vadd.f32 %v2151_v32, %v2143_v43  ;;  %v2154_v49 = vadd.f32 %v2151_v32, %v2144_v44 }
 0xb18   :  { %v2160_v51 = vadd.f32 %v2156_v29, %v6119_v37  ;;  %v2159_v52 = vadd.f32 %v2155_v46, %v6121_v23  ;;  %v2157_v54 = vadd.f32 %v2153_v48, %v6123_v26  ;;  %v2158_v55 = vadd.f32 %v2154_v49, %v6125_v36 }
 0xb1a   :  { %v2164_v56 = vmax.f32 %v2160_v51, 0.0  ;;  %v2163_v45 = vmax.f32 %v2159_v52, 0.0  ;;  %v2161_v50 = vmax.f32 %v2157_v54, 0.0  ;;  %v2162_v30 = vmax.f32 %v2158_v55, 0.0 }
 0xb1c   :  { %v4731_v63 = vpack.i.bf16 %v2164_v56, %v2163_v45  ;;  %v4726_v41 = vpack.i.bf16 %v2162_v30, %v2161_v50  ;;  %v2250_v19 = vpack.c.bf16 %v2162_v30, %v2161_v50  ;;  %v2251_v17 = vpack.c.bf16 %v2164_v56, %v2163_v45 }
 0xb1d   :  { %v2349_v57 = vrot.slane %v2161_v50, 1  ;;  %v2350_v39 = vrot.slane %v2162_v30, 1  ;;  %v2351_v58 = vrot.slane %v2163_v45, 1  ;;  %v2338_v60 = vrot.slane %v2162_v30, 7 }
 0xb1e   :  { %4732 = vrot.lane.b32.xlu1 %v4731_v63, %s5494_s1  ;;  %4727 = vrot.lane.b32.xlu0 %v4726_v41, %s5494_s1  ;;  %v2340_v37 = vrot.slane %v2164_v56, 7  ;;  %v2337_v23 = vrot.slane %v2161_v50, 7  ;;  %v2352_v26 = vrot.slane %v2164_v56, 1  ;;  %v2339_v36 = vrot.slane %v2163_v45, 7  ;;  %s6608_s1 = sld [smem:[#allocation57_spill]] }
 0xb1f   :  { %4518 = vmatprep.mubr.msk.bf16.mxu1 %vm783_vm8, %v2250_v19  ;;  %v2354_v61 = vsel %vm598_vm4, %v2350_v39, %v2351_v58  ;;  %v2355_v62 = vsel %vm598_vm4, %v2349_v57, %v2350_v39 }
 0xb20   :  { %4519 = vmatmul.mubr.msk.bf16.vlgmr.msra.gmra.mrb[20].mxu1 %vm783_vm8, %v2251_v17  ;;  %v2358_v5 = vmul.f32 %v5837_v38, %v2354_v61  ;;  %v2343_v7 = vsel %vm585_vm2, %v2337_v23, %v2338_v60  ;;  %v2344_v8 = vsel %vm585_vm2, %v2340_v37, %v2337_v23  ;;  %v2353_v9 = vsel %vm598_vm4, %v2351_v58, %v2352_v26 }
 0xb21   :  { %2464 = vmatpush1.bf16.msra.mxu1 %v4800_v59  ;;  %v2356_v4 = vsel %vm598_vm4, %v2352_v26, %v2349_v57  ;;  %v2341_v13 = vsel %vm585_vm2, %v2339_v36, %v2340_v37  ;;  %v2342_v2 = vsel %vm585_vm2, %v2338_v60, %v2339_v36  ;;  %v2345_v35 = vmul.f32 %v5813_v10, %v2344_v8 }
 0xb22   :  { %v2382_v3 = vpack.c.bf16 %v2358_v5, %v2355_v62  ;;  %2465 = vmatprep.subr.bf16.mxu1 %v5508_v53  ;;  %v2360_v14 = vmul.f32 %v5844_v42, %v2356_v4  ;;  %v2347_v24 = vmul.f32 %v5829_v31, %v2342_v2 }
 0xb24   :  { %4219 = vmatprep.mubr.msk.bf16.mxu1 %vm783_vm8, %v2382_v3  ;;  %v2384_v15 = vpack.c.bf16 %v2360_v14, %v2353_v9  ;;  %v4812_v45 = vld [vmem:[%s6608_s1 + $0x40] sm:$0xff]   ;;  %v4814_v30 = vld [vmem:[%s6608_s1 + $0x48] sm:$0xff]   ;;  %v4816_v41 = vld [vmem:[%s6608_s1 + $0x50] sm:$0xff]  }
 0xb25   :  { %2466 = vmatpush1.bf16.msra.mxu1 %v4801_v11  ;;  %v4813_v50 = vld [vmem:[%s6608_s1] sm:$0xff]   ;;  %4344 = vmatprep.subr.bf16.mxu0 %v4812_v45  ;;  %v4815_v63 = vld [vmem:[%s6608_s1 + $0x8] sm:$0xff]   ;;  %v4817_v19 = vld [vmem:[%s6608_s1 + $0x10] sm:$0xff]  }
 0xb26   :  { %2467 = vmatprep.subr.bf16.mxu1 %v5508_v53  ;;  %4345 = vmatpush3.bf16.msra.mxu0 %v4813_v50  ;;  %v4818_v17 = vld [vmem:[%s6608_s1 + $0x58] sm:$0xff]   ;;  %v4820_v39 = vld [vmem:[%s6608_s1 + $0x60] sm:$0xff]   ;;  %v4822_v59 = vld [vmem:[%s6608_s1 + $0x68] sm:$0xff]  }
 0xb27   :  { %4346 = vmatprep.subr.bf16.mxu0 %v4814_v30  ;;  %v4819_v57 = vld [vmem:[%s6608_s1 + $0x18] sm:$0xff]   ;;  %v4821_v58 = vld [vmem:[%s6608_s1 + $0x20] sm:$0xff]   ;;  %v4823_v60 = vld [vmem:[%s6608_s1 + $0x28] sm:$0xff]  }
 0xb28   :  { %v4824_v37 = vld [vmem:[%s6608_s1 + $0x70] sm:$0xff]   ;;  %v4826_v26 = vld [vmem:[%s6608_s1 + $0x78] sm:$0xff]   ;;  %v6313_v61 = vld [vmem:[%s6608_s1 + $0x80] sm:$0xff]  }
 0xb29   :  { %2468 = vmatpush1.bf16.msra.mxu1 %v4802_v16  ;;  %v4825_v23 = vld [vmem:[%s6608_s1 + $0x30] sm:$0xff]   ;;  %v4827_v36 = vld [vmem:[%s6608_s1 + $0x38] sm:$0xff]   ;;  %v2189_v50 = vld [vmem:[#allocation28] sm:$0x1] }
 0xb2a   :  { %2469 = vmatprep.subr.bf16.mxu1 %v5508_v53  ;;  %4347 = vmatpush3.bf16.msra.mxu0 %v4815_v63 }
 0xb2b   :  { %4348 = vmatprep.subr.bf16.mxu0 %v4816_v41  ;;  %v2190_v41 = vld [vmem:[#allocation29] sm:$0x1] }
 0xb2d   :  { %2470 = vmatpush1.bf16.msra.mxu1 %v4803_v18 }
 0xb2e   :  { %2471 = vmatprep.subr.bf16.mxu1 %v5508_v53  ;;  %4349 = vmatpush3.bf16.msra.mxu0 %v4817_v19 }
 0xb2f   :  { %4350 = vmatprep.subr.bf16.mxu0 %v4818_v17 }
 0xb31   :  { %2472 = vmatpush1.bf16.msra.mxu1 %v4804_v6 }
 0xb32   :  { %2473 = vmatprep.subr.bf16.mxu1 %v5508_v53  ;;  %4351 = vmatpush3.bf16.msra.mxu0 %v4819_v57 }
 0xb33   :  { %4352 = vmatprep.subr.bf16.mxu0 %v4820_v39 }
 0xb35   :  { %2474 = vmatpush1.bf16.msra.mxu1 %v4805_v12 }
 0xb36   :  { %2475 = vmatprep.subr.bf16.mxu1 %v5508_v53  ;;  %4353 = vmatpush3.bf16.msra.mxu0 %v4821_v58 }
 0xb37   :  { %4354 = vmatprep.subr.bf16.mxu0 %v4822_v59 }
 0xb39   :  { %2476 = vmatpush1.bf16.msra.mxu1 %v4806_v0 }
 0xb3a   :  { %2477 = vmatprep.subr.bf16.mxu1 %v5508_v53  ;;  %4355 = vmatpush3.bf16.msra.mxu0 %v4823_v60 }
 0xb3b   :  { %4356 = vmatprep.subr.bf16.mxu0 %v4824_v37 }
 0xb3d   :  { %2478 = vmatpush1.bf16.msra.mxu1 %v4807_v33 }
 0xb3e   :  { %2479 = vmatprep.subr.bf16.mxu1 %v5508_v53  ;;  %4357 = vmatpush3.bf16.msra.mxu0 %v4825_v23 }
 0xb3f   :  { %4358 = vmatprep.subr.bf16.mxu0 %v4826_v26 }
 0xb41   :  { %2480 = vmatpush1.bf16.msra.mxu1 %v4808_v21 }
 0xb42   :  { %2481 = vmatprep.subr.bf16.mxu1 %v5508_v53  ;;  %4359 = vmatpush3.bf16.msra.mxu0 %v4827_v36 }
 0xb43   :  { %4522 = vmatprep.subr.bf16.mxu0 %v6313_v61 }
 0xb45   :  { %2482 = vmatpush1.bf16.msra.mxu1 %v4809_v22 }
 0xb46   :  { %2483 = vmatprep.subr.bf16.mxu1 %v5508_v53 }
 0xb49   :  { %2484 = vmatpush1.bf16.msra.mxu1 %v4810_v25 }
 0xb4a   :  { %2485 = vmatprep.subr.bf16.mxu1 %v5508_v53 }
 0xb4d   :  { %2486 = vmatpush1.bf16.msra.mxu1 %v4811_v27 }
 0xb90   :  { %v4733_v28 = vpop.permute.xlu1 %4732  ;;  %v4728_v34 = vpop.permute.xlu0 %4727 }
 0xb91   :  { %v4735_v20 = vunpack.i.h.bf16 %v4733_v28  ;;  %v4734_v40 = vunpack.i.l.bf16 %v4733_v28  ;;  %v4730_v43 = vunpack.i.h.bf16 %v4728_v34  ;;  %v4729_v44 = vunpack.i.l.bf16 %v4728_v34 }
 0xb93   :  { %v2377_v32 = vsel %vm783_vm8, %v2345_v35, %v4729_v44  ;;  %v2378_v29 = vsel %vm783_vm8, %v2343_v7, %v4730_v43  ;;  %v2379_v46 = vsel %vm783_vm8, %v2347_v24, %v4734_v40  ;;  %v2380_v48 = vsel %vm783_vm8, %v2341_v13, %v4735_v20 }
 0xb94   :  { %v2381_v49 = vpack.c.bf16 %v2378_v29, %v2377_v32  ;;  %v2383_v51 = vpack.c.bf16 %v2380_v48, %v2379_v46 }
 0xb96   :  { %2496 = vmatmul.mubr.bf16.vlgmr.msra.gmra.mrb[24].mxu1 %v2381_v49 }
 0xb97   :  { %4220 = vmatprep.mubr.msk.bf16.mxu1 %vm783_vm8, %v2384_v15 }
 0xb9e   :  { %2504 = vmatmul.mubr.bf16.gmra.mrb[28].mxu1 %v2383_v51 }
 0xbf3   :  { %v6288_v52 = vpop.f32.mrb[20].mxu1 }
 0xbf4   :  { %v6290_v54 = vpop.f32.mrb[21].mxu1 }
 0xbf5   :  { %v6292_v55 = vpop.f32.mrb[22].mxu1 }
 0xbf6   :  { %v6294_v56 = vpop.f32.mrb[23].mxu1 }
 0xc69   :  { %v2497_v62 = vpop.f32.mrb[24].mxu1 }
 0xc6a   :  { %v2499_v5 = vpop.f32.mrb[25].mxu1 }
 0xc6b   :  { %v2500_v7 = vpop.f32.mrb[26].mxu1 }
 0xc6c   :  { %v2512_v8 = vadd.f32 %v2500_v7, %v2497_v62  ;;  %v2502_v9 = vpop.f32.mrb[27].mxu1 }
 0xc71   :  { %v2505_v11 = vpop.f32.mrb[28].mxu1 }
 0xc72   :  { %v2513_v4 = vadd.f32 %v2512_v8, %v2505_v11  ;;  %v2507_v13 = vpop.f32.mrb[29].mxu1 }
 0xc73   :  { %v2508_v2 = vpop.f32.mrb[30].mxu1 }
 0xc74   :  { %v2514_v3 = vadd.f32 %v2513_v4, %v2508_v2  ;;  %v2510_v14 = vpop.f32.mrb[31].mxu1 }
 0xc76   :  { %v2515_v15 = vrot.slane %v2514_v3, 4 }
 0xc78   :  { %v2516_v16 = vadd.f32 %v2515_v15, %v2514_v3 }
 0xc7a   :  { %v2517_v18 = vrot.slane %v2516_v16, 2 }
 0xc7c   :  { %v2518_v6 = vadd.f32 %v2517_v18, %v2516_v16 }
 0xc7e   :  { %v2519_v12 = vrot.slane %v2518_v6, 1 }
 0xc80   :  { %v2520_v0 = vadd.f32 %v2519_v12, %v2518_v6 }
 0xc82   :  { %v2521_v33 = vmul.f32 0.03125, %v2520_v0 }
 0xc84   :  { %v2522_v21 = vsub.f32 %v2497_v62, %v2521_v33  ;;  %v2523_v22 = vsub.f32 %v2500_v7, %v2521_v33  ;;  %v2524_v25 = vsub.f32 %v2505_v11, %v2521_v33  ;;  %v2525_v27 = vsub.f32 %v2508_v2, %v2521_v33 }
 0xc86   :  { %v2526_v28 = vmul.f32 %v2522_v21, %v2522_v21  ;;  %v2527_v34 = vmul.f32 %v2523_v22, %v2523_v22  ;;  %v2528_v35 = vmul.f32 %v2524_v25, %v2524_v25  ;;  %v2529_v20 = vmul.f32 %v2525_v27, %v2525_v27 }
 0xc88   :  { %v2530_v24 = vadd.f32 %v2527_v34, %v2526_v28 }
 0xc8a   :  { %v2531_v40 = vadd.f32 %v2530_v24, %v2528_v35 }
 0xc8c   :  { %v2532_v43 = vadd.f32 %v2531_v40, %v2529_v20  ;;  %v4829_v20 = vld [vmem:[%s6608_s1 + $0x88] sm:$0xff]  }
 0xc8e   :  { %v2533_v44 = vrot.slane %v2532_v43, 4 }
 0xc90   :  { %v2534_v32 = vadd.f32 %v2533_v44, %v2532_v43 }
 0xc92   :  { %v2535_v29 = vrot.slane %v2534_v32, 2 }
 0xc94   :  { %v2536_v46 = vadd.f32 %v2535_v29, %v2534_v32 }
 0xc96   :  { %v2537_v48 = vrot.slane %v2536_v46, 1 }
 0xc98   :  { %v2538_v49 = vadd.f32 %v2537_v48, %v2536_v46  ;;  %v4830_v46 = vld [vmem:[%s6608_s1 + $0x90] sm:$0xff]   ;;  %v4831_v48 = vld [vmem:[%s6608_s1 + $0x98] sm:$0xff]  }
 0xc9a   :  { %v2539_v51 = vmul.f32 0.03125, %v2538_v49  ;;  %v4832_v49 = vld [vmem:[%s6608_s1 + $0xa0] sm:$0xff]  }
 0xc9c   :  { %v2540_v45 = vadd.f32 1e-05, %v2539_v51  ;;  %v4833_v51 = vld [vmem:[%s6608_s1 + $0xa8] sm:$0xff]  }
 0xc9e   :  { %4936 = vrsqrt.f32 %v2540_v45  ;;  %v4835_v45 = vld [vmem:[%s6608_s1 + $0xb8] sm:$0xff]  }
 0xca8   :  { %v4937_v30 = vpop.eup %4936 }
 0xca9   :  { %v2542_v63 = vmul.f32 %v4937_v30, %v2189_v50  ;;  %v4836_v50 = vld [vmem:[%s6609_s0 + $0x40] sm:$0xff]  }
 0xcaa   :  { %v4837_v30 = vld [vmem:[%s6609_s0] sm:$0xff]   ;;  %4382 = vmatprep.subr.bf16.mxu1 %v4836_v50 }
 0xcab   :  { %v2543_v19 = vmul.f32 %v2542_v63, %v2521_v33  ;;  %v2549_v17 = vrot.slane %v2542_v63, %v5892_v47  ;;  %v4838_v63 = vld [vmem:[%s6609_s0 + $0x80] sm:$0xff]   ;;  %4383 = vmatpush3.bf16.msra.mxu1 %v4837_v30 }
 0xcad   :  { %v2544_v57 = vsub.f32 %v2190_v41, %v2543_v19  ;;  %v2554_v39 = vmul.f32 %v2549_v17, %v2508_v2  ;;  %v2551_v58 = vmul.f32 %v2549_v17, %v2497_v62  ;;  %v2552_v59 = vmul.f32 %v2549_v17, %v2500_v7  ;;  %v4839_v41 = vld [vmem:[%s6609_s0 + $0x48] sm:$0xff]  }
 0xcae   :  { %v2553_v60 = vmul.f32 %v2549_v17, %v2505_v11  ;;  %v4840_v19 = vld [vmem:[%s6609_s0 + $0x8] sm:$0xff]   ;;  %4384 = vmatprep.subr.bf16.mxu1 %v4839_v41 }
 0xcaf   :  { %v2559_v37 = vrot.slane %v2544_v57, %v5892_v47  ;;  %v4841_v17 = vld [vmem:[%s6609_s0 + $0x88] sm:$0xff]   ;;  %4385 = vmatpush3.bf16.msra.mxu1 %v4840_v19  ;;  %v4842_v57 = vld [vmem:[%s6609_s0 + $0x50] sm:$0xff]  }
 0xcb0   :  { %4386 = vmatprep.subr.bf16.mxu1 %v4842_v57 }
 0xcb1   :  { %v2564_v23 = vadd.f32 %v2559_v37, %v2554_v39  ;;  %v2561_v26 = vadd.f32 %v2559_v37, %v2551_v58  ;;  %v2562_v36 = vadd.f32 %v2559_v37, %v2552_v59  ;;  %v2563_v5 = vadd.f32 %v2559_v37, %v2553_v60  ;;  %v4843_v39 = vld [vmem:[%s6609_s0 + $0x10] sm:$0xff]   ;;  %v4845_v59 = vld [vmem:[%s6609_s0 + $0x58] sm:$0xff]  }
 0xcb2   :  { %v4844_v58 = vld [vmem:[%s6609_s0 + $0x90] sm:$0xff]   ;;  %v4846_v60 = vld [vmem:[%s6609_s0 + $0x18] sm:$0xff]  }
 0xcb3   :  { %v2568_v8 = vmax.f32 %v2564_v23, 0.0  ;;  %v2565_v9 = vmax.f32 %v2561_v26, 0.0  ;;  %v2566_v4 = vmax.f32 %v2562_v36, 0.0  ;;  %v2567_v13 = vmax.f32 %v2563_v5, 0.0  ;;  %4387 = vmatpush3.bf16.msra.mxu1 %v4843_v39  ;;  %v4847_v37 = vld [vmem:[%s6609_s0 + $0x98] sm:$0xff]   ;;  %v4848_v23 = vld [vmem:[%s6609_s0 + $0x60] sm:$0xff]  }
 0xcb4   :  { %4388 = vmatprep.subr.bf16.mxu1 %v4845_v59  ;;  %v4849_v26 = vld [vmem:[%s6609_s0 + $0x20] sm:$0xff]   ;;  %v4851_v5 = vld [vmem:[%s6609_s0 + $0x68] sm:$0xff]  }
 0xcb5   :  { %v2572_v3 = vrot.slane %v2568_v8, 7  ;;  %v2584_v14 = vrot.slane %v2568_v8, 1  ;;  %v2569_v15 = vrot.slane %v2565_v9, 7  ;;  %v2570_v16 = vrot.slane %v2566_v4, 7  ;;  %v4850_v36 = vld [vmem:[%s6609_s0 + $0xa0] sm:$0xff]  }
 0xcb6   :  { %v2594_v18 = vpack.c.bf16 %v2566_v4, %v2565_v9  ;;  %v2597_v6 = vpack.c.bf16 %v2568_v8, %v2567_v13  ;;  %v2571_v2 = vrot.slane %v2567_v13, 7  ;;  %v2581_v62 = vrot.slane %v2565_v9, 1  ;;  %v4852_v8 = vld [vmem:[%s6609_s0 + $0x28] sm:$0xff]  }
 0xcb7   :  { %v2575_v7 = vsel %vm585_vm2, %v2569_v15, %v2570_v16  ;;  %v2576_v11 = vsel %vm585_vm2, %v2572_v3, %v2569_v15  ;;  %v2582_v12 = vrot.slane %v2566_v4, 1  ;;  %v2583_v0 = vrot.slane %v2567_v13, 1  ;;  %4389 = vmatpush3.bf16.msra.mxu1 %v4846_v60  ;;  %v4853_v9 = vld [vmem:[%s6609_s0 + $0xa8] sm:$0xff]   ;;  %v4854_v4 = vld [vmem:[%s6609_s0 + $0x70] sm:$0xff]   ;;  %v4858_v15 = vld [vmem:[%s6609_s0 + $0x38] sm:$0xff]  }
 0xcb8   :  { %2775 = vmatprep.mubr.bf16.mxu0 %v2594_v18  ;;  %v2577_v33 = vmul.f32 %v5813_v10, %v2576_v11  ;;  %v2573_v21 = vsel %vm585_vm2, %v2571_v2, %v2572_v3  ;;  %v2574_v22 = vsel %vm585_vm2, %v2570_v16, %v2571_v2  ;;  %v2588_v25 = vsel %vm598_vm4, %v2584_v14, %v2581_v62  ;;  %v4855_v13 = vld [vmem:[%s6609_s0 + $0x30] sm:$0xff]   ;;  %v4859_v16 = vld [vmem:[%s6609_s0 + $0xb8] sm:$0xff]  }
 0xcb9   :  { %v2579_v27 = vmul.f32 %v5829_v31, %v2574_v22  ;;  %v2586_v28 = vsel %vm598_vm4, %v2582_v12, %v2583_v0  ;;  %v2587_v34 = vsel %vm598_vm4, %v2581_v62, %v2582_v12  ;;  %v2585_v35 = vsel %vm598_vm4, %v2583_v0, %v2584_v14  ;;  %4390 = vmatprep.subr.bf16.mxu1 %v4848_v23  ;;  %v4856_v3 = vld [vmem:[%s6609_s0 + $0xb0] sm:$0xff]   ;;  %v4857_v14 = vld [vmem:[%s6609_s0 + $0x78] sm:$0xff]  }
 0xcba   :  { %v2593_v24 = vpack.c.bf16 %v2575_v7, %v2577_v33  ;;  %v2590_v40 = vmul.f32 %v5837_v38, %v2586_v28  ;;  %v2592_v43 = vmul.f32 %v5844_v42, %v2588_v25 }
 0xcbb   :  { %v2596_v44 = vpack.c.bf16 %v2573_v21, %v2579_v27  ;;  %4391 = vmatpush3.bf16.msra.mxu1 %v4849_v26 }
 0xcbc   :  { %2776 = vmatmul.mubr.bf16.vlgmr.msra.gmra.mrb[28].mxu0 %v2593_v24  ;;  %v2595_v32 = vpack.c.bf16 %v2590_v40, %v2587_v34  ;;  %v2598_v29 = vpack.c.bf16 %v2592_v43, %v2585_v35  ;;  %4392 = vmatprep.subr.bf16.mxu1 %v4851_v5 }
 0xcbd   :  { %4523 = vmatpush3.bf16.msra.mxu0 %v6313_v61  ;;  %2783 = vmatprep.mubr.bf16.mxu0 %v2597_v6  ;;  %v4834_v61 = vld [vmem:[%s6608_s1 + $0xb0] sm:$0xff]  }
 0xcbe   :  { %4524 = vmatprep.subr.bf16.mxu0 %v4829_v20 }
 0xcbf   :  { %4393 = vmatpush3.bf16.msra.mxu1 %v4852_v8 }
 0xcc0   :  { %4394 = vmatprep.subr.bf16.mxu1 %v4854_v4 }
 0xcc1   :  { %4525 = vmatpush3.bf16.msra.mxu0 %v4829_v20 }
 0xcc2   :  { %4526 = vmatprep.subr.bf16.mxu0 %v4830_v46 }
 0xcc3   :  { %4395 = vmatpush3.bf16.msra.mxu1 %v4855_v13 }
 0xcc4   :  { %2784 = vmatmul.mubr.bf16.gmra.mrb[32].mxu0 %v2596_v44  ;;  %4396 = vmatprep.subr.bf16.mxu1 %v4857_v14 }
 0xcc5   :  { %4527 = vmatpush3.bf16.msra.mxu0 %v4830_v46  ;;  %4538 = vmatprep.mubr.bf16.mxu0 %v2595_v32 }
 0xcc6   :  { %4528 = vmatprep.subr.bf16.mxu0 %v4831_v48 }
 0xcc7   :  { %4397 = vmatpush3.bf16.msra.mxu1 %v4858_v15 }
 0xcc9   :  { %4529 = vmatpush3.bf16.msra.mxu0 %v4831_v48 }
 0xcca   :  { %4530 = vmatprep.subr.bf16.mxu0 %v4832_v49 }
 0xccd   :  { %4531 = vmatpush3.bf16.msra.mxu0 %v4832_v49 }
 0xcce   :  { %4532 = vmatprep.subr.bf16.mxu0 %v4833_v51 }
 0xcd1   :  { %4533 = vmatpush3.bf16.msra.mxu0 %v4833_v51 }
 0xcd2   :  { %4534 = vmatprep.subr.bf16.mxu0 %v4834_v61 }
 0xcd5   :  { %4535 = vmatpush3.bf16.msra.mxu0 %v4834_v61 }
 0xcd6   :  { %4536 = vmatprep.subr.bf16.mxu0 %v4835_v45 }
 0xcd9   :  { %4537 = vmatpush3.bf16.msra.mxu0 %v4835_v45 }
 0xcda   :  { %4542 = vmatprep.subr.bf16.mxu0 %v4838_v63 }
 0xcdc   :  { %4539 = vmatmul.mubr.bf16.vlgmr.msra.gmra.mrb[36].mxu0 %v2598_v29 }
 0xcdd   :  { %4543 = vmatpush3.bf16.msra.mxu0 %v4838_v63 }
 0xcde   :  { %4544 = vmatprep.subr.bf16.mxu0 %v4841_v17 }
 0xce1   :  { %4545 = vmatpush3.bf16.msra.mxu0 %v4841_v17 }
 0xce2   :  { %4546 = vmatprep.subr.bf16.mxu0 %v4844_v58 }
 0xce5   :  { %4547 = vmatpush3.bf16.msra.mxu0 %v4844_v58 }
 0xce6   :  { %4548 = vmatprep.subr.bf16.mxu0 %v4847_v37 }
 0xce9   :  { %4549 = vmatpush3.bf16.msra.mxu0 %v4847_v37 }
 0xcea   :  { %4550 = vmatprep.subr.bf16.mxu0 %v4850_v36 }
 0xced   :  { %4551 = vmatpush3.bf16.msra.mxu0 %v4850_v36 }
 0xcee   :  { %4552 = vmatprep.subr.bf16.mxu0 %v4853_v9 }
 0xcf1   :  { %4553 = vmatpush3.bf16.msra.mxu0 %v4853_v9 }
 0xcf2   :  { %4554 = vmatprep.subr.bf16.mxu0 %v4856_v3 }
 0xcf5   :  { %4555 = vmatpush3.bf16.msra.mxu0 %v4856_v3  ;;  %v2239_v3 = vld [vmem:[#allocation31] sm:$0x1] }
 0xcf6   :  { %4556 = vmatprep.subr.bf16.mxu0 %v4859_v16 }
 0xcf9   :  { %4557 = vmatpush3.bf16.msra.mxu0 %v4859_v16  ;;  %v2240_v16 = vld [vmem:[#allocation32] sm:$0x1] }
 0xd8f   :  { %v4360_v18 = vpop.f32.mrb[28].mxu0 }
 0xd90   :  { %v4361_v6 = vpop.f32.mrb[29].mxu0 }
 0xd91   :  { %v4362_v2 = vadd.f32 %v4361_v6, %v4360_v18  ;;  %v4363_v62 = vpop.f32.mrb[30].mxu0 }
 0xd92   :  { %v4364_v7 = vpop.f32.mrb[31].mxu0 }
 0xd93   :  { %v4365_v11 = vadd.f32 %v4364_v7, %v4363_v62 }
 0xd97   :  { %v4366_v12 = vpop.f32.mrb[32].mxu0 }
 0xd98   :  { %v4367_v0 = vpop.f32.mrb[33].mxu0 }
 0xd99   :  { %v4368_v33 = vadd.f32 %v4367_v0, %v4366_v12  ;;  %v4369_v21 = vpop.f32.mrb[34].mxu0 }
 0xd9a   :  { %v4370_v22 = vpop.f32.mrb[35].mxu0 }
 0xd9b   :  { %v4371_v25 = vadd.f32 %v4370_v22, %v4369_v21 }
 0xdaf   :  { %v4540_v27 = vpop.f32.mrb[36].mxu0 }
 0xdb0   :  { %v2835_v28 = vadd.f32 %v4540_v27, %v4368_v33  ;;  %v2826_v34 = vpop.f32.mrb[37].mxu0 }
 0xdb1   :  { %v2827_v35 = vadd.f32 %v4362_v2, %v2826_v34  ;;  %v4541_v24 = vpop.f32.mrb[38].mxu0  ;;  %v4200_v2 = vld [vmem:[%s6610_s17] ss:$0 sm:$0xff] }
 0xdb2   :  { %v2838_v20 = vadd.f32 %v4541_v24, %v4371_v25  ;;  %v2829_v40 = vpop.f32.mrb[39].mxu0  ;;  %v2331_v21 = vadd.f32 %v6288_v52, %v4200_v2  ;;  %v2323_v22 = vadd.f32 %v4200_v2, %v6290_v54  ;;  %v2334_v25 = vadd.f32 %v6292_v55, %v4200_v2 }
 0xdb3   :  { %v2830_v43 = vadd.f32 %v4365_v11, %v2829_v40  ;;  %v2326_v27 = vadd.f32 %v4200_v2, %v6294_v56  ;;  %v4868_v2 = vld [vmem:[%s6611_s28 + $0x90] sm:$0xff]  }
 0xdb5   :  { %v2841_v44 = vadd.f32 %v2830_v43, %v2827_v35 }
 0xdb7   :  { %v2842_v32 = vadd.f32 %v2841_v44, %v2835_v28 }
 0xdb9   :  { %v2843_v29 = vadd.f32 %v2842_v32, %v2838_v20 }
 0xdbb   :  { %v2844_v46 = vrot.slane %v2843_v29, 4 }
 0xdbd   :  { %v2845_v48 = vadd.f32 %v2844_v46, %v2843_v29 }
 0xdbf   :  { %v2846_v49 = vrot.slane %v2845_v48, 2 }
 0xdc1   :  { %v2847_v51 = vadd.f32 %v2846_v49, %v2845_v48 }
 0xdc3   :  { %v2848_v61 = vrot.slane %v2847_v51, 1 }
 0xdc5   :  { %v2849_v45 = vadd.f32 %v2848_v61, %v2847_v51 }
 0xdc7   :  { %v2850_v50 = vmul.f32 0.03125, %v2849_v45 }
 0xdc9   :  { %v2851_v30 = vsub.f32 %v2827_v35, %v2850_v50  ;;  %v2852_v63 = vsub.f32 %v2830_v43, %v2850_v50  ;;  %v2853_v41 = vsub.f32 %v2835_v28, %v2850_v50  ;;  %v2854_v19 = vsub.f32 %v2838_v20, %v2850_v50 }
 0xdcb   :  { %v2855_v17 = vmul.f32 %v2851_v30, %v2851_v30  ;;  %v2856_v57 = vmul.f32 %v2852_v63, %v2852_v63  ;;  %v2857_v39 = vmul.f32 %v2853_v41, %v2853_v41  ;;  %v2858_v59 = vmul.f32 %v2854_v19, %v2854_v19 }
 0xdcd   :  { %v2859_v58 = vadd.f32 %v2856_v57, %v2855_v17 }
 0xdcf   :  { %v2860_v60 = vadd.f32 %v2859_v58, %v2857_v39 }
 0xdd1   :  { %v2861_v37 = vadd.f32 %v2860_v60, %v2858_v59 }
 0xdd3   :  { %v2862_v23 = vrot.slane %v2861_v37, 4 }
 0xdd5   :  { %v2863_v26 = vadd.f32 %v2862_v23, %v2861_v37 }
 0xdd7   :  { %v2864_v36 = vrot.slane %v2863_v26, 2 }
 0xdd9   :  { %v2865_v5 = vadd.f32 %v2864_v36, %v2863_v26 }
 0xddb   :  { %v2866_v8 = vrot.slane %v2865_v5, 1 }
 0xddd   :  { %v2867_v9 = vadd.f32 %v2866_v8, %v2865_v5 }
 0xddf   :  { %v2868_v4 = vmul.f32 0.03125, %v2867_v9 }
 0xde1   :  { %v2869_v13 = vadd.f32 1e-05, %v2868_v4  ;;  %v4860_v4 = vld [vmem:[%s6611_s28 + $0x40] sm:$0xff]  }
 0xde2   :  { %4420 = vmatprep.subr.bf16.mxu1 %v4860_v4 }
 0xde3   :  { %4938 = vrsqrt.f32 %v2869_v13  ;;  %v4861_v13 = vld [vmem:[%s6611_s28] sm:$0xff]  }
 0xded   :  { %v4939_v14 = vpop.eup %4938 }
 0xdee   :  { %v2871_v15 = vmul.f32 %v4939_v14, %v2239_v3  ;;  %v4862_v3 = vld [vmem:[%s6611_s28 + $0x80] sm:$0xff]   ;;  %v4863_v14 = vld [vmem:[%s6611_s28 + $0x48] sm:$0xff]  }
 0xdef   :  { %4562 = vmatprep.subr.bf16.mxu0 %v4862_v3 }
 0xdf0   :  { %v2872_v18 = vmul.f32 %v2871_v15, %v2850_v50  ;;  %v2878_v6 = vrot.slane %v2871_v15, %v5892_v47  ;;  %v4864_v15 = vld [vmem:[%s6611_s28 + $0x8] sm:$0xff]  }
 0xdf2   :  { %v2873_v62 = vsub.f32 %v2240_v16, %v2872_v18  ;;  %v2881_v7 = vmul.f32 %v2878_v6, %v2830_v43  ;;  %v2882_v11 = vmul.f32 %v2878_v6, %v2835_v28  ;;  %v2883_v12 = vmul.f32 %v2878_v6, %v2838_v20  ;;  %v4865_v16 = vld [vmem:[%s6611_s28 + $0x88] sm:$0xff]   ;;  %v4866_v18 = vld [vmem:[%s6611_s28 + $0x50] sm:$0xff]  }
 0xdf3   :  { %v2880_v0 = vmul.f32 %v2878_v6, %v2827_v35  ;;  %v4867_v6 = vld [vmem:[%s6611_s28 + $0x10] sm:$0xff]  }
 0xdf4   :  { %v2888_v33 = vrot.slane %v2873_v62, %v5892_v47  ;;  %v4869_v62 = vld [vmem:[%s6611_s28 + $0x58] sm:$0xff]  }
 0xdf6   :  { %v2891_v34 = vadd.f32 %v2888_v33, %v2881_v7  ;;  %v2893_v24 = vadd.f32 %v2888_v33, %v2883_v12  ;;  %v2890_v40 = vadd.f32 %v2888_v33, %v2880_v0  ;;  %v2892_v44 = vadd.f32 %v2888_v33, %v2882_v11  ;;  %v4870_v7 = vld [vmem:[%s6611_s28 + $0x18] sm:$0xff]   ;;  %v4872_v12 = vld [vmem:[%s6611_s28 + $0x60] sm:$0xff]  }
 0xdf7   :  { %v4871_v11 = vld [vmem:[%s6611_s28 + $0x98] sm:$0xff]   ;;  %v4873_v0 = vld [vmem:[%s6611_s28 + $0x20] sm:$0xff]  }
 0xdf8   :  { %v2895_v32 = vadd.f32 %v2891_v34, %v2326_v27  ;;  %v2897_v29 = vadd.f32 %v2893_v24, %v2334_v25  ;;  %v2894_v43 = vadd.f32 %v2890_v40, %v2323_v22  ;;  %v2896_v28 = vadd.f32 %v2892_v44, %v2331_v21  ;;  %v4874_v33 = vld [vmem:[%s6611_s28 + $0xa0] sm:$0xff]   ;;  %v4875_v21 = vld [vmem:[%s6611_s28 + $0x68] sm:$0xff]   ;;  %v4878_v27 = vld [vmem:[%s6611_s28 + $0x70] sm:$0xff]  }
 0xdf9   :  { %v4876_v22 = vld [vmem:[%s6611_s28 + $0x28] sm:$0xff]   ;;  %v4879_v34 = vld [vmem:[%s6611_s28 + $0x30] sm:$0xff]   ;;  %v4881_v40 = vld [vmem:[%s6611_s28 + $0x78] sm:$0xff]  }
 0xdfa   :  { %v6377_v20 = vmax.f32 %v2895_v32, 0.0  ;;  %v6379_v35 = vmax.f32 %v2897_v29, 0.0  ;;  %v6381_v46 = vmax.f32 %v2894_v43, 0.0  ;;  %v6383_v52 = vmax.f32 %v2896_v28, 0.0  ;;  %v4877_v25 = vld [vmem:[%s6611_s28 + $0xa8] sm:$0xff]   ;;  %v4880_v24 = vld [vmem:[%s6611_s28 + $0xb0] sm:$0xff]  }
 0xdfb   :  { %v4883_v44 = vld [vmem:[%s6611_s28 + $0xb8] sm:$0xff]  }
 0xdfc   :  { %v3027_v54 = vpack.c.bf16 %v6377_v20, %v6381_v46  ;;  %v3002_v55 = vrot.slane %v6381_v46, 7  ;;  %v3003_v56 = vrot.slane %v6377_v20, 7  ;;  %v3005_v48 = vrot.slane %v6379_v35, 7  ;;  %v4882_v32 = vld [vmem:[%s6611_s28 + $0x38] sm:$0xff]  }
 0xdfd   :  { %v3014_v49 = vrot.slane %v6381_v46, 1  ;;  %v3015_v51 = vrot.slane %v6377_v20, 1  ;;  %v3016_v61 = vrot.slane %v6383_v52, 1  ;;  %v3017_v50 = vrot.slane %v6379_v35, 1 }
 0xdfe   :  { %3208 = vmatprep.mubr.bf16.mxu1 %v3027_v54  ;;  %v3009_v45 = vsel %vm585_vm2, %v3005_v48, %v3002_v55  ;;  %v3004_v30 = vrot.slane %v6383_v52, 7  ;;  %v3008_v19 = vsel %vm585_vm2, %v3002_v55, %v3003_v56  ;;  %v3030_v37 = vpack.c.bf16 %v6379_v35, %v6383_v52 }
 0xdff   :  { %v3010_v63 = vmul.f32 %v5813_v10, %v3009_v45  ;;  %v3019_v41 = vsel %vm598_vm4, %v3015_v51, %v3016_v61  ;;  %v3021_v57 = vsel %vm598_vm4, %v3017_v50, %v3014_v49  ;;  %v3020_v58 = vsel %vm598_vm4, %v3014_v49, %v3015_v51 }
 0xe00   :  { %v3023_v17 = vmul.f32 %v5837_v38, %v3019_v41  ;;  %v3025_v59 = vmul.f32 %v5844_v42, %v3021_v57  ;;  %v3018_v23 = vsel %vm598_vm4, %v3016_v61, %v3017_v50  ;;  %v3007_v26 = vsel %vm585_vm2, %v3003_v56, %v3004_v30 }
 0xe01   :  { %v3026_v39 = vpack.c.bf16 %v3008_v19, %v3010_v63  ;;  %v3012_v5 = vmul.f32 %v5829_v31, %v3007_v26  ;;  %v3006_v8 = vsel %vm585_vm2, %v3004_v30, %v3005_v48 }
 0xe02   :  { %v3028_v60 = vpack.c.bf16 %v3023_v17, %v3020_v58  ;;  %v3031_v36 = vpack.c.bf16 %v3025_v59, %v3018_v23 }
 0xe03   :  { %3209 = vmatmul.mubr.bf16.vlgmr.msra.gmra.mrb[32].mxu1 %v3026_v39  ;;  %v3029_v9 = vpack.c.bf16 %v3006_v8, %v3012_v5 }
 0xe04   :  { %4558 = vmatprep.mubr.bf16.mxu0 %v3028_v60  ;;  %3216 = vmatprep.mubr.bf16.mxu1 %v3030_v37 }
 0xe05   :  { %4559 = vmatmul.mubr.bf16.vlgmr.msra.gmra.mrb[40].mxu0 %v3031_v36  ;;  %4421 = vmatpush3.bf16.msra.mxu1 %v4861_v13 }
 0xe06   :  { %4563 = vmatpush3.bf16.msra.mxu0 %v4862_v3  ;;  %4422 = vmatprep.subr.bf16.mxu1 %v4863_v14 }
 0xe07   :  { %4564 = vmatprep.subr.bf16.mxu0 %v4865_v16 }
 0xe09   :  { %4423 = vmatpush3.bf16.msra.mxu1 %v4864_v15 }
 0xe0a   :  { %4565 = vmatpush3.bf16.msra.mxu0 %v4865_v16  ;;  %4424 = vmatprep.subr.bf16.mxu1 %v4866_v18 }
 0xe0b   :  { %3217 = vmatmul.mubr.bf16.gmra.mrb[36].mxu1 %v3029_v9  ;;  %4566 = vmatprep.subr.bf16.mxu0 %v4868_v2 }
 0xe0d   :  { %4425 = vmatpush3.bf16.msra.mxu1 %v4867_v6 }
 0xe0e   :  { %4567 = vmatpush3.bf16.msra.mxu0 %v4868_v2  ;;  %4426 = vmatprep.subr.bf16.mxu1 %v4869_v62 }
 0xe0f   :  { %4568 = vmatprep.subr.bf16.mxu0 %v4871_v11 }
 0xe11   :  { %4427 = vmatpush3.bf16.msra.mxu1 %v4870_v7 }
 0xe12   :  { %4569 = vmatpush3.bf16.msra.mxu0 %v4871_v11  ;;  %4428 = vmatprep.subr.bf16.mxu1 %v4872_v12 }
 0xe13   :  { %4570 = vmatprep.subr.bf16.mxu0 %v4874_v33 }
 0xe15   :  { %4429 = vmatpush3.bf16.msra.mxu1 %v4873_v0 }
 0xe16   :  { %4571 = vmatpush3.bf16.msra.mxu0 %v4874_v33  ;;  %4430 = vmatprep.subr.bf16.mxu1 %v4875_v21 }
 0xe17   :  { %4572 = vmatprep.subr.bf16.mxu0 %v4877_v25 }
 0xe19   :  { %4431 = vmatpush3.bf16.msra.mxu1 %v4876_v22 }
 0xe1a   :  { %4573 = vmatpush3.bf16.msra.mxu0 %v4877_v25  ;;  %4432 = vmatprep.subr.bf16.mxu1 %v4878_v27 }
 0xe1b   :  { %4574 = vmatprep.subr.bf16.mxu0 %v4880_v24 }
 0xe1d   :  { %4433 = vmatpush3.bf16.msra.mxu1 %v4879_v34 }
 0xe1e   :  { %4575 = vmatpush3.bf16.msra.mxu0 %v4880_v24  ;;  %4434 = vmatprep.subr.bf16.mxu1 %v4881_v40  ;;  %v2950_v24 = vld [vmem:[%s6612_s3] sm:$0x1] }
 0xe1f   :  { %4576 = vmatprep.subr.bf16.mxu0 %v4883_v44 }
 0xe21   :  { %4435 = vmatpush3.bf16.msra.mxu1 %v4882_v32  ;;  %v2951_v32 = vld [vmem:[%s6613_s29] sm:$0x1] }
 0xe22   :  { %4577 = vmatpush3.bf16.msra.mxu0 %v4883_v44 }
 0xed6   :  { %v4398_v29 = vpop.f32.mrb[32].mxu1 }
 0xed7   :  { %v4399_v43 = vpop.f32.mrb[33].mxu1 }
 0xed8   :  { %v4400_v28 = vadd.f32 %v4399_v43, %v4398_v29  ;;  %v4560_v54 = vpop.f32.mrb[40].mxu0  ;;  %v4401_v55 = vpop.f32.mrb[34].mxu1 }
 0xed9   :  { %v3259_v56 = vpop.f32.mrb[41].mxu0  ;;  %v4402_v48 = vpop.f32.mrb[35].mxu1 }
 0xeda   :  { %v3260_v49 = vadd.f32 %v4400_v28, %v3259_v56  ;;  %v4403_v51 = vadd.f32 %v4402_v48, %v4401_v55  ;;  %v4561_v61 = vpop.f32.mrb[42].mxu0 }
 0xedb   :  { %v3262_v45 = vpop.f32.mrb[43].mxu0 }
 0xedc   :  { %v3263_v50 = vadd.f32 %v4403_v51, %v3262_v45 }
 0xede   :  { %v3274_v30 = vadd.f32 %v3263_v50, %v3260_v49  ;;  %v4404_v63 = vpop.f32.mrb[36].mxu1 }
 0xedf   :  { %v4405_v41 = vpop.f32.mrb[37].mxu1 }
 0xee0   :  { %v4406_v19 = vadd.f32 %v4405_v41, %v4404_v63  ;;  %v4407_v17 = vpop.f32.mrb[38].mxu1 }
 0xee1   :  { %v4408_v57 = vpop.f32.mrb[39].mxu1 }
 0xee2   :  { %v3268_v39 = vadd.f32 %v4560_v54, %v4406_v19  ;;  %v4409_v58 = vadd.f32 %v4408_v57, %v4407_v17 }
 0xee4   :  { %v3275_v59 = vadd.f32 %v3274_v30, %v3268_v39  ;;  %v3271_v60 = vadd.f32 %v4561_v61, %v4409_v58 }
 0xee6   :  { %v3276_v37 = vadd.f32 %v3275_v59, %v3271_v60 }
 0xee8   :  { %v3277_v23 = vrot.slane %v3276_v37, 4 }
 0xeea   :  { %v3278_v26 = vadd.f32 %v3277_v23, %v3276_v37 }
 0xeec   :  { %v3279_v36 = vrot.slane %v3278_v26, 2 }
 0xeee   :  { %v3280_v5 = vadd.f32 %v3279_v36, %v3278_v26 }
 0xef0   :  { %v3281_v8 = vrot.slane %v3280_v5, 1 }
 0xef2   :  { %v3282_v9 = vadd.f32 %v3281_v8, %v3280_v5 }
 0xef4   :  { %v3283_v4 = vmul.f32 0.03125, %v3282_v9 }
 0xef6   :  { %v3284_v13 = vsub.f32 %v3260_v49, %v3283_v4  ;;  %v3285_v3 = vsub.f32 %v3263_v50, %v3283_v4  ;;  %v3286_v14 = vsub.f32 %v3268_v39, %v3283_v4  ;;  %v3287_v15 = vsub.f32 %v3271_v60, %v3283_v4 }
 0xef8   :  { %v3288_v16 = vmul.f32 %v3284_v13, %v3284_v13  ;;  %v3289_v18 = vmul.f32 %v3285_v3, %v3285_v3  ;;  %v3290_v6 = vmul.f32 %v3286_v14, %v3286_v14  ;;  %v3291_v62 = vmul.f32 %v3287_v15, %v3287_v15 }
 0xefa   :  { %v3292_v2 = vadd.f32 %v3289_v18, %v3288_v16 }
 0xefc   :  { %v3293_v7 = vadd.f32 %v3292_v2, %v3290_v6 }
 0xefe   :  { %v3294_v11 = vadd.f32 %v3293_v7, %v3291_v62 }
 0xf00   :  { %v3295_v12 = vrot.slane %v3294_v11, 4 }
 0xf02   :  { %v3296_v0 = vadd.f32 %v3295_v12, %v3294_v11  ;;  %v4884_v11 = vld [vmem:[%s6614_s20] ss:$8 sps:$4 sm:$0xff]   ;;  %v4887_v12 = vld [vmem:[%s6614_s20 + $0x10] ss:$8 sps:$4 sm:$0xff]  }
 0xf04   :  { %v3297_v33 = vrot.slane %v3296_v0, 2 }
 0xf06   :  { %v3298_v21 = vadd.f32 %v3297_v33, %v3296_v0  ;;  %v4892_v0 = vld [vmem:[%s6614_s20 + $0x24] ss:$8 sps:$4 sm:$0xff]   ;;  %v4890_v33 = vld [vmem:[%s6614_s20 + $0x20] ss:$8 sps:$4 sm:$0xff]  }
 0xf08   :  { %v3299_v22 = vrot.slane %v3298_v21, 1 }
 0xf0a   :  { %v3300_v25 = vadd.f32 %v3299_v22, %v3298_v21  ;;  %v4895_v21 = vld [vmem:[%s6614_s20 + $0x34] ss:$8 sps:$4 sm:$0xff]   ;;  %v4893_v22 = vld [vmem:[%s6614_s20 + $0x30] ss:$8 sps:$4 sm:$0xff]  }
 0xf0c   :  { %v3301_v27 = vmul.f32 0.03125, %v3300_v25  ;;  %v4898_v25 = vld [vmem:[%s6614_s20 + $0x44] ss:$8 sps:$4 sm:$0xff]  }
 0xf0e   :  { %v3302_v34 = vadd.f32 1e-05, %v3301_v27  ;;  %v4896_v27 = vld [vmem:[%s6614_s20 + $0x40] ss:$8 sps:$4 sm:$0xff]  }
 0xf10   :  { %4940 = vrsqrt.f32 %v3302_v34  ;;  %v4901_v34 = vld [vmem:[%s6614_s20 + $0x54] ss:$8 sps:$4 sm:$0xff]  }
 0xf1a   :  { %v4941_v40 = vpop.eup %4940 }
 0xf1b   :  { %v3304_v44 = vmul.f32 %v4941_v40, %v2950_v24  ;;  %v4899_v24 = vld [vmem:[%s6614_s20 + $0x50] ss:$8 sps:$4 sm:$0xff]   ;;  %v4904_v40 = vld [vmem:[%s6614_s20 + $0x64] ss:$8 sps:$4 sm:$0xff]  }
 0xf1d   :  { %v3305_v29 = vmul.f32 %v3304_v44, %v3283_v4  ;;  %v3311_v43 = vrot.slane %v3304_v44, %v5892_v47  ;;  %v4902_v44 = vld [vmem:[%s6614_s20 + $0x60] ss:$8 sps:$4 sm:$0xff]  }
 0xf1f   :  { %v3306_v28 = vsub.f32 %v2951_v32, %v3305_v29  ;;  %v3316_v54 = vmul.f32 %v3311_v43, %v3271_v60  ;;  %v3313_v55 = vmul.f32 %v3311_v43, %v3260_v49  ;;  %v3314_v56 = vmul.f32 %v3311_v43, %v3263_v50  ;;  %v4907_v32 = vld [vmem:[%s6614_s20 + $0x74] ss:$8 sps:$4 sm:$0xff]   ;;  %v4905_v29 = vld [vmem:[%s6614_s20 + $0x70] ss:$8 sps:$4 sm:$0xff]  }
 0xf20   :  { %v3315_v48 = vmul.f32 %v3311_v43, %v3268_v39  ;;  %v4908_v43 = vld [vmem:[%s5705_s4 + $0x40] sm:$0xff]  }
 0xf21   :  { %v3321_v51 = vrot.slane %v3306_v28, %v5892_v47  ;;  %v6484_v28 = vld [vmem:[%s5705_s4] sm:$0xff]   ;;  %4458 = vmatprep.subr.bf16.mxu0 %v4908_v43 }
 0xf23   :  { %v3326_v61 = vadd.f32 %v3321_v51, %v3316_v54  ;;  %v3323_v45 = vadd.f32 %v3321_v51, %v3313_v55  ;;  %v3324_v30 = vadd.f32 %v3321_v51, %v3314_v56  ;;  %v3325_v63 = vadd.f32 %v3321_v51, %v3315_v48  ;;  %v6487_v54 = vld [vmem:[%s5705_s4 + $0x48] sm:$0xff]   ;;  %v6495_v56 = vld [vmem:[%s5705_s4 + $0x50] sm:$0xff]   ;;  %v6503_v51 = vld [vmem:[%s5705_s4 + $0x58] sm:$0xff]  }
 0xf24   :  { %v6491_v55 = vld [vmem:[%s5705_s4 + $0x8] sm:$0xff]   ;;  %v6499_v48 = vld [vmem:[%s5705_s4 + $0x10] sm:$0xff]  }
 0xf25   :  { %v3330_v41 = vmax.f32 %v3326_v61, 0.0  ;;  %v3327_v19 = vmax.f32 %v3323_v45, 0.0  ;;  %v3328_v17 = vmax.f32 %v3324_v30, 0.0  ;;  %v3329_v57 = vmax.f32 %v3325_v63, 0.0  ;;  %v6507_v61 = vld [vmem:[%s5705_s4 + $0x18] sm:$0xff]   ;;  %v6511_v45 = vld [vmem:[%s5705_s4 + $0x60] sm:$0xff]  }
 0xf26   :  { %v6515_v30 = vld [vmem:[%s5705_s4 + $0x20] sm:$0xff]   ;;  %v6519_v63 = vld [vmem:[%s5705_s4 + $0x68] sm:$0xff]  }
 0xf27   :  { %v3334_v58 = vrot.slane %v3330_v41, 7  ;;  %v3331_v59 = vrot.slane %v3327_v19, 7  ;;  %v3332_v37 = vrot.slane %v3328_v17, 7  ;;  %v3356_v23 = vpack.c.bf16 %v3328_v17, %v3327_v19 }
 0xf28   :  { %v3343_v26 = vrot.slane %v3327_v19, 1  ;;  %v3344_v36 = vrot.slane %v3328_v17, 1  ;;  %v3345_v60 = vrot.slane %v3329_v57, 1  ;;  %v3359_v49 = vpack.c.bf16 %v3330_v41, %v3329_v57 }
 0xf29   :  { %3537 = vmatprep.mubr.bf16.mxu1 %v3356_v23  ;;  %v3337_v50 = vsel %vm585_vm2, %v3331_v59, %v3332_v37  ;;  %v3338_v39 = vsel %vm585_vm2, %v3334_v58, %v3331_v59  ;;  %v3346_v5 = vrot.slane %v3330_v41, 1  ;;  %v3333_v8 = vrot.slane %v3329_v57, 7 }
 0xf2a   :  { %v3339_v9 = vmul.f32 %v5813_v10, %v3338_v39  ;;  %v3348_v4 = vsel %vm598_vm4, %v3344_v36, %v3345_v60  ;;  %v3349_v13 = vsel %vm598_vm4, %v3343_v26, %v3344_v36 }
 0xf2b   :  { %v3352_v3 = vmul.f32 %v5837_v38, %v3348_v4  ;;  %v3347_v14 = vsel %vm598_vm4, %v3345_v60, %v3346_v5  ;;  %v3350_v15 = vsel %vm598_vm4, %v3346_v5, %v3343_v26  ;;  %v3335_v16 = vsel %vm585_vm2, %v3333_v8, %v3334_v58 }
 0xf2c   :  { %v3355_v10 = vpack.c.bf16 %v3337_v50, %v3339_v9  ;;  %v3354_v18 = vmul.f32 %v5844_v42, %v3350_v15  ;;  %v3336_v6 = vsel %vm585_vm2, %v3332_v37, %v3333_v8  ;;  %v4886_v42 = vld [vmem:[%s6614_s20 + $0x4] ss:$8 sps:$4 sm:$0xff]  }
 0xf2d   :  { %v3357_v38 = vpack.c.bf16 %v3352_v3, %v3349_v13  ;;  %v3341_v2 = vmul.f32 %v5829_v31, %v3336_v6  ;;  %3807 = vmatprep.subr.bf16.mxu1 %v4886_v42  ;;  %v4889_v31 = vld [vmem:[%s6614_s20 + $0x14] ss:$8 sps:$4 sm:$0xff]  }
 0xf2e   :  { %3538 = vmatmul.mubr.bf16.vlgmr.msra.gmra.mrb[40].mxu1 %v3355_v10  ;;  %v3360_v62 = vpack.c.bf16 %v3354_v18, %v3347_v14 }
 0xf2f   :  { %4578 = vmatprep.mubr.bf16.mxu0 %v3357_v38  ;;  %3545 = vmatprep.mubr.bf16.mxu1 %v3359_v49  ;;  %v3358_v7 = vpack.c.bf16 %v3335_v16, %v3341_v2 }
 0xf30   :  { %4579 = vmatmul.mubr.bf16.vlgmr.msra.gmra.mrb[44].mxu0 %v3360_v62  ;;  %3808 = vmatpush1.bf16.msra.mxu1 %v4884_v11 }
 0xf31   :  { %3809 = vmatprep.subr.bf16.mxu1 %v4889_v31  ;;  %4459 = vmatpush3.bf16.msra.mxu0 %v6484_v28 }
 0xf32   :  { %4460 = vmatprep.subr.bf16.mxu0 %v6487_v54 }
 0xf34   :  { %3810 = vmatpush1.bf16.msra.mxu1 %v4887_v12 }
 0xf35   :  { %3811 = vmatprep.subr.bf16.mxu1 %v4892_v0  ;;  %4461 = vmatpush3.bf16.msra.mxu0 %v6491_v55 }
 0xf36   :  { %3546 = vmatmul.mubr.bf16.gmra.mrb[44].mxu1 %v3358_v7  ;;  %4462 = vmatprep.subr.bf16.mxu0 %v6495_v56 }
 0xf37   :  { %3839 = vmatprep.mubr.bf16.mxu1 %v5508_v53 }
 0xf38   :  { %3812 = vmatpush1.bf16.msra.mxu1 %v4890_v33 }
 0xf39   :  { %3813 = vmatprep.subr.bf16.mxu1 %v4895_v21  ;;  %4463 = vmatpush3.bf16.msra.mxu0 %v6499_v48 }
 0xf3a   :  { %4464 = vmatprep.subr.bf16.mxu0 %v6503_v51 }
 0xf3c   :  { %3814 = vmatpush1.bf16.msra.mxu1 %v4893_v22 }
 0xf3d   :  { %3815 = vmatprep.subr.bf16.mxu1 %v4898_v25  ;;  %4465 = vmatpush3.bf16.msra.mxu0 %v6507_v61 }
 0xf3e   :  { %4466 = vmatprep.subr.bf16.mxu0 %v6511_v45 }
 0xf40   :  { %3816 = vmatpush1.bf16.msra.mxu1 %v4896_v27 }
 0xf41   :  { %3817 = vmatprep.subr.bf16.mxu1 %v4901_v34  ;;  %4467 = vmatpush3.bf16.msra.mxu0 %v6515_v30 }
 0xf42   :  { %4468 = vmatprep.subr.bf16.mxu0 %v6519_v63 }
 0xf44   :  { %3818 = vmatpush1.bf16.msra.mxu1 %v4899_v24 }
 0xf45   :  { %3819 = vmatprep.subr.bf16.mxu1 %v4904_v40 }
 0xf48   :  { %3820 = vmatpush1.bf16.msra.mxu1 %v4902_v44 }
 0xf49   :  { %3821 = vmatprep.subr.bf16.mxu1 %v4907_v32 }
 0xf4c   :  { %3822 = vmatpush1.bf16.msra.mxu1 %v4905_v29 }
 0xf4d   :  { %4582 = vmatprep.subr.bf16.mxu1 %v4908_v43 }
0x1001   :  { %v4436_v41 = vpop.f32.mrb[40].mxu1 }
0x1002   :  { %v4437_v19 = vpop.f32.mrb[41].mxu1 }
0x1003   :  { %v4438_v17 = vadd.f32 %v4437_v19, %v4436_v41  ;;  %v4580_v57 = vpop.f32.mrb[44].mxu0  ;;  %v4439_v58 = vpop.f32.mrb[42].mxu1 }
0x1004   :  { %v3588_v59 = vpop.f32.mrb[45].mxu0  ;;  %v4440_v37 = vpop.f32.mrb[43].mxu1 }
0x1005   :  { %v3589_v23 = vadd.f32 %v4438_v17, %v3588_v59  ;;  %v4441_v26 = vadd.f32 %v4440_v37, %v4439_v58  ;;  %v4581_v36 = vpop.f32.mrb[46].mxu0  ;;  %v3000_v17 = vld [vmem:[%s6615_s2] sm:$0x1] }
0x1006   :  { %v3591_v60 = vpop.f32.mrb[47].mxu0  ;;  %v3001_v59 = vld [vmem:[%s6616_s7] sm:$0x1] }
0x1007   :  { %v3592_v49 = vadd.f32 %v4441_v26, %v3591_v60 }
0x1009   :  { %v3603_v50 = vadd.f32 %v3592_v49, %v3589_v23  ;;  %v4442_v39 = vpop.f32.mrb[44].mxu1 }
0x100a   :  { %v4443_v5 = vpop.f32.mrb[45].mxu1 }
0x100b   :  { %v4444_v8 = vadd.f32 %v4443_v5, %v4442_v39  ;;  %v4445_v9 = vpop.f32.mrb[46].mxu1 }
0x100c   :  { %v4446_v4 = vpop.f32.mrb[47].mxu1 }
0x100d   :  { %v3597_v13 = vadd.f32 %v4580_v57, %v4444_v8  ;;  %v4447_v3 = vadd.f32 %v4446_v4, %v4445_v9 }
0x100f   :  { %v3604_v14 = vadd.f32 %v3603_v50, %v3597_v13  ;;  %v3600_v15 = vadd.f32 %v4581_v36, %v4447_v3 }
0x1011   :  { %v3605_v16 = vadd.f32 %v3604_v14, %v3600_v15 }
0x1013   :  { %v3606_v10 = vrot.slane %v3605_v16, 4 }
0x1015   :  { %v3607_v18 = vadd.f32 %v3606_v10, %v3605_v16 }
0x1017   :  { %v3608_v6 = vrot.slane %v3607_v18, 2 }
0x1019   :  { %v3609_v38 = vadd.f32 %v3608_v6, %v3607_v18 }
0x101b   :  { %v3610_v2 = vrot.slane %v3609_v38, 1 }
0x101d   :  { %v3611_v62 = vadd.f32 %v3610_v2, %v3609_v38 }
0x101f   :  { %v3612_v7 = vmul.f32 0.03125, %v3611_v62 }
0x1021   :  { %v3613_v42 = vsub.f32 %v3589_v23, %v3612_v7  ;;  %v3614_v11 = vsub.f32 %v3592_v49, %v3612_v7  ;;  %v3615_v31 = vsub.f32 %v3597_v13, %v3612_v7  ;;  %v3616_v12 = vsub.f32 %v3600_v15, %v3612_v7 }
0x1023   :  { %v3617_v0 = vmul.f32 %v3613_v42, %v3613_v42  ;;  %v3618_v33 = vmul.f32 %v3614_v11, %v3614_v11  ;;  %v3619_v21 = vmul.f32 %v3615_v31, %v3615_v31  ;;  %v3620_v25 = vmul.f32 %v3616_v12, %v3616_v12 }
0x1025   :  { %v3621_v22 = vadd.f32 %v3618_v33, %v3617_v0 }
0x1027   :  { %v3622_v27 = vadd.f32 %v3621_v22, %v3619_v21 }
0x1029   :  { %v3623_v34 = vadd.f32 %v3622_v27, %v3620_v25 }
0x102b   :  { %v3624_v24 = vrot.slane %v3623_v34, 4 }
0x102d   :  { %v3625_v40 = vadd.f32 %v3624_v24, %v3623_v34 }
0x102f   :  { %v3626_v44 = vrot.slane %v3625_v40, 2 }
0x1031   :  { %v3627_v32 = vadd.f32 %v3626_v44, %v3625_v40 }
0x1033   :  { %v3628_v29 = vrot.slane %v3627_v32, 1 }
0x1035   :  { %v3629_v43 = vadd.f32 %v3628_v29, %v3627_v32 }
0x1037   :  { %v3630_v41 = vmul.f32 0.03125, %v3629_v43 }
0x1039   :  { %v3631_v19 = vadd.f32 1e-05, %v3630_v41 }
0x103b   :  { %4942 = vrsqrt.f32 %v3631_v19 }
0x1045   :  { %v4943_v57 = vpop.eup %4942 }
0x1046   :  { %v3633_v58 = vmul.f32 %v4943_v57, %v3000_v17  ;;  %v4309_v17 = vld [vmem:[%s5710_s30] ss:$0 sm:$0xff] }
0x1048   :  { %v3634_v37 = vmul.f32 %v3633_v58, %v3612_v7  ;;  %v3640_v26 = vrot.slane %v3633_v58, %v5892_v47 }
0x104a   :  { %v3635_v36 = vsub.f32 %v3001_v59, %v3634_v37  ;;  %v3645_v60 = vmul.f32 %v3640_v26, %v3600_v15  ;;  %v3642_v50 = vmul.f32 %v3640_v26, %v3589_v23  ;;  %v3643_v39 = vmul.f32 %v3640_v26, %v3592_v49 }
0x104b   :  { %v3644_v5 = vmul.f32 %v3640_v26, %v3597_v13 }
0x104c   :  { %v3650_v8 = vrot.slane %v3635_v36, %v5892_v47 }
0x104e   :  { %v3652_v9 = vadd.f32 %v3650_v8, %v3642_v50  ;;  %v3653_v4 = vadd.f32 %v3650_v8, %v3643_v39  ;;  %v3654_v3 = vadd.f32 %v3650_v8, %v3644_v5  ;;  %v3655_v14 = vadd.f32 %v3650_v8, %v3645_v60 }
0x1050   :  { %v3656_v16 = vadd.f32 %v3652_v9, %v6381_v46  ;;  %v3657_v10 = vadd.f32 %v3653_v4, %v6377_v20  ;;  %v3658_v18 = vadd.f32 %v3654_v3, %v6383_v52  ;;  %v3659_v6 = vadd.f32 %v3655_v14, %v6379_v35  ;;  %v4920_v20 = vld [vmem:[%s5705_s4 + $0x70] sm:$0xff]   ;;  %v4922_v46 = vld [vmem:[%s5705_s4 + $0x78] sm:$0xff]  }
0x1051   :  { %v4921_v35 = vld [vmem:[%s5705_s4 + $0x30] sm:$0xff]   ;;  %v4923_v52 = vld [vmem:[%s5705_s4 + $0x38] sm:$0xff]  }
0x1052   :  { %v3660_v38 = vmax.f32 %v3656_v16, 0.0  ;;  %v3661_v2 = vmax.f32 %v3657_v10, 0.0  ;;  %v3662_v15 = vmax.f32 %v3658_v18, 0.0  ;;  %v3663_v23 = vmax.f32 %v3659_v6, 0.0 }
0x1054   :  { %v3714_v49 = vpack.c.bf16 %v3661_v2, %v3660_v38  ;;  %v3715_v13 = vpack.c.bf16 %v3663_v23, %v3662_v15 }
0x1056   :  { %3840 = vmatmul.mubr.bf16.vlgmr.msra.gmra.mrb[48].mxu1 %v3714_v49 }
0x1057   :  { %3849 = vmatprep.mubr.bf16.mxu1 %v5508_v53  ;;  %4590 = vmatpush3.bf16.msra.mxu1 %v6484_v28  ;;  %v4919_v53 = vld [vmem:[%s5705_s4 + $0x28] sm:$0xff]   ;;  %v3680_v28 = vld [vmem:[%s5700_s14] sm:$0x3]  ;;  %s5509_s14 = smov [#allocation34]  }
0x1058   :  { %4583 = vmatprep.subr.bf16.mxu1 %v6487_v54  ;;  %4469 = vmatpush3.bf16.msra.mxu0 %v4919_v53  ;;  %v3723_v54 = vsub.s32 1, %v5803_v1  ;;  %s4056_s30 = sshll.u32 %s5509_s14, 4  ;;  %s4057_s30 = int_to_ptr.vmem [resolvable:$true] %s4056_s30 }
0x1059   :  { %4470 = vmatprep.subr.bf16.mxu0 %v4920_v20  ;;  %s5400_s4 = scalar_lea.vmem %s4057_s30, 512  ;;  %p5405_p7 = scmp.lt.s32.totalorder %s4057_s30, %s4057_s30 }
0x105a   :  { %p5401_p6 = scmp.ne.s32.totalorder %s4057_s30, %s5400_s4  ;;  %p5406_p8 = scmp.lt.s32.totalorder %s5400_s4, %s5400_s4 }
0x105b   :  { %4591 = vmatpush3.bf16.msra.mxu1 %v6491_v55  ;;  %v3720_v55 = vrot.slane %v3680_v28, %v5892_v47 }
0x105c   :  { %4584 = vmatprep.subr.bf16.mxu1 %v6495_v56  ;;  %4471 = vmatpush3.bf16.msra.mxu0 %v4921_v35  ;;  %v3724_v56 = vrot.slane %v3680_v28, %v3723_v54  ;;  %p5407_p9 = por %p5406_p8, %p5405_p7 }
0x105d   :  { %4472 = vmatprep.subr.bf16.mxu0 %v4922_v46 }
0x105e   :  { %3850 = vmatmul.mubr.bf16.gmra.mrb[52].mxu1 %v3715_v13  ;;  %p5408_p10 = pnand %p5407_p9, %p5401_p6 }
0x105f   :  { %4592 = vmatpush3.bf16.msra.mxu1 %v6499_v48 }
0x1060   :  { %4585 = vmatprep.subr.bf16.mxu1 %v6503_v51  ;;  %4473 = vmatpush3.bf16.msra.mxu0 %v4923_v52 }
0x1063   :  { %4593 = vmatpush3.bf16.msra.mxu1 %v6507_v61 }
0x1064   :  { %4586 = vmatprep.subr.bf16.mxu1 %v6511_v45 }
0x1067   :  { %4594 = vmatpush3.bf16.msra.mxu1 %v6515_v30 }
0x1068   :  { %4587 = vmatprep.subr.bf16.mxu1 %v6519_v63 }
0x106b   :  { %4595 = vmatpush3.bf16.msra.mxu1 %v4919_v53 }
0x106c   :  { %4588 = vmatprep.subr.bf16.mxu1 %v4920_v20 }
0x106f   :  { %4596 = vmatpush3.bf16.msra.mxu1 %v4921_v35 }
0x1070   :  { %4589 = vmatprep.subr.bf16.mxu1 %v4922_v46 }
0x1073   :  { %4597 = vmatpush3.bf16.msra.mxu1 %v4923_v52 }
0x1129   :  { %v3841_v48 = vpop.f32.mrb[48].mxu1 }
0x112a   :  { %v3842_v51 = vadd.f32 %v3841_v48, %v3720_v55  ;;  %v3843_v61 = vpop.f32.mrb[49].mxu1 }
0x112b   :  { %v3844_v45 = vadd.f32 %v3843_v61, %v3724_v56  ;;  %v3845_v30 = vpop.f32.mrb[50].mxu1 }
0x112c   :  { %v3846_v63 = vadd.f32 %v3845_v30, %v3720_v55  ;;  %v3847_v62 = vpop.f32.mrb[51].mxu1  ;;  %v3860_v42 = vmax.f32 %v3842_v51, 0.0 }
0x112d   :  { %v3848_v7 = vadd.f32 %v3847_v62, %v3724_v56  ;;  %v3861_v31 = vmax.f32 %v3844_v45, 0.0 }
0x112e   :  { %v3862_v11 = vmax.f32 %v3846_v63, 0.0 }
0x112f   :  { %v3863_v12 = vmax.f32 %v3848_v7, 0.0 }
0x1130   :  { %v3868_v0 = vpack.c.bf16 %v3862_v11, %v3860_v42 }
0x1131   :  { %v3869_v33 = vpack.c.bf16 %v3863_v12, %v3861_v31  ;;  %v3851_v21 = vpop.f32.mrb[52].mxu1 }
0x1132   :  { %v3852_v22 = vadd.f32 %v3851_v21, %v3720_v55  ;;  %v3853_v1 = vpop.f32.mrb[53].mxu1 }
0x1133   :  { %v3854_v25 = vadd.f32 %v3853_v1, %v3724_v56  ;;  %v3855_v47 = vpop.f32.mrb[54].mxu1  ;;  %4006 = vmatprep.mubr.bf16.mxu0 %v3869_v33 }
0x1134   :  { %v3856_v27 = vadd.f32 %v3855_v47, %v3720_v55  ;;  %v3857_v34 = vpop.f32.mrb[55].mxu1  ;;  %4007 = vmatmul.mubr.bf16.vlgmr.msra.gmra.mrb[48].mxu0 %v3868_v0  ;;  %v3864_v40 = vmax.f32 %v3852_v22, 0.0 }
0x1135   :  { %v3858_v24 = vadd.f32 %v3857_v34, %v3724_v56  ;;  %v3865_v32 = vmax.f32 %v3854_v25, 0.0 }
0x1136   :  { %v3866_v44 = vmax.f32 %v3856_v27, 0.0 }
0x1137   :  { %v3867_v29 = vmax.f32 %v3858_v24, 0.0 }
0x1138   :  { %v3870_v43 = vpack.c.bf16 %v3866_v44, %v3864_v40 }
0x1139   :  { %v3871_v41 = vpack.c.bf16 %v3867_v29, %v3865_v32 }
0x113b   :  { %4014 = vmatprep.mubr.bf16.mxu1 %v3871_v41 }
0x113c   :  { %4015 = vmatmul.mubr.bf16.vlgmr.msra.gmra.mrb[56].mxu1 %v3870_v43 }
0x1207   :  { %v4474_v19 = vpop.f32.mrb[48].mxu0 }
0x1208   :  { %v4475_v57 = vpop.f32.mrb[49].mxu0 }
0x1209   :  { %v4476_v58 = vadd.f32 %v4475_v57, %v4474_v19  ;;  %v4477_v59 = vpop.f32.mrb[50].mxu0 }
0x120a   :  { %v4478_v37 = vpop.f32.mrb[51].mxu0 }
0x120b   :  { %v4009_v26 = vadd.f32 %v4476_v58, %v4309_v17  ;;  %v4479_v36 = vadd.f32 %v4478_v37, %v4477_v59 }
0x120d   :  { %v4023_v60 = vsub.f32 0.0, %v4009_v26  ;;  %v4012_v50 = vadd.f32 %v4479_v36, %v4309_v17 }
0x120f   :  { %v4027_v39 = vmul.f32 1.442695, %v4023_v60  ;;  %v4024_v5 = vsub.f32 0.0, %v4012_v50  ;;  %v4480_v8 = vpop.f32.mrb[56].mxu1 }
0x1210   :  { %v4481_v9 = vpop.f32.mrb[57].mxu1 }
0x1211   :  { %4944 = vpow2.f32 %v4027_v39  ;;  %v4029_v4 = vmul.f32 1.442695, %v4024_v5  ;;  %v4482_v3 = vadd.f32 %v4481_v9, %v4480_v8  ;;  %v4483_v14 = vpop.f32.mrb[58].mxu1 }
0x1212   :  { %v4484_v16 = vpop.f32.mrb[59].mxu1 }
0x1213   :  { %4946 = vpow2.f32 %v4029_v4  ;;  %v4017_v10 = vadd.f32 %v4482_v3, %v4309_v17  ;;  %v4485_v18 = vadd.f32 %v4484_v16, %v4483_v14 }
0x1215   :  { %v4025_v6 = vsub.f32 0.0, %v4017_v10  ;;  %v4020_v38 = vadd.f32 %v4485_v18, %v4309_v17 }
0x1217   :  { %v4031_v2 = vmul.f32 1.442695, %v4025_v6  ;;  %v4026_v15 = vsub.f32 0.0, %v4020_v38 }
0x1219   :  { %4948 = vpow2.f32 %v4031_v2  ;;  %v4033_v23 = vmul.f32 1.442695, %v4026_v15 }
0x121b   :  { %v4945_v49 = vpop.eup %4944  ;;  %4950 = vpow2.f32 %v4033_v23 }
0x121c   :  { %v4035_v13 = vadd.f32 1.0, %v4945_v49 }
0x121d   :  { %v4947_v53 = vpop.eup %4946 }
0x121e   :  { %4952 = vrcp.f32 %v4035_v13  ;;  %v4036_v20 = vadd.f32 1.0, %v4947_v53 }
0x1220   :  { %4954 = vrcp.f32 %v4036_v20 }
0x1223   :  { %v4949_v35 = vpop.eup %4948 }
0x1224   :  { %v4037_v46 = vadd.f32 1.0, %v4949_v35 }
0x1225   :  { %v4951_v52 = vpop.eup %4950 }
0x1226   :  { %4956 = vrcp.f32 %v4037_v46  ;;  %v4038_v28 = vadd.f32 1.0, %v4951_v52 }
0x1228   :  { %v4953_v54 = vpop.eup %4952  ;;  %4958 = vrcp.f32 %v4038_v28 }
0x1229   :  { %4047 = vst [vmem:[#allocation34] sm:$0xff] %v4953_v54 }
0x122a   :  { %v4955_v55 = vpop.eup %4954 }
0x122b   :  { %4048 = vst [vmem:[#allocation34 + $0x8] sm:$0xff] %v4955_v55 }
0x1230   :  { %v4957_v56 = vpop.eup %4956 }
0x1231   :  { %4049 = vst [vmem:[#allocation34 + $0x10] sm:$0xff] %v4957_v56 }
0x1232   :  { %v4959_v48 = vpop.eup %4958 }
0x1233   :  { %4050 = vst [vmem:[#allocation34 + $0x18] sm:$0xff] %v4959_v48 }
0x1234   :  { %5411 = shalt.err (!%p5408_p10)
}
0x1235   :  { %s5412_s10 = scalar_lea.hbm %s5715_s12, 512 }
0x1236   :  { %p5413_p11 = scmp.ne.s32.totalorder %s5715_s12, %s5412_s10  ;;  %p5416_p12 = scmp.lt.u32.totalorder %s5412_s10, %s5715_s12 }
0x1238   :  { %p5418_p13 = pnand %p5416_p12, %p5413_p11 }
0x123a   :  { %5421 = shalt.err (!%p5418_p13)
}
0x123b   :  { %s5510_s21 = smov 128   ;;  %s5511_s11 = smov 8  }
0x123c   :  { %4062 = dma.vmem_to_hbm [thread:$0]  %s4057_s30, 512, %s5715_s12, [#allocation4], %s5510_s21, %s5510_s21, %s5511_s11  }
0x123d   :  { %5444 = dma.done.wait [#allocation4], 512  }
0x123e   :  { %5445 = vsyncadd [#allocation4], 4294966784 }
0x123f   :  { %4066 = vsyncpa [#allocation3], 1 }
0x1240   :  { %4067 = vsyncpa [#allocation6], 1 }
0x1241   :  { %4068 = vsyncpa [#allocation9], 1 }
0x1242   :  { %4069 = vsyncpa [#allocation12], 1 }
0x1243   :  { %4070 = vsyncpa [#allocation15], 1 }
0x1244   :  { %4071 = vsyncpa [#allocation18], 1 }
0x1245   :  { %4072 = vsyncpa [#allocation21], 1 }
0x1246   :  { %4073 = vsyncpa [#allocation24], 1 }
0x1247   :  { %4074 = vsyncpa [#allocation27], 1 }
0x1248   :  { %4075 = vsyncpa [#allocation30], 1 }
0x1249   :  { %4076 = vsyncpa [#allocation33], 1 }
0x124a   :  { %4077 = vsyncpa [#allocation4], 1 }

</bundles_post_ra>
